<compile_context>
chip_gen: v5e
topology: v5e:2x2
jax: 0.10.0
libtpu: 0.0.40
codegen_flags: <defaults>
</compile_context>

<pallas_src>
import functools

import jax
import jax.numpy as jnp
from jax.experimental import pallas as pl
from jax.experimental.pallas import tpu as pltpu

FEATURE_DIM = 128      # simCLR feature_dim
BACKBONE_DIM = 2048    # ResNet-50 feature width after global pool / flatten
HIDDEN_DIM = 512       # g hidden width
IN_CHANNELS = 3        # RGB input

_LANE = 128
_X_STREAM_BYTES = 24 * 1024 * 1024     # double-buffered budget for the x stream
_VMEM_LIMIT_BYTES = 48 * 1024 * 1024   # total scoped VMEM (safe on v5e/v6e/v7x)


def _round_up(x, m):
    return (x + m - 1) // m * m


def _pick_spatial_tile(hw_pad, rows, itemsize):
    """Largest multiple-of-128 divisor of hw_pad (capped at 8192) whose
    double-buffered (rows, THW) x block fits the x-stream VMEM budget."""
    per_buffer = _X_STREAM_BYTES // 2
    cap = per_buffer // (rows * itemsize)
    cap = max(_LANE, min(8192, (cap // _LANE) * _LANE))
    best = _LANE
    for t in range(_LANE, min(hw_pad, cap) + 1, _LANE):
        if hw_pad % t == 0:
            best = t
    return best


def _l2_normalize(v):
    # F.normalize(v, dim=-1) == v / max(||v||_2, 1e-12)
    #                        == v * rsqrt(max(||v||_2^2, 1e-24))
    ss = jnp.sum(v * v, axis=-1, keepdims=True)
    return v * jax.lax.rsqrt(jnp.maximum(ss, 1e-24))


def _simclr_kernel(x_ref, ws_ref, w1_ref, w2_ref, b2_ref,
                   feat_ref, out_ref, acc_ref,
                   *, inv_hw, tb, channels, lane_chunks):
    j = pl.program_id(1)

    @pl.when(j == 0)
    def _():
        acc_ref[...] = jnp.zeros_like(acc_ref)

    # Streamed global-average-pool, lane-chunked: fold each 128-lane chunk of
    # this (TB*C, THW) tile into the lane-shaped accumulator with plain VPU
    # vreg adds.  Ref-sliced loads keep the live value small; the cross-lane
    # reduce is deferred to the last spatial step (keeps the XLU off the
    # per-tile critical path).
    for k in range(lane_chunks):
        acc_ref[...] += x_ref[:, k * _LANE:(k + 1) * _LANE].astype(jnp.float32)

    @pl.when(j == pl.num_programs(1) - 1)
    def _():
        # --- stub backbone f: per-channel spatial mean -> 2048 features ----
        # pooled[:, ch] is gathered from the flat accumulator with a strided
        # sublane load (rows ch, ch+C, ch+2C, ...), reduced across lanes once,
        # scaled by 1/(H*W), and folded into the feature via VPU broadcast-
        # FMAs (K=C is far too small to be worth an MXU push/pop).
        # TODO(synk): replace with a real ResNet-50 backbone if needed.
        def pooled_col(ch):
            ch_rows = acc_ref[pl.ds(ch, tb, stride=channels), :]   # (TB, 128)
            return jnp.sum(ch_rows, axis=-1, keepdims=True) * inv_hw  # (TB, 1)

        feature = pooled_col(0) * ws_ref[0:1, :]                   # (TB, 2048)
        for ch in range(1, channels):
            feature = feature + pooled_col(ch) * ws_ref[ch:ch + 1, :]
        # torch.flatten(x, start_dim=1) is a no-op: feature is already (TB, 2048)

        # --- projection head g (bf16 MXU operands, f32 accumulation) -------
        h = jnp.dot(feature.astype(jnp.bfloat16), w1_ref[...],
                    preferred_element_type=jnp.float32)            # (TB, 512)
        h = jnp.maximum(h, 0.0)                                    # ReLU
        out = jnp.dot(h.astype(jnp.bfloat16), w2_ref[...],
                      preferred_element_type=jnp.float32) + b2_ref[...]  # (TB, 128)

        feat_ref[...] = _l2_normalize(feature)
        out_ref[...] = _l2_normalize(out)


def init_params(key):
    """Deterministic synthetic parameters (shapes from simCLR.__init__)."""
    k0, k1, k2, k3 = jax.random.split(key, 4)
    # stub-backbone projection (C -> 2048); f32 (tiny, used on the VPU)
    ws = jax.random.normal(k0, (IN_CHANNELS, BACKBONE_DIM), jnp.float32) * 0.05
    # g[0]: Linear(2048, 512, bias=False) -> stored transposed (in, out), bf16
    w1 = (jax.random.normal(k1, (BACKBONE_DIM, HIDDEN_DIM), jnp.float32)
          * (1.0 / jnp.sqrt(BACKBONE_DIM))).astype(jnp.bfloat16)
    # g[2]: Linear(512, 128, bias=True)   -> stored transposed (in, out), bf16
    w2 = (jax.random.normal(k2, (HIDDEN_DIM, FEATURE_DIM), jnp.float32)
          * (1.0 / jnp.sqrt(HIDDEN_DIM))).astype(jnp.bfloat16)
    b2 = jax.random.normal(k3, (1, FEATURE_DIM), jnp.float32) * 0.01
    return ws, w1, w2, b2


@jax.jit
def simclr_forward(x_nchw, ws, w1, w2, b2):
    B, C, H, W = x_nchw.shape
    HW = H * W
    HW_pad = _round_up(HW, _LANE)

    # NCHW -> flat (B*C, H*W): free, contiguous reshape.  The producer dtype
    # is streamed as-is (bf16/uint8 inputs halve/quarter HBM read bytes); the
    # cast to f32 happens inside the kernel's accumulator.
    x = x_nchw.reshape(B * C, HW)

    # Batch tile: multiple of 8 sublanes; >= 2 batch blocks whenever B > 8 so
    # the 'parallel' axis can be sharded across v7x's two TensorCores; allow
    # 256-row blocks on large batches to fill the 256x256 MXU (v6e/v7x).
    B_min = _round_up(B, 8)
    tb_cap = 256 if B_min >= 512 else 128
    if B_min > 8:
        TB = min(tb_cap, _round_up((B_min + 1) // 2, 8))
    else:
        TB = 8
    B_pad = _round_up(B, TB)

    # Zero padding: padded rows pool to zero; padded spatial lanes add zero to
    # the sum (inv_hw uses the true H*W), so results are unchanged.
    pad_rows = (B_pad - B) * C
    pad_cols = HW_pad - HW
    if pad_rows or pad_cols:
        x = jnp.pad(x, ((0, pad_rows), (0, pad_cols)))

    rows = TB * C
    THW = _pick_spatial_tile(HW_pad, rows, x.dtype.itemsize)
    lane_chunks = THW // _LANE
    grid = (B_pad // TB, HW_pad // THW)

    kernel = functools.partial(_simclr_kernel, inv_hw=1.0 / HW, tb=TB,
                               channels=C, lane_chunks=lane_chunks)

    flops = (B_pad * C * HW_pad                                # streamed pool
             + 2 * B_pad * (C * BACKBONE_DIM
                            + BACKBONE_DIM * HIDDEN_DIM
                            + HIDDEN_DIM * FEATURE_DIM)        # matmuls/FMAs
             + 3 * B_pad * (BACKBONE_DIM + FEATURE_DIM))       # normalize
    bytes_accessed = (x.size * x.dtype.itemsize
                      + ws.size * 4 + w1.size * 2 + w2.size * 2 + b2.size * 4
                      + B_pad * (BACKBONE_DIM + FEATURE_DIM) * 4)

    feat_n, out_n = pl.pallas_call(
        kernel,
        out_shape=(
            jax.ShapeDtypeStruct((B_pad, BACKBONE_DIM), jnp.float32),
            jax.ShapeDtypeStruct((B_pad, FEATURE_DIM), jnp.float32),
        ),
        grid_spec=pltpu.PrefetchScalarGridSpec(
            num_scalar_prefetch=0,
            grid=grid,
            in_specs=[
                # streamed input: (batch block x all channels, spatial tile),
                # lane-dense, no sublane padding
                pl.BlockSpec((rows, THW), lambda i, j: (i, j)),
                # VMEM-resident weights (constant index_map -> no re-DMA)
                pl.BlockSpec((C, BACKBONE_DIM), lambda i, j: (0, 0)),
                pl.BlockSpec((BACKBONE_DIM, HIDDEN_DIM), lambda i, j: (0, 0)),
                pl.BlockSpec((HIDDEN_DIM, FEATURE_DIM), lambda i, j: (0, 0)),
                pl.BlockSpec((1, FEATURE_DIM), lambda i, j: (0, 0)),
            ],
            out_specs=(
                # same block across the spatial (reduction) axis -> resident,
                # written only on the last spatial step
                pl.BlockSpec((TB, BACKBONE_DIM), lambda i, j: (i, 0)),
                pl.BlockSpec((TB, FEATURE_DIM), lambda i, j: (i, 0)),
            ),
            # lane-shaped pooling accumulator (deferred cross-lane reduce)
            scratch_shapes=[pltpu.VMEM((rows, _LANE), jnp.float32)],
        ),
        compiler_params=pltpu.CompilerParams(
            dimension_semantics=("parallel", "arbitrary"),
            vmem_limit_bytes=_VMEM_LIMIT_BYTES,
        ),
        cost_estimate=pl.CostEstimate(
            flops=flops,
            transcendentals=2 * B_pad,
            bytes_accessed=bytes_accessed,
        ),
    )(x, ws, w1, w2, b2)

    return feat_n[:B], out_n[:B]


if __name__ == "__main__":
    key = jax.random.PRNGKey(0)
    kx, kp = jax.random.split(key)

    # small image batch consistent with the module's NCHW conv-style input
    x = jax.random.normal(kx, (2, IN_CHANNELS, 16, 16), dtype=jnp.float32)
    ws, w1, w2, b2 = init_params(kp)

    feat_n, out_n = simclr_forward(x, ws, w1, w2, b2)
    jax.block_until_ready((feat_n, out_n))

    assert feat_n.shape == (2, BACKBONE_DIM)
    assert out_n.shape == (2, FEATURE_DIM)
    assert bool(jnp.all(jnp.isfinite(feat_n))) and bool(jnp.all(jnp.isfinite(out_n)))
    # both outputs must be unit-norm rows (f32 feature path, f32 normalize)
    fn = jnp.linalg.norm(feat_n, axis=-1)
    on = jnp.linalg.norm(out_n, axis=-1)
    assert bool(jnp.all(jnp.abs(fn - 1.0) < 1e-3)) and bool(jnp.all(jnp.abs(on - 1.0) < 1e-3))

    print("KERNEL_OK")
</pallas_src>

<mosaic_0001>
module attributes {stable_mosaic.version = 11 : i64} {
  func.func @_simclr_kernel(%arg0: i32, %arg1: i32, %arg2: memref<24x256xf32, #tpu.memory_space<vmem>>, %arg3: memref<3x2048xf32, #tpu.memory_space<vmem>>, %arg4: memref<2048x512xbf16, #tpu.memory_space<vmem>>, %arg5: memref<512x128xbf16, #tpu.memory_space<vmem>>, %arg6: memref<1x128xf32, #tpu.memory_space<vmem>>, %arg7: memref<8x2048xf32, #tpu.memory_space<vmem>>, %arg8: memref<8x128xf32, #tpu.memory_space<vmem>>, %arg9: memref<24x128xf32, #tpu.memory_space<vmem>>) attributes {dimension_semantics = [#tpu.dimension_semantics<parallel>, #tpu.dimension_semantics<arbitrary>], iteration_bounds = array<i64: 1, 1>, scalar_prefetch = 0 : i64, scratch_operands = 1 : i64, tpu.core_type = #tpu.core_type<tc>, window_params = [{transform_indices = @transform_0, window_bounds = array<i64: 24, 256>}, {pipeline_mode = #tpu.pipeline_mode<synchronous>, transform_indices = @transform_1, window_bounds = array<i64: 3, 2048>}, {pipeline_mode = #tpu.pipeline_mode<synchronous>, transform_indices = @transform_2, window_bounds = array<i64: 2048, 512>}, {pipeline_mode = #tpu.pipeline_mode<synchronous>, transform_indices = @transform_3, window_bounds = array<i64: 512, 128>}, {pipeline_mode = #tpu.pipeline_mode<synchronous>, transform_indices = @transform_4, window_bounds = array<i64: 1, 128>}, {transform_indices = @transform_5, window_bounds = array<i64: 8, 2048>}, {transform_indices = @transform_6, window_bounds = array<i64: 8, 128>}]} {
    %c0_i32 = arith.constant 0 : i32
    %0 = arith.cmpi eq, %arg1, %c0_i32 : i32
    %1 = arith.extui %0 : i1 to i32
    %c0_i32_0 = arith.constant 0 : i32
    %2 = arith.cmpi ne, %1, %c0_i32_0 : i32
    scf.if %2 {
      %cst = arith.constant 0.000000e+00 : f32
      %14 = vector.broadcast %cst : f32 to vector<24x128xf32>
      %c0_13 = arith.constant 0 : index
      %c0_14 = arith.constant 0 : index
      %15 = vector.load %arg9[%c0_13, %c0_14] : memref<24x128xf32, #tpu.memory_space<vmem>>, vector<24x128xf32>
      tpu.vector_store %arg9[%c0_13, %c0_14], %14 {strides = array<i32>} : memref<24x128xf32, #tpu.memory_space<vmem>>, vector<24x128xf32>,
    } else {
    }
    %c0 = arith.constant 0 : index
    %c0_1 = arith.constant 0 : index
    %3 = vector.load %arg9[%c0, %c0_1] : memref<24x128xf32, #tpu.memory_space<vmem>>, vector<24x128xf32>
    %c0_2 = arith.constant 0 : index
    %c0_3 = arith.constant 0 : index
    %4 = vector.load %arg2[%c0_2, %c0_3] : memref<24x256xf32, #tpu.memory_space<vmem>>, vector<24x128xf32>
    %5 = arith.addf %3, %4 : vector<24x128xf32>
    %c0_4 = arith.constant 0 : index
    %c0_5 = arith.constant 0 : index
    %6 = vector.load %arg9[%c0_4, %c0_5] : memref<24x128xf32, #tpu.memory_space<vmem>>, vector<24x128xf32>
    tpu.vector_store %arg9[%c0_4, %c0_5], %5 {strides = array<i32>} : memref<24x128xf32, #tpu.memory_space<vmem>>, vector<24x128xf32>,
    %c0_6 = arith.constant 0 : index
    %c0_7 = arith.constant 0 : index
    %7 = vector.load %arg9[%c0_6, %c0_7] : memref<24x128xf32, #tpu.memory_space<vmem>>, vector<24x128xf32>
    %c0_8 = arith.constant 0 : index
    %c128 = arith.constant 128 : index
    %8 = vector.load %arg2[%c0_8, %c128] : memref<24x256xf32, #tpu.memory_space<vmem>>, vector<24x128xf32>
    %9 = arith.addf %7, %8 : vector<24x128xf32>
    %c0_9 = arith.constant 0 : index
    %c0_10 = arith.constant 0 : index
    %10 = vector.load %arg9[%c0_9, %c0_10] : memref<24x128xf32, #tpu.memory_space<vmem>>, vector<24x128xf32>
    tpu.vector_store %arg9[%c0_9, %c0_10], %9 {strides = array<i32>} : memref<24x128xf32, #tpu.memory_space<vmem>>, vector<24x128xf32>,
    %c0_i32_11 = arith.constant 0 : i32
    %11 = arith.cmpi eq, %arg1, %c0_i32_11 : i32
    %12 = arith.extui %11 : i1 to i32
    %c0_i32_12 = arith.constant 0 : i32
    %13 = arith.cmpi ne, %12, %c0_i32_12 : i32
    scf.if %13 {
      %c0_13 = arith.constant 0 : index
      %c0_14 = arith.constant 0 : index
      %14 = tpu.strided_load %arg9[%c0_13, %c0_14] {strides = array<i32: 3, 1>} : memref<24x128xf32, #tpu.memory_space<vmem>>, vector<8x128xf32>
      %cst = arith.constant dense<0.000000e+00> : vector<8xf32>
      %15 = vector.multi_reduction <add>, %14, %cst [1] : vector<8x128xf32> to vector<8xf32>
      %16 = vector.shape_cast %15 : vector<8xf32> to vector<8x1xf32>
      %cst_15 = arith.constant 3.906250e-03 : f32
      %17 = vector.broadcast %cst_15 : f32 to vector<8x1xf32>
      %18 = arith.mulf %16, %17 : vector<8x1xf32>
      %c0_16 = arith.constant 0 : index
      %c0_17 = arith.constant 0 : index
      %19 = vector.load %arg3[%c0_16, %c0_17] : memref<3x2048xf32, #tpu.memory_space<vmem>>, vector<1x2048xf32>
      %20 = vector.broadcast %18 : vector<8x1xf32> to vector<8x2048xf32>
      %21 = vector.broadcast %19 : vector<1x2048xf32> to vector<8x2048xf32>
      %22 = arith.mulf %20, %21 : vector<8x2048xf32>
      %c1 = arith.constant 1 : index
      %c0_18 = arith.constant 0 : index
      %23 = tpu.strided_load %arg9[%c1, %c0_18] {strides = array<i32: 3, 1>} : memref<24x128xf32, #tpu.memory_space<vmem>>, vector<8x128xf32>
      %cst_19 = arith.constant dense<0.000000e+00> : vector<8xf32>
      %24 = vector.multi_reduction <add>, %23, %cst_19 [1] : vector<8x128xf32> to vector<8xf32>
      %25 = vector.shape_cast %24 : vector<8xf32> to vector<8x1xf32>
      %cst_20 = arith.constant 3.906250e-03 : f32
      %26 = vector.broadcast %cst_20 : f32 to vector<8x1xf32>
      %27 = arith.mulf %25, %26 : vector<8x1xf32>
      %c1_21 = arith.constant 1 : index
      %c0_22 = arith.constant 0 : index
      %28 = vector.load %arg3[%c1_21, %c0_22] : memref<3x2048xf32, #tpu.memory_space<vmem>>, vector<1x2048xf32>
      %29 = vector.broadcast %27 : vector<8x1xf32> to vector<8x2048xf32>
      %30 = vector.broadcast %28 : vector<1x2048xf32> to vector<8x2048xf32>
      %31 = arith.mulf %29, %30 : vector<8x2048xf32>
      %32 = arith.addf %22, %31 : vector<8x2048xf32>
      %c2 = arith.constant 2 : index
      %c0_23 = arith.constant 0 : index
      %33 = tpu.strided_load %arg9[%c2, %c0_23] {strides = array<i32: 3, 1>} : memref<24x128xf32, #tpu.memory_space<vmem>>, vector<8x128xf32>
      %cst_24 = arith.constant dense<0.000000e+00> : vector<8xf32>
      %34 = vector.multi_reduction <add>, %33, %cst_24 [1] : vector<8x128xf32> to vector<8xf32>
      %35 = vector.shape_cast %34 : vector<8xf32> to vector<8x1xf32>
      %cst_25 = arith.constant 3.906250e-03 : f32
      %36 = vector.broadcast %cst_25 : f32 to vector<8x1xf32>
      %37 = arith.mulf %35, %36 : vector<8x1xf32>
      %c2_26 = arith.constant 2 : index
      %c0_27 = arith.constant 0 : index
      %38 = vector.load %arg3[%c2_26, %c0_27] : memref<3x2048xf32, #tpu.memory_space<vmem>>, vector<1x2048xf32>
      %39 = vector.broadcast %37 : vector<8x1xf32> to vector<8x2048xf32>
      %40 = vector.broadcast %38 : vector<1x2048xf32> to vector<8x2048xf32>
      %41 = arith.mulf %39, %40 : vector<8x2048xf32>
      %42 = arith.addf %32, %41 : vector<8x2048xf32>
      %43 = arith.truncf %42 : vector<8x2048xf32> to vector<8x2048xbf16>
      %c0_28 = arith.constant 0 : index
      %c0_29 = arith.constant 0 : index
      %44 = vector.load %arg4[%c0_28, %c0_29] : memref<2048x512xbf16, #tpu.memory_space<vmem>>, vector<2048x512xbf16>
      %cst_30 = arith.constant dense<0.000000e+00> : vector<8x512xf32>
      %45 = tpu.matmul %43, %44, %cst_30 {dimension_numbers = #tpu.dot_dimension_numbers<[1], [0], [0], [1], [0, 0, 1, 1], [], []>} : vector<8x2048xbf16>, vector<2048x512xbf16>, vector<8x512xf32> -> vector<8x512xf32>
      %cst_31 = arith.constant 0.000000e+00 : f32
      %46 = vector.broadcast %cst_31 : f32 to vector<8x512xf32>
      %47 = arith.maximumf %45, %46 : vector<8x512xf32>
      %48 = arith.truncf %47 : vector<8x512xf32> to vector<8x512xbf16>
      %c0_32 = arith.constant 0 : index
      %c0_33 = arith.constant 0 : index
      %49 = vector.load %arg5[%c0_32, %c0_33] : memref<512x128xbf16, #tpu.memory_space<vmem>>, vector<512x128xbf16>
      %cst_34 = arith.constant dense<0.000000e+00> : vector<8x128xf32>
      %50 = tpu.matmul %48, %49, %cst_34 {dimension_numbers = #tpu.dot_dimension_numbers<[1], [0], [0], [1], [0, 0, 1, 1], [], []>} : vector<8x512xbf16>, vector<512x128xbf16>, vector<8x128xf32> -> vector<8x128xf32>
      %c0_35 = arith.constant 0 : index
      %c0_36 = arith.constant 0 : index
      %51 = vector.load %arg6[%c0_35, %c0_36] : memref<1x128xf32, #tpu.memory_space<vmem>>, vector<1x128xf32>
      %52 = vector.broadcast %51 : vector<1x128xf32> to vector<8x128xf32>
      %53 = arith.addf %50, %52 : vector<8x128xf32>
      %54 = arith.mulf %42, %42 : vector<8x2048xf32>
      %cst_37 = arith.constant dense<0.000000e+00> : vector<8xf32>
      %55 = vector.multi_reduction <add>, %54, %cst_37 [1] : vector<8x2048xf32> to vector<8xf32>
      %56 = vector.shape_cast %55 : vector<8xf32> to vector<8x1xf32>
      %cst_38 = arith.constant 1.000000e-24 : f32
      %57 = vector.broadcast %cst_38 : f32 to vector<8x1xf32>
      %58 = arith.maximumf %56, %57 : vector<8x1xf32>
      %59 = math.rsqrt %58 : vector<8x1xf32>
      %60 = vector.broadcast %59 : vector<8x1xf32> to vector<8x2048xf32>
      %61 = arith.mulf %42, %60 : vector<8x2048xf32>
      %c0_39 = arith.constant 0 : index
      %c0_40 = arith.constant 0 : index
      %62 = vector.load %arg7[%c0_39, %c0_40] : memref<8x2048xf32, #tpu.memory_space<vmem>>, vector<8x2048xf32>
      tpu.vector_store %arg7[%c0_39, %c0_40], %61 {strides = array<i32>} : memref<8x2048xf32, #tpu.memory_space<vmem>>, vector<8x2048xf32>,
      %63 = arith.mulf %53, %53 : vector<8x128xf32>
      %cst_41 = arith.constant dense<0.000000e+00> : vector<8xf32>
      %64 = vector.multi_reduction <add>, %63, %cst_41 [1] : vector<8x128xf32> to vector<8xf32>
      %65 = vector.shape_cast %64 : vector<8xf32> to vector<8x1xf32>
      %cst_42 = arith.constant 1.000000e-24 : f32
      %66 = vector.broadcast %cst_42 : f32 to vector<8x1xf32>
      %67 = arith.maximumf %65, %66 : vector<8x1xf32>
      %68 = math.rsqrt %67 : vector<8x1xf32>
      %69 = vector.broadcast %68 : vector<8x1xf32> to vector<8x128xf32>
      %70 = arith.mulf %53, %69 : vector<8x128xf32>
      %c0_43 = arith.constant 0 : index
      %c0_44 = arith.constant 0 : index
      %71 = vector.load %arg8[%c0_43, %c0_44] : memref<8x128xf32, #tpu.memory_space<vmem>>, vector<8x128xf32>
      tpu.vector_store %arg8[%c0_43, %c0_44], %70 {strides = array<i32>} : memref<8x128xf32, #tpu.memory_space<vmem>>, vector<8x128xf32>,
    } else {
    }
    return
  }
  func.func @transform_0(%arg0: i32, %arg1: i32) -> (i32, i32) {
    %c0_i32 = arith.constant 0 : i32
    return %arg0, %arg1 : i32, i32
  }
  func.func @transform_1(%arg0: i32, %arg1: i32) -> (i32, i32) {
    %c0_i32 = arith.constant 0 : i32
    %c0_i32_0 = arith.constant 0 : i32
    %c0_i32_1 = arith.constant 0 : i32
    return %c0_i32, %c0_i32_0 : i32, i32
  }
  func.func @transform_2(%arg0: i32, %arg1: i32) -> (i32, i32) {
    %c0_i32 = arith.constant 0 : i32
    %c0_i32_0 = arith.constant 0 : i32
    %c0_i32_1 = arith.constant 0 : i32
    return %c0_i32, %c0_i32_0 : i32, i32
  }
  func.func @transform_3(%arg0: i32, %arg1: i32) -> (i32, i32) {
    %c0_i32 = arith.constant 0 : i32
    %c0_i32_0 = arith.constant 0 : i32
    %c0_i32_1 = arith.constant 0 : i32
    return %c0_i32, %c0_i32_0 : i32, i32
  }
  func.func @transform_4(%arg0: i32, %arg1: i32) -> (i32, i32) {
    %c0_i32 = arith.constant 0 : i32
    %c0_i32_0 = arith.constant 0 : i32
    %c0_i32_1 = arith.constant 0 : i32
    return %c0_i32, %c0_i32_0 : i32, i32
  }
  func.func @transform_5(%arg0: i32, %arg1: i32) -> (i32, i32) {
    %c0_i32 = arith.constant 0 : i32
    %c0_i32_0 = arith.constant 0 : i32
    return %arg0, %c0_i32 : i32, i32
  }
  func.func @transform_6(%arg0: i32, %arg1: i32) -> (i32, i32) {
    %c0_i32 = arith.constant 0 : i32
    %c0_i32_0 = arith.constant 0 : i32
    return %arg0, %c0_i32 : i32, i32
  }
}

</mosaic_0001>

<bundles_post_ra>
// kernel: simclr_forward.1
= control target key start
LH: loop header
LB: loop body
LE: loop exit
PB: predicated region body
PF: predicated region fallthrough
CT: control target
= control target key end

     0   :  { %12 = vsyncpa [#allocation4], 0  ;;  %s8363_s0 = inlined_call_operand.vmem [shape: f32[24,256], index: 0, kind: input, shape index: {}]   ;;  %s8364_s1 = inlined_call_operand.hbm [shape: f32[3,2048], index: 1, kind: input, shape index: {}]   ;;  %s8365_s2 = inlined_call_operand.hbm [shape: bf16[2048,512], index: 2, kind: input, shape index: {}]   ;;  %s8366_s3 = inlined_call_operand.hbm [shape: bf16[512,128], index: 3, kind: input, shape index: {}]   ;;  %s8367_s4 = inlined_call_operand.hbm [shape: f32[1,128], index: 4, kind: input, shape index: {}]   ;;  %s8368_s5 = inlined_call_operand.vmem [shape: f32[8,2048], index: 5, kind: output, shape index: {0}]   ;;  %s8369_s6 = inlined_call_operand.vmem [shape: f32[8,128], index: 6, kind: output, shape index: {1}]  }
   0x1   :  { %13 = vsyncpa [#allocation6], 0  ;;  %s32_s23 = sshll.u32 %s8365_s2, 4  ;;  %s33_s23 = int_to_ptr.hbm [resolvable:$true] %s32_s23 }
   0x2   :  { %14 = vsyncpa [#allocation9], 0  ;;  %s7501_s24 = smov [#allocation5]   ;;  %s22_s28 = sshll.u32 %s8364_s1, 4  ;;  %s23_s28 = int_to_ptr.hbm [resolvable:$true] %s22_s28 }
   0x3   :  { %s34_s25 = sshll.u32 %s7501_s24, 4  ;;  %s7502_s29 = smov 256   ;;  %s35_s25 = int_to_ptr.vmem [resolvable:$true] %s34_s25 }
   0x4   :  { %s7503_s30 = smov 16   ;;  %s7504_s7 = smov [#allocation3]  }
   0x5   :  { %40 = dma.hbm_to_vmem [thread:$0]  %s33_s23, 65536, %s35_s25, [#allocation6], %s7502_s29, %s7502_s29, %s7503_s30  }
   0x6   :  { %s24_s8 = sshll.u32 %s7504_s7, 4  ;;  %s45_s11 = sshll.u32 %s8366_s3, 4  ;;  %s25_s8 = int_to_ptr.vmem [resolvable:$true] %s24_s8  ;;  %s46_s11 = int_to_ptr.hbm [resolvable:$true] %s45_s11 }
   0x7   :  { %27 = dma.hbm_to_vmem [thread:$0]  %s23_s28, 1024, %s25_s8, [#allocation4]  }
   0x8   :  { %s7505_s2 = smov [#allocation7]   ;;  %s59_s1 = sshll.u32 %s8367_s4, 4  ;;  %s60_s1 = int_to_ptr.hbm [resolvable:$true] %s59_s1 }
   0x9   :  { %s47_s12 = sshll.u32 %s7505_s2, 4  ;;  %s7506_s15 = smov 64   ;;  %s48_s12 = int_to_ptr.vmem [resolvable:$true] %s47_s12 }
   0xa   :  { %s7507_s16 = smov 4   ;;  %s7508_s17 = smov [#allocation8]  }
   0xb   :  { %53 = dma.hbm_to_vmem [thread:$0]  %s46_s11, 4096, %s48_s12, [#allocation6], %s7506_s15, %s7506_s15, %s7507_s16  }
   0xc   :  { %s61_s18 = sshll.u32 %s7508_s17, 4  ;;  %s62_s18 = int_to_ptr.vmem [resolvable:$true] %s61_s18 }
   0xd   :  { %64 = dma.hbm_to_vmem [thread:$0]  %s60_s1, 16, %s62_s18, [#allocation9]  }
   0xe   :  { %7495 = dma.done.wait [#allocation4], 1024  }
   0xf   :  { %7496 = vsyncadd [#allocation4], 4294966272 }
  0x10   :  { %7497 = dma.done.wait [#allocation6], 69632  }
  0x11   :  { %7498 = vsyncadd [#allocation6], 4294897664 }
  0x12   :  { %7499 = dma.done.wait [#allocation9], 16  }
  0x13   :  { %7500 = vsyncadd [#allocation9], 4294967280  ;;  %v91_v0 = vld [vmem:[%s8363_s0] sm:$0xff]  ;;  %v92_v1 = vld [vmem:[%s8363_s0 + $0x10] sm:$0xff] }
  0x14   :  { %v93_v2 = vld [vmem:[%s8363_s0 + $0x20] sm:$0xff]  ;;  %v103_v3 = vld [vmem:[%s8363_s0 + $0x8] sm:$0xff]  ;;  %v104_v4 = vld [vmem:[%s8363_s0 + $0x18] sm:$0xff] }
  0x15   :  { %v105_v5 = vld [vmem:[%s8363_s0 + $0x28] sm:$0xff]  ;;  %v4779_v6 = vld [vmem:[#allocation5 + $0xe0] sm:$0xf]  ;;  %v106_v9 = vadd.f32 %v103_v3, %v91_v0  ;;  %v107_v10 = vadd.f32 %v104_v4, %v92_v1 }
  0x16   :  { %v6871_v7 = vld [vmem:[#allocation5 + $0xec] sm:$0xf0]  ;;  %v4907_v8 = vld [vmem:[#allocation5 + $0x1e0] sm:$0xf]  ;;  %v108_v11 = vadd.f32 %v105_v5, %v93_v2 }
  0x17   :  { %v4780_v12 = vor.u32 %v6871_v7, %v4779_v6  ;;  %v6903_v13 = vld [vmem:[#allocation5 + $0x1ec] sm:$0xf0]  ;;  %v5035_v14 = vld [vmem:[#allocation5 + $0x2e0] sm:$0xf]  ;;  %109 = vst [vmem:[#allocation2] sm:$0xff] %v106_v9 }
  0x18   :  { %v6935_v15 = vld [vmem:[#allocation5 + $0x2ec] sm:$0xf0]  ;;  %v4908_v16 = vor.u32 %v6903_v13, %v4907_v8  ;;  %v5163_v18 = vld [vmem:[#allocation5 + $0x3e0] sm:$0xf]  ;;  %110 = vst [vmem:[#allocation2 + $0x8] sm:$0xff] %v107_v10 }
  0x19   :  { %v5036_v17 = vor.u32 %v6935_v15, %v5035_v14  ;;  %v6967_v19 = vld [vmem:[#allocation5 + $0x3ec] sm:$0xf0]  ;;  %v4763_v20 = vld [vmem:[#allocation5 + $0xc0] sm:$0xf]  ;;  %3410 = vmatpush.bf16.msra.mxu0 %v4780_v12  ;;  %111 = vst [vmem:[#allocation2 + $0x10] sm:$0xff] %v108_v11 }
  0x1a   :  { %v5164_v21 = vor.u32 %v6967_v19, %v5163_v18  ;;  %v6867_v22 = vld [vmem:[#allocation5 + $0xcc] sm:$0xf0]  ;;  %v4891_v23 = vld [vmem:[#allocation5 + $0x1c0] sm:$0xf]  ;;  %3423 = vmatpush.bf16.msra.mxu1 %v4908_v16 }
  0x1b   :  { %3436 = vmatpush.bf16.msra.mxu2 %v5036_v17  ;;  %v4764_v24 = vor.u32 %v6867_v22, %v4763_v20  ;;  %v6899_v25 = vld [vmem:[#allocation5 + $0x1cc] sm:$0xf0]  ;;  %v5019_v26 = vld [vmem:[#allocation5 + $0x2c0] sm:$0xf] }
  0x1c   :  { %3449 = vmatpush.bf16.msra.mxu3 %v5164_v21  ;;  %v4892_v27 = vor.u32 %v6899_v25, %v4891_v23  ;;  %v6931_v28 = vld [vmem:[#allocation5 + $0x2cc] sm:$0xf0]  ;;  %v5147_v29 = vld [vmem:[#allocation5 + $0x3c0] sm:$0xf] }
  0x1d   :  { %v5020_v30 = vor.u32 %v6931_v28, %v5019_v26  ;;  %v6963_v31 = vld [vmem:[#allocation5 + $0x3cc] sm:$0xf0]  ;;  %v4747_v32 = vld [vmem:[#allocation5 + $0xa0] sm:$0xf]  ;;  %3411 = vmatpush.bf16.msra.mxu0 %v4764_v24 }
  0x1e   :  { %v6863_v33 = vld [vmem:[#allocation5 + $0xac] sm:$0xf0]  ;;  %v5148_v34 = vor.u32 %v6963_v31, %v5147_v29  ;;  %v4875_v36 = vld [vmem:[#allocation5 + $0x1a0] sm:$0xf]  ;;  %3424 = vmatpush.bf16.msra.mxu1 %v4892_v27 }
  0x1f   :  { %v4748_v35 = vor.u32 %v6863_v33, %v4747_v32  ;;  %v6895_v37 = vld [vmem:[#allocation5 + $0x1ac] sm:$0xf0]  ;;  %v5003_v38 = vld [vmem:[#allocation5 + $0x2a0] sm:$0xf]  ;;  %3437 = vmatpush.bf16.msra.mxu2 %v5020_v30 }
  0x20   :  { %v4876_v39 = vor.u32 %v6895_v37, %v4875_v36  ;;  %v6927_v40 = vld [vmem:[#allocation5 + $0x2ac] sm:$0xf0]  ;;  %v5131_v41 = vld [vmem:[#allocation5 + $0x3a0] sm:$0xf]  ;;  %3450 = vmatpush.bf16.msra.mxu3 %v5148_v34 }
  0x21   :  { %v6959_v42 = vld [vmem:[#allocation5 + $0x3ac] sm:$0xf0]  ;;  %v5004_v43 = vor.u32 %v6927_v40, %v5003_v38  ;;  %v4731_v44 = vld [vmem:[#allocation5 + $0x80] sm:$0xf]  ;;  %3412 = vmatpush.bf16.msra.mxu0 %v4748_v35 }
  0x22   :  { %v6859_v45 = vld [vmem:[#allocation5 + $0x8c] sm:$0xf0]  ;;  %v4859_v46 = vld [vmem:[#allocation5 + $0x180] sm:$0xf]  ;;  %v5132_v47 = vor.u32 %v6959_v42, %v5131_v41  ;;  %3425 = vmatpush.bf16.msra.mxu1 %v4876_v39 }
  0x23   :  { %v6891_v48 = vld [vmem:[#allocation5 + $0x18c] sm:$0xf0]  ;;  %v4987_v49 = vld [vmem:[#allocation5 + $0x280] sm:$0xf]  ;;  %v4732_v51 = vor.u32 %v6859_v45, %v4731_v44  ;;  %3438 = vmatpush.bf16.msra.mxu2 %v5004_v43 }
  0x24   :  { %v6923_v50 = vld [vmem:[#allocation5 + $0x28c] sm:$0xf0]  ;;  %v5115_v52 = vld [vmem:[#allocation5 + $0x380] sm:$0xf]  ;;  %v4860_v56 = vor.u32 %v6891_v48, %v4859_v46  ;;  %3451 = vmatpush.bf16.msra.mxu3 %v5132_v47 }
  0x25   :  { %v6955_v53 = vld [vmem:[#allocation5 + $0x38c] sm:$0xf0]  ;;  %v4988_v57 = vor.u32 %v6923_v50, %v4987_v49  ;;  %v4715_v58 = vld [vmem:[#allocation5 + $0x60] sm:$0xf]  ;;  %3413 = vmatpush.bf16.msra.mxu0 %v4732_v51 }
  0x26   :  { %v115_v54 = vld [vmem:[#allocation2] ss:$3 sm:$0xff]  ;;  %v248_v55 = vld [vmem:[#allocation2 + $0x2] ss:$3 sm:$0xff]  ;;  %v4843_v60 = vld [vmem:[#allocation5 + $0x160] sm:$0xf]  ;;  %v5116_v62 = vor.u32 %v6955_v53, %v5115_v52  ;;  %3426 = vmatpush.bf16.msra.mxu1 %v4860_v56 }
  0x27   :  { %116 = vadd.xlane.f32.xlu0 %v115_v54  ;;  %249 = vadd.xlane.f32.xlu1 %v248_v55  ;;  %v6855_v59 = vld [vmem:[#allocation5 + $0x6c] sm:$0xf0]  ;;  %v4971_v63 = vld [vmem:[#allocation5 + $0x260] sm:$0xf] }
  0x28   :  { %v6887_v61 = vld [vmem:[#allocation5 + $0x16c] sm:$0xf0]  ;;  %v4716_v1 = vor.u32 %v6855_v59, %v4715_v58  ;;  %v5099_v2 = vld [vmem:[#allocation5 + $0x360] sm:$0xf]  ;;  %3439 = vmatpush.bf16.msra.mxu2 %v4988_v57  ;;  %3452 = vmatpush.bf16.msra.mxu3 %v5116_v62 }
  0x29   :  { %v6919_v0 = vld [vmem:[#allocation5 + $0x26c] sm:$0xf0]  ;;  %v4844_v4 = vor.u32 %v6887_v61, %v4843_v60  ;;  %v4699_v6 = vld [vmem:[#allocation5 + $0x40] sm:$0xf] }
  0x2a   :  { %v6951_v3 = vld [vmem:[#allocation5 + $0x36c] sm:$0xf0]  ;;  %v4972_v5 = vor.u32 %v6919_v0, %v4971_v63  ;;  %v4827_v8 = vld [vmem:[#allocation5 + $0x140] sm:$0xf]  ;;  %3414 = vmatpush.bf16.msra.mxu0 %v4716_v1 }
  0x2b   :  { %v6851_v7 = vld [vmem:[#allocation5 + $0x4c] sm:$0xf0]  ;;  %v4955_v10 = vld [vmem:[#allocation5 + $0x240] sm:$0xf]  ;;  %v5100_v13 = vor.u32 %v6951_v3, %v5099_v2  ;;  %3427 = vmatpush.bf16.msra.mxu1 %v4844_v4 }
  0x2c   :  { %v6883_v9 = vld [vmem:[#allocation5 + $0x14c] sm:$0xf0]  ;;  %v4700_v14 = vor.u32 %v6851_v7, %v4699_v6  ;;  %v5083_v15 = vld [vmem:[#allocation5 + $0x340] sm:$0xf]  ;;  %3440 = vmatpush.bf16.msra.mxu2 %v4972_v5 }
  0x2d   :  { %v6915_v11 = vld [vmem:[#allocation5 + $0x24c] sm:$0xf0]  ;;  %v4828_v17 = vor.u32 %v6883_v9, %v4827_v8  ;;  %v4683_v19 = vld [vmem:[#allocation5 + $0x20] sm:$0xf]  ;;  %3453 = vmatpush.bf16.msra.mxu3 %v5100_v13 }
  0x2e   :  { %v173_v12 = vld [vmem:[#allocation2 + $0x1] ss:$3 sm:$0xff]  ;;  %v4956_v18 = vor.u32 %v6915_v11, %v4955_v10  ;;  %v4811_v21 = vld [vmem:[#allocation5 + $0x120] sm:$0xf]  ;;  %3415 = vmatpush.bf16.msra.mxu0 %v4700_v14 }
  0x2f   :  { %v6947_v16 = vld [vmem:[#allocation5 + $0x34c] sm:$0xf0]  ;;  %174 = vadd.xlane.f32.xlu0 %v173_v12  ;;  %v4939_v23 = vld [vmem:[#allocation5 + $0x220] sm:$0xf]  ;;  %3428 = vmatpush.bf16.msra.mxu1 %v4828_v17 }
  0x30   :  { %v6847_v20 = vld [vmem:[#allocation5 + $0x2c] sm:$0xf0]  ;;  %v5084_v25 = vor.u32 %v6947_v16, %v5083_v15  ;;  %v5067_v26 = vld [vmem:[#allocation5 + $0x320] sm:$0xf]  ;;  %3441 = vmatpush.bf16.msra.mxu2 %v4956_v18 }
  0x31   :  { %v6879_v22 = vld [vmem:[#allocation5 + $0x12c] sm:$0xf0]  ;;  %v4684_v27 = vor.u32 %v6847_v20, %v4683_v19  ;;  %v4667_v29 = vld [vmem:[#allocation5] sm:$0xf] }
  0x32   :  { %v6911_v24 = vld [vmem:[#allocation5 + $0x22c] sm:$0xf0]  ;;  %v4812_v31 = vor.u32 %v6879_v22, %v4811_v21  ;;  %v4795_v33 = vld [vmem:[#allocation5 + $0x100] sm:$0xf]  ;;  %3454 = vmatpush.bf16.msra.mxu3 %v5084_v25 }
  0x33   :  { %v6943_v28 = vld [vmem:[#allocation5 + $0x32c] sm:$0xf0]  ;;  %v4940_v32 = vor.u32 %v6911_v24, %v4939_v23  ;;  %v4923_v35 = vld [vmem:[#allocation5 + $0x200] sm:$0xf]  ;;  %3416 = vmatpush.bf16.msra.mxu0 %v4684_v27 }
  0x34   :  { %v6843_v30 = vld [vmem:[#allocation5 + $0xc] sm:$0xf0]  ;;  %v5051_v37 = vld [vmem:[#allocation5 + $0x300] sm:$0xf]  ;;  %v5068_v39 = vor.u32 %v6943_v28, %v5067_v26  ;;  %3429 = vmatpush.bf16.msra.mxu1 %v4812_v31 }
  0x35   :  { %v6875_v34 = vld [vmem:[#allocation5 + $0x10c] sm:$0xf0]  ;;  %v5291_v38 = vld [vmem:[#allocation5 + $0x4e0] sm:$0xf]  ;;  %v4668_v43 = vor.u32 %v6843_v30, %v4667_v29  ;;  %3442 = vmatpush.bf16.msra.mxu2 %v4940_v32 }
  0x36   :  { %v6907_v36 = vld [vmem:[#allocation5 + $0x20c] sm:$0xf0]  ;;  %v5419_v41 = vld [vmem:[#allocation5 + $0x5e0] sm:$0xf]  ;;  %v4796_v47 = vor.u32 %v6875_v34, %v4795_v33  ;;  %3455 = vmatpush.bf16.msra.mxu3 %v5068_v39 }
  0x37   :  { %v6999_v40 = vld [vmem:[#allocation5 + $0x4ec] sm:$0xf0]  ;;  %v5547_v45 = vld [vmem:[#allocation5 + $0x6e0] sm:$0xf]  ;;  %v4924_v48 = vor.u32 %v6907_v36, %v4923_v35  ;;  %3417 = vmatpush.bf16.msra.mxu0 %v4668_v43 }
  0x38   :  { %v7031_v42 = vld [vmem:[#allocation5 + $0x5ec] sm:$0xf0]  ;;  %v5675_v49 = vld [vmem:[#allocation5 + $0x7e0] sm:$0xf]  ;;  %v5292_v51 = vor.u32 %v6999_v40, %v5291_v38  ;;  %3430 = vmatpush.bf16.msra.mxu1 %v4796_v47 }
  0x39   :  { %v6939_v44 = vld [vmem:[#allocation5 + $0x30c] sm:$0xf0]  ;;  %v5420_v52 = vor.u32 %v7031_v42, %v5419_v41  ;;  %v5275_v53 = vld [vmem:[#allocation5 + $0x4c0] sm:$0xf]  ;;  %3443 = vmatpush.bf16.msra.mxu2 %v4924_v48 }
  0x3a   :  { %v7063_v46 = vld [vmem:[#allocation5 + $0x6ec] sm:$0xf0]  ;;  %v5052_v54 = vor.u32 %v6939_v44, %v5051_v37  ;;  %v5403_v57 = vld [vmem:[#allocation5 + $0x5c0] sm:$0xf] }
  0x3b   :  { %v7095_v50 = vld [vmem:[#allocation5 + $0x7ec] sm:$0xf0]  ;;  %v5548_v55 = vor.u32 %v7063_v46, %v5547_v45  ;;  %v5531_v60 = vld [vmem:[#allocation5 + $0x6c0] sm:$0xf]  ;;  %3462 = vmatpush.bf16.msrb.mxu0 %v5292_v51 }
  0x3c   :  { %v6995_v56 = vld [vmem:[#allocation5 + $0x4cc] sm:$0xf0]  ;;  %v5676_v59 = vor.u32 %v7095_v50, %v5675_v49  ;;  %v5659_v62 = vld [vmem:[#allocation5 + $0x7c0] sm:$0xf]  ;;  %3475 = vmatpush.bf16.msrb.mxu1 %v5420_v52  ;;  %3456 = vmatpush.bf16.msra.mxu3 %v5052_v54 }
  0x3d   :  { %v7027_v58 = vld [vmem:[#allocation5 + $0x5cc] sm:$0xf0]  ;;  %v5276_v0 = vor.u32 %v6995_v56, %v5275_v53  ;;  %v5259_v2 = vld [vmem:[#allocation5 + $0x4a0] sm:$0xf]  ;;  %3488 = vmatpush.bf16.msrb.mxu2 %v5548_v55 }
  0x3e   :  { %v7059_v61 = vld [vmem:[#allocation5 + $0x6cc] sm:$0xf0]  ;;  %v5404_v1 = vor.u32 %v7027_v58, %v5403_v57  ;;  %v5387_v5 = vld [vmem:[#allocation5 + $0x5a0] sm:$0xf] }
  0x3f   :  { %v7091_v63 = vld [vmem:[#allocation5 + $0x7cc] sm:$0xf0]  ;;  %v5532_v3 = vor.u32 %v7059_v61, %v5531_v60  ;;  %v5515_v8 = vld [vmem:[#allocation5 + $0x6a0] sm:$0xf]  ;;  %3463 = vmatpush.bf16.msrb.mxu0 %v5276_v0 }
  0x40   :  { %v6991_v4 = vld [vmem:[#allocation5 + $0x4ac] sm:$0xf0]  ;;  %3501 = vmatpush.bf16.msrb.mxu3 %v5676_v59  ;;  %v5660_v7 = vor.u32 %v7091_v63, %v5659_v62  ;;  %v5643_v10 = vld [vmem:[#allocation5 + $0x7a0] sm:$0xf]  ;;  %3476 = vmatpush.bf16.msrb.mxu1 %v5404_v1 }
  0x41   :  { %v7023_v6 = vld [vmem:[#allocation5 + $0x5ac] sm:$0xf0]  ;;  %v5260_v12 = vor.u32 %v6991_v4, %v5259_v2  ;;  %3489 = vmatpush.bf16.msrb.mxu2 %v5532_v3  ;;  %v5243_v16 = vld [vmem:[#allocation5 + $0x480] sm:$0xf] }
  0x42   :  { %v7055_v9 = vld [vmem:[#allocation5 + $0x6ac] sm:$0xf0]  ;;  %v5388_v13 = vor.u32 %v7023_v6, %v5387_v5  ;;  %v5371_v18 = vld [vmem:[#allocation5 + $0x580] sm:$0xf] }
  0x43   :  { %v7087_v11 = vld [vmem:[#allocation5 + $0x7ac] sm:$0xf0]  ;;  %v5516_v14 = vor.u32 %v7055_v9, %v5515_v8  ;;  %3464 = vmatpush.bf16.msrb.mxu0 %v5260_v12  ;;  %v5499_v21 = vld [vmem:[#allocation5 + $0x680] sm:$0xf] }
  0x44   :  { %3502 = vmatpush.bf16.msrb.mxu3 %v5660_v7  ;;  %v5644_v15 = vor.u32 %v7087_v11, %v5643_v10  ;;  %3477 = vmatpush.bf16.msrb.mxu1 %v5388_v13  ;;  %v6987_v17 = vld [vmem:[#allocation5 + $0x48c] sm:$0xf0]  ;;  %v5627_v25 = vld [vmem:[#allocation5 + $0x780] sm:$0xf] }
  0x45   :  { %3490 = vmatpush.bf16.msrb.mxu2 %v5516_v14  ;;  %v5244_v19 = vor.u32 %v6987_v17, %v5243_v16  ;;  %v7019_v20 = vld [vmem:[#allocation5 + $0x58c] sm:$0xf0]  ;;  %v5227_v27 = vld [vmem:[#allocation5 + $0x460] sm:$0xf] }
  0x46   :  { %v7051_v22 = vld [vmem:[#allocation5 + $0x68c] sm:$0xf0]  ;;  %v5372_v23 = vor.u32 %v7019_v20, %v5371_v18  ;;  %v5355_v30 = vld [vmem:[#allocation5 + $0x560] sm:$0xf] }
  0x47   :  { %v5500_v24 = vor.u32 %v7051_v22, %v5499_v21  ;;  %v7083_v26 = vld [vmem:[#allocation5 + $0x78c] sm:$0xf0]  ;;  %3465 = vmatpush.bf16.msrb.mxu0 %v5244_v19  ;;  %v5483_v34 = vld [vmem:[#allocation5 + $0x660] sm:$0xf] }
  0x48   :  { %3503 = vmatpush.bf16.msrb.mxu3 %v5644_v15  ;;  %v5628_v28 = vor.u32 %v7083_v26, %v5627_v25  ;;  %v6983_v29 = vld [vmem:[#allocation5 + $0x46c] sm:$0xf0]  ;;  %3478 = vmatpush.bf16.msrb.mxu1 %v5372_v23  ;;  %v5611_v36 = vld [vmem:[#allocation5 + $0x760] sm:$0xf] }
  0x49   :  { %v7015_v31 = vld [vmem:[#allocation5 + $0x56c] sm:$0xf0]  ;;  %3491 = vmatpush.bf16.msrb.mxu2 %v5500_v24  ;;  %v5228_v32 = vor.u32 %v6983_v29, %v5227_v27  ;;  %v5211_v40 = vld [vmem:[#allocation5 + $0x440] sm:$0xf] }
  0x4a   :  { %v5356_v33 = vor.u32 %v7015_v31, %v5355_v30  ;;  %v7047_v35 = vld [vmem:[#allocation5 + $0x66c] sm:$0xf0]  ;;  %v5339_v42 = vld [vmem:[#allocation5 + $0x540] sm:$0xf] }
  0x4b   :  { %v5484_v37 = vor.u32 %v7047_v35, %v5483_v34  ;;  %v7079_v38 = vld [vmem:[#allocation5 + $0x76c] sm:$0xf0]  ;;  %3466 = vmatpush.bf16.msrb.mxu0 %v5228_v32  ;;  %v5467_v45 = vld [vmem:[#allocation5 + $0x640] sm:$0xf] }
  0x4c   :  { %3504 = vmatpush.bf16.msrb.mxu3 %v5628_v28  ;;  %v5612_v39 = vor.u32 %v7079_v38, %v5611_v36  ;;  %3479 = vmatpush.bf16.msrb.mxu1 %v5356_v33  ;;  %v6979_v41 = vld [vmem:[#allocation5 + $0x44c] sm:$0xf0]  ;;  %v5595_v49 = vld [vmem:[#allocation5 + $0x740] sm:$0xf] }
  0x4d   :  { %3492 = vmatpush.bf16.msrb.mxu2 %v5484_v37  ;;  %v5212_v43 = vor.u32 %v6979_v41, %v5211_v40  ;;  %v7011_v44 = vld [vmem:[#allocation5 + $0x54c] sm:$0xf0]  ;;  %v5195_v51 = vld [vmem:[#allocation5 + $0x420] sm:$0xf] }
  0x4e   :  { %v7043_v46 = vld [vmem:[#allocation5 + $0x64c] sm:$0xf0]  ;;  %v5340_v47 = vor.u32 %v7011_v44, %v5339_v42  ;;  %v5323_v54 = vld [vmem:[#allocation5 + $0x520] sm:$0xf] }
  0x4f   :  { %v5468_v48 = vor.u32 %v7043_v46, %v5467_v45  ;;  %v7075_v50 = vld [vmem:[#allocation5 + $0x74c] sm:$0xf0]  ;;  %3467 = vmatpush.bf16.msrb.mxu0 %v5212_v43  ;;  %v5451_v58 = vld [vmem:[#allocation5 + $0x620] sm:$0xf] }
  0x50   :  { %3505 = vmatpush.bf16.msrb.mxu3 %v5612_v39  ;;  %v5596_v52 = vor.u32 %v7075_v50, %v5595_v49  ;;  %v6975_v53 = vld [vmem:[#allocation5 + $0x42c] sm:$0xf0]  ;;  %3480 = vmatpush.bf16.msrb.mxu1 %v5340_v47  ;;  %v5579_v60 = vld [vmem:[#allocation5 + $0x720] sm:$0xf] }
  0x51   :  { %v7007_v55 = vld [vmem:[#allocation5 + $0x52c] sm:$0xf0]  ;;  %3493 = vmatpush.bf16.msrb.mxu2 %v5468_v48  ;;  %v5196_v56 = vor.u32 %v6975_v53, %v5195_v51  ;;  %v5179_v63 = vld [vmem:[#allocation5 + $0x400] sm:$0xf] }
  0x52   :  { %v5324_v57 = vor.u32 %v7007_v55, %v5323_v54  ;;  %v7039_v59 = vld [vmem:[#allocation5 + $0x62c] sm:$0xf0]  ;;  %v5307_v2 = vld [vmem:[#allocation5 + $0x500] sm:$0xf] }
  0x53   :  { %v5452_v61 = vor.u32 %v7039_v59, %v5451_v58  ;;  %v7071_v62 = vld [vmem:[#allocation5 + $0x72c] sm:$0xf0]  ;;  %v5435_v4 = vld [vmem:[#allocation5 + $0x600] sm:$0xf]  ;;  %3468 = vmatpush.bf16.msrb.mxu0 %v5196_v56 }
  0x54   :  { %3506 = vmatpush.bf16.msrb.mxu3 %v5596_v52  ;;  %v6971_v0 = vld [vmem:[#allocation5 + $0x40c] sm:$0xf0]  ;;  %v5580_v1 = vor.u32 %v7071_v62, %v5579_v60  ;;  %v5563_v7 = vld [vmem:[#allocation5 + $0x700] sm:$0xf]  ;;  %3481 = vmatpush.bf16.msrb.mxu1 %v5324_v57 }
  0x55   :  { %v7003_v3 = vld [vmem:[#allocation5 + $0x50c] sm:$0xf0]  ;;  %v5180_v5 = vor.u32 %v6971_v0, %v5179_v63  ;;  %3494 = vmatpush.bf16.msrb.mxu2 %v5452_v61  ;;  %v7600_v34 = vld [vmem:[#allocation5 + $0x8e0] sm:$0xf] }
  0x56   :  { %v7035_v6 = vld [vmem:[#allocation5 + $0x60c] sm:$0xf0]  ;;  %v5308_v9 = vor.u32 %v7003_v3, %v5307_v2  ;;  %v7604_v36 = vld [vmem:[#allocation5 + $0x9e0] sm:$0xf] }
  0x57   :  { %v7067_v8 = vld [vmem:[#allocation5 + $0x70c] sm:$0xf0]  ;;  %v5436_v10 = vor.u32 %v7035_v6, %v5435_v4  ;;  %3469 = vmatpush.bf16.msrb.mxu0 %v5180_v5  ;;  %v7608_v38 = vld [vmem:[#allocation5 + $0xae0] sm:$0xf] }
  0x58   :  { %3507 = vmatpush.bf16.msrb.mxu3 %v5580_v1  ;;  %v5564_v11 = vor.u32 %v7067_v8, %v5563_v7  ;;  %3482 = vmatpush.bf16.msrb.mxu1 %v5308_v9  ;;  %v7574_v12 = vld [vmem:[#allocation3] ss:$4 sm:$0xff]  ;;  %v7576_v13 = vld [vmem:[#allocation3 + $0x1] ss:$4 sm:$0xff]  ;;  %v7581_v16 = vld [vmem:[#allocation3 + $0x2] ss:$4 sm:$0xff] }
  0x59   :  { %3495 = vmatpush.bf16.msrb.mxu2 %v5436_v10  ;;  %v7578_v14 = vld [vmem:[#allocation3 + $0x20] ss:$4 sm:$0xff]  ;;  %v124_v15 = vperm.slane %v7574_v12, 0  ;;  %v125_v17 = vperm.slane %v7574_v12, 1  ;;  %v126_v18 = vperm.slane %v7574_v12, 2  ;;  %v127_v19 = vperm.slane %v7574_v12, 3 }
  0x5a   :  { %v128_v20 = vperm.slane %v7574_v12, 4  ;;  %v183_v22 = vperm.slane %v7576_v13, 0  ;;  %v258_v26 = vperm.slane %v7581_v16, 0  ;;  %v184_v27 = vperm.slane %v7576_v13, 1  ;;  %v7602_v35 = vld [vmem:[#allocation5 + $0x8ec] sm:$0xf0] }
  0x5b   :  { %v259_v28 = vperm.slane %v7581_v16, 1  ;;  %v185_v29 = vperm.slane %v7576_v13, 2  ;;  %v260_v30 = vperm.slane %v7581_v16, 2  ;;  %v186_v31 = vperm.slane %v7576_v13, 3  ;;  %v7606_v37 = vld [vmem:[#allocation5 + $0x9ec] sm:$0xf0] }
  0x5c   :  { %3508 = vmatpush.bf16.msrb.mxu3 %v5564_v11  ;;  %v261_v32 = vperm.slane %v7581_v16, 3  ;;  %v187_v33 = vperm.slane %v7576_v13, 4  ;;  %v7610_v39 = vld [vmem:[#allocation5 + $0xaec] sm:$0xf0]  ;;  %v262_v40 = vperm.slane %v7581_v16, 4  ;;  %v8399_v21 = vperm.slane %v7581_v16, 6 }
  0x5d   :  { %v7616_v44 = vld [vmem:[#allocation5 + $0xbe0] sm:$0xf]  ;;  %v7618_v45 = vld [vmem:[#allocation5 + $0xbec] sm:$0xf0] }
  0x5e   :  { %v7624_v51 = vld [vmem:[#allocation5 + $0x8c0] sm:$0xf]  ;;  %v7626_v52 = vld [vmem:[#allocation5 + $0x8cc] sm:$0xf0] }
  0x5f   :  { %v7628_v53 = vld [vmem:[#allocation5 + $0x9c0] sm:$0xf]  ;;  %v7630_v54 = vld [vmem:[#allocation5 + $0x9cc] sm:$0xf0] }
  0x60   :  { %v7632_v55 = vld [vmem:[#allocation5 + $0xac0] sm:$0xf]  ;;  %v7634_v56 = vld [vmem:[#allocation5 + $0xacc] sm:$0xf0] }
  0x61   :  { %v7636_v58 = vld [vmem:[#allocation5 + $0xbc0] sm:$0xf]  ;;  %v7638_v59 = vld [vmem:[#allocation5 + $0xbcc] sm:$0xf0] }
  0x62   :  { %v7640_v60 = vld [vmem:[#allocation5 + $0x8a0] sm:$0xf]  ;;  %v7648_v0 = vld [vmem:[#allocation5 + $0x8ac] sm:$0xf0] }
  0x63   :  { %v7650_v1 = vld [vmem:[#allocation5 + $0x9a0] sm:$0xf]  ;;  %v7652_v2 = vld [vmem:[#allocation5 + $0x9ac] sm:$0xf0] }
  0x64   :  { %v7654_v3 = vld [vmem:[#allocation3 + $0x21] ss:$4 sm:$0xff] }
  0x65   :  { %v7662_v7 = vld [vmem:[#allocation5 + $0xaa0] sm:$0xf]  ;;  %v7664_v8 = vld [vmem:[#allocation5 + $0xaac] sm:$0xf0] }
  0x66   :  { %v7673_v49 = vld [vmem:[#allocation5 + $0xba0] sm:$0xf]  ;;  %v7675_v25 = vld [vmem:[#allocation5 + $0xbac] sm:$0xf0] }
  0x67   :  { %v7689_v62 = vld [vmem:[#allocation5 + $0x880] sm:$0xf]  ;;  %v7691_v6 = vld [vmem:[#allocation5 + $0x88c] sm:$0xf0] }
  0x68   :  { %v7716_v46 = vld [vmem:[#allocation5 + $0xa80] sm:$0xf]  ;;  %v7718_v47 = vld [vmem:[#allocation5 + $0xa8c] sm:$0xf0] }
  0x69   :  { %8384 = vst [vmem:[#allocation13_spill] sm:$0xff] %v7716_v46  ;;  %v7744_v63 = vld [vmem:[#allocation5 + $0xb80] sm:$0xf]  ;;  %v7746_v23 = vld [vmem:[#allocation5 + $0xb8c] sm:$0xf0] }
  0x6a   :  { %8385 = vst [vmem:[#allocation14_spill] sm:$0xff] %v7744_v63 }
  0x6b   :  { %8386 = vst [vmem:[#allocation15_spill] sm:$0xff] %v7746_v23 }
  0x9a   :  { %v117_v50 = vpop.xlane.xlu0 %116  ;;  %v250_v57 = vpop.xlane.xlu1 %249 }
  0x9b   :  { %v7656_v4 = vmul.f32 0.00390625, %v117_v50  ;;  %v7667_v10 = vmul.f32 0.00390625, %v250_v57  ;;  %v7699_v57 = vld [vmem:[#allocation5 + $0x980] sm:$0xf]  ;;  %v7701_v50 = vld [vmem:[#allocation5 + $0x98c] sm:$0xf0] }
  0x9d   :  { %v156_v9 = vmul.f32 %v124_v15, %v7656_v4  ;;  %v290_v48 = vmul.f32 %v258_v26, %v7667_v10  ;;  %v157_v15 = vmul.f32 %v125_v17, %v7656_v4  ;;  %v291_v11 = vmul.f32 %v259_v28, %v7667_v10 }
  0x9e   :  { %v292_v26 = vmul.f32 %v260_v30, %v7667_v10  ;;  %v159_v17 = vmul.f32 %v127_v19, %v7656_v4  ;;  %v293_v28 = vmul.f32 %v261_v32, %v7667_v10  ;;  %v160_v32 = vmul.f32 %v128_v20, %v7656_v4 }
  0x9f   :  { %v8391_v20 = vperm.slane %v7576_v13, 5 }
  0xa2   :  { %v175_v5 = vpop.xlane.xlu0 %174 }
  0xa3   :  { %v7705_v24 = vmul.f32 0.00390625, %v175_v5  ;;  %v158_v5 = vmul.f32 %v126_v18, %v7656_v4 }
  0xa5   :  { %v215_v61 = vmul.f32 %v183_v22, %v7705_v24  ;;  %v216_v18 = vmul.f32 %v184_v27, %v7705_v24  ;;  %v217_v30 = vmul.f32 %v185_v29, %v7705_v24  ;;  %v218_v19 = vmul.f32 %v186_v31, %v7705_v24 }
  0xa6   :  { %v219_v29 = vmul.f32 %v187_v33, %v7705_v24  ;;  %v294_v22 = vmul.f32 %v262_v40, %v7667_v10  ;;  %v8387_v27 = vperm.slane %v7574_v12, 5  ;;  %v8392_v40 = vperm.slane %v7581_v16, 5 }
  0xa7   :  { %v231_v43 = vadd.f32 %v215_v61, %v156_v9  ;;  %v232_v42 = vadd.f32 %v216_v18, %v157_v15  ;;  %v233_v31 = vadd.f32 %v217_v30, %v158_v5  ;;  %v234_v41 = vadd.f32 %v218_v19, %v159_v17 }
  0xa8   :  { %v161_v46 = vmul.f32 %v8387_v27, %v7656_v4  ;;  %v235_v5 = vadd.f32 %v219_v29, %v160_v32  ;;  %v220_v17 = vmul.f32 %v8391_v20, %v7705_v24  ;;  %v295_v18 = vmul.f32 %v8392_v40, %v7667_v10  ;;  %v7813_v20 = vld [vmem:[#allocation5 + $0x86c] sm:$0xf0] }
  0xa9   :  { %v7768_v33 = vadd.f32 %v290_v48, %v231_v43  ;;  %v7770_v61 = vadd.f32 %v291_v11, %v232_v42  ;;  %v7772_v9 = vadd.f32 %v292_v26, %v233_v31  ;;  %v7774_v15 = vadd.f32 %v293_v28, %v234_v41  ;;  %v7811_v31 = vld [vmem:[#allocation5 + $0x860] sm:$0xf] }
  0xaa   :  { %v8393_v30 = vperm.slane %v7576_v13, 6  ;;  %v8397_v19 = vperm.slane %v7574_v12, 6  ;;  %v8398_v27 = vperm.slane %v7576_v13, 7  ;;  %v7824_v13 = vld [vmem:[#allocation5 + $0x96c] sm:$0xf0] }
  0xab   :  { %8388 = vst [vmem:[#allocation16_spill] sm:$0xff] %v7768_v33  ;;  %v7787_v42 = vpack.c.bf16 %v7768_v33, %v7768_v33  ;;  %v4562_v41 = vmul.f32 %v7768_v33, %v7768_v33  ;;  %v7793_v48 = vpack.c.bf16 %v7770_v61, %v7770_v61  ;;  %v4563_v11 = vmul.f32 %v7770_v61, %v7770_v61 }
  0xac   :  { %8389 = vst [vmem:[#allocation17_spill] sm:$0xff] %v7770_v61  ;;  %v221_v43 = vmul.f32 %v8393_v30, %v7705_v24  ;;  %v7799_v26 = vpack.c.bf16 %v7772_v9, %v7772_v9  ;;  %v7803_v28 = vpack.c.bf16 %v7774_v15, %v7774_v15  ;;  %v162_v32 = vmul.f32 %v8397_v19, %v7656_v4  ;;  %v7822_v61 = vld [vmem:[#allocation5 + $0x960] sm:$0xf] }
  0xad   :  { %8390 = vst [vmem:[#allocation18_spill] sm:$0xff] %v7772_v9  ;;  %v222_v29 = vmul.f32 %v8398_v27, %v7705_v24  ;;  %3418 = vmatmul.bf16.vlgmr.msra.gmra.mxu0 %v7787_v42  ;;  %3431 = vmatmul.bf16.vlgmr.msra.gmra.mxu1 %v7793_v48  ;;  %v4578_v40 = vadd.f32 %v4563_v11, %v4562_v41  ;;  %v7826_v27 = vld [vmem:[#allocation5 + $0xa60] sm:$0xf]  ;;  %v8400_v41 = vperm.slane %v7574_v12, 7 }
  0xae   :  { %8394 = vst [vmem:[#allocation19_spill] sm:$0xff] %v7787_v42  ;;  %v4564_v30 = vmul.f32 %v7772_v9, %v7772_v9  ;;  %v296_v19 = vmul.f32 %v8399_v21, %v7667_v10  ;;  %3444 = vmatmul.bf16.vlgmr.msra.gmra.mxu2 %v7799_v26  ;;  %3457 = vmatmul.bf16.vlgmr.msra.gmra.mxu3 %v7803_v28  ;;  %v7833_v9 = vld [vmem:[#allocation5 + $0xa6c] sm:$0xf0]  ;;  %v7835_v42 = vld [vmem:[#allocation5 + $0xb60] sm:$0xf] }
  0xaf   :  { %8395 = vst [vmem:[#allocation20_spill] sm:$0xff] %v7793_v48  ;;  %v236_v33 = vadd.f32 %v220_v17, %v161_v46  ;;  %v237_v48 = vadd.f32 %v221_v43, %v162_v32  ;;  %v163_v11 = vmul.f32 %v8400_v41, %v7656_v4  ;;  %v7837_v21 = vld [vmem:[#allocation5 + $0xb6c] sm:$0xf0]  ;;  %v4565_v23 = vmul.f32 %v7774_v15, %v7774_v15  ;;  %v7849_v17 = vld [vmem:[#allocation5 + $0x840] sm:$0xf] }
  0xb0   :  { %8396 = vst [vmem:[#allocation21_spill] sm:$0xff] %v7799_v26  ;;  %v4579_v63 = vadd.f32 %v4578_v40, %v4564_v30  ;;  %v8401_v26 = vor.u32 %v7602_v35, %v7600_v34  ;;  %v8402_v46 = vor.u32 %v7606_v37, %v7604_v36  ;;  %v7847_v12 = vadd.f32 %v294_v22, %v235_v5  ;;  %v7851_v43 = vld [vmem:[#allocation5 + $0x84c] sm:$0xf0] }
  0xb1   :  { %v193_v32 = vperm.slane %v7654_v3, 2  ;;  %v8403_v40 = vor.u32 %v7610_v39, %v7608_v38  ;;  %v8404_v34 = vor.u32 %v7618_v45, %v7616_v44  ;;  %v238_v35 = vadd.f32 %v222_v29, %v163_v11  ;;  %v7876_v45 = vld [vmem:[#allocation5 + $0x94c] sm:$0xf0] }
  0xb2   :  { %3514 = vmatpush.bf16.msra.mxu0 %v8401_v26  ;;  %3527 = vmatpush.bf16.msra.mxu1 %v8402_v46  ;;  %v8405_v36 = vperm.slane %v7581_v16, 7  ;;  %v4580_v26 = vadd.f32 %v4579_v63, %v4565_v23  ;;  %v7874_v16 = vld [vmem:[#allocation5 + $0x940] sm:$0xf]  ;;  %v8406_v29 = vperm.slane %v7578_v14, 0  ;;  %v8407_v63 = vperm.slane %v7578_v14, 1 }
  0xb3   :  { %3540 = vmatpush.bf16.msra.mxu2 %v8403_v40  ;;  %3553 = vmatpush.bf16.msra.mxu3 %v8404_v34  ;;  %v8408_v11 = vperm.slane %v7578_v14, 2  ;;  %v8409_v40 = vor.u32 %v7626_v52, %v7624_v51  ;;  %v8410_v34 = vor.u32 %v7630_v54, %v7628_v53  ;;  %v7904_v39 = vld [vmem:[#allocation3 + $0x22] ss:$4 sm:$0xff]  ;;  %v8414_v51 = vor.u32 %v7638_v59, %v7636_v58 }
  0xb4   :  { %v297_v37 = vmul.f32 %v8405_v36, %v7667_v10  ;;  %v164_v23 = vmul.f32 %v8406_v29, %v7656_v4  ;;  %v7884_v41 = vmul.f32 %v8407_v63, %v7656_v4  ;;  %v4566_v36 = vmul.f32 %v7847_v12, %v7847_v12  ;;  %v7927_v58 = vld [vmem:[#allocation5 + $0xa40] sm:$0xf]  ;;  %v7929_v59 = vld [vmem:[#allocation5 + $0xa4c] sm:$0xf0] }
  0xb5   :  { %v7889_v46 = vmul.f32 %v8408_v11, %v7656_v4  ;;  %v7899_v29 = vadd.f32 %v295_v18, %v236_v33  ;;  %v7901_v63 = vadd.f32 %v296_v19, %v237_v48  ;;  %v8413_v11 = vor.u32 %v7634_v56, %v7632_v55  ;;  %v7931_v19 = vld [vmem:[#allocation5 + $0xb40] sm:$0xf]  ;;  %v7996_v22 = vld [vmem:[#allocation5 + $0xa2c] sm:$0xf0] }
  0xb6   :  { %3515 = vmatpush.bf16.msra.mxu0 %v8409_v40  ;;  %3528 = vmatpush.bf16.msra.mxu1 %v8410_v34  ;;  %v7912_v52 = vadd.f32 %v297_v37, %v238_v35  ;;  %v8415_v53 = vperm.slane %v7578_v14, 3  ;;  %v8416_v33 = vperm.slane %v7578_v14, 4  ;;  %v196_v48 = vperm.slane %v7654_v3, 5 }
  0xb7   :  { %8411 = vst [vmem:[#allocation22_spill] sm:$0xff] %v7899_v29  ;;  %3541 = vmatpush.bf16.msra.mxu2 %v8413_v11  ;;  %3554 = vmatpush.bf16.msra.mxu3 %v8414_v51  ;;  %v4581_v55 = vadd.f32 %v4580_v26, %v4566_v36  ;;  %v8417_v35 = vperm.slane %v7578_v14, 5  ;;  %v8418_v40 = vperm.slane %v7578_v14, 6  ;;  %v7945_v26 = vpack.c.bf16 %v7847_v12, %v7847_v12  ;;  %v7947_v36 = vld [vmem:[#allocation5 + $0xb4c] sm:$0xf0] }
  0xb8   :  { %8412 = vst [vmem:[#allocation23_spill] sm:$0xff] %v7901_v63  ;;  %v7917_v54 = vmul.f32 %v8415_v53, %v7656_v4  ;;  %v7922_v18 = vmul.f32 %v8416_v33, %v7656_v4  ;;  %v7949_v11 = vld [vmem:[#allocation5 + $0x820] sm:$0xf]  ;;  %v8419_v51 = vperm.slane %v7578_v14, 7  ;;  %v8420_v33 = vperm.slane %v7654_v3, 0 }
  0xb9   :  { %v7936_v37 = vmul.f32 %v8417_v35, %v7656_v4  ;;  %v7941_v34 = vmul.f32 %v8418_v40, %v7656_v4  ;;  %v266_v40 = vperm.slane %v7904_v39, 0  ;;  %v8421_v56 = vor.u32 %v7648_v0, %v7640_v60  ;;  %v7980_v60 = vld [vmem:[#allocation5 + $0x92c] sm:$0xf0] }
  0xba   :  { %v7954_v53 = vmul.f32 %v8419_v51, %v7656_v4  ;;  %v223_v35 = vmul.f32 %v8420_v33, %v7705_v24  ;;  %v8422_v38 = vor.u32 %v7652_v2, %v7650_v1  ;;  %v7968_v30 = vpack.c.bf16 %v7899_v29, %v7899_v29  ;;  %v7976_v51 = vld [vmem:[#allocation5 + $0x82c] sm:$0xf0]  ;;  %v7978_v33 = vld [vmem:[#allocation5 + $0x920] sm:$0xf] }
  0xbb   :  { %3516 = vmatpush.bf16.msra.mxu0 %v8421_v56  ;;  %v4567_v14 = vmul.f32 %v7899_v29, %v7899_v29  ;;  %v7974_v4 = vpack.c.bf16 %v7901_v63, %v7901_v63  ;;  %v8423_v0 = vor.u32 %v7664_v8, %v7662_v7  ;;  %v8424_v1 = vor.u32 %v7675_v25, %v7673_v49  ;;  %v7994_v56 = vld [vmem:[#allocation5 + $0xa20] sm:$0xf] }
  0xbc   :  { %3529 = vmatpush.bf16.msra.mxu1 %v8422_v38  ;;  %v4568_v2 = vmul.f32 %v7901_v63, %v7901_v63  ;;  %v7992_v38 = vpack.c.bf16 %v7912_v52, %v7912_v52  ;;  %v8425_v44 = vperm.slane %v7654_v3, 1  ;;  %v267_v8 = vperm.slane %v7904_v39, 1 }
  0xbd   :  { %3542 = vmatpush.bf16.msra.mxu2 %v8423_v0  ;;  %3555 = vmatpush.bf16.msra.mxu3 %v8424_v1  ;;  %v4582_v0 = vadd.f32 %v4581_v55, %v4567_v14  ;;  %v4569_v25 = vmul.f32 %v7912_v52, %v7912_v52  ;;  %v5980_v49 = vor.u32 %v7929_v59, %v7927_v58  ;;  %v268_v29 = vperm.slane %v7904_v39, 2 }
  0xbe   :  { %v224_v7 = vmul.f32 %v8425_v44, %v7705_v24  ;;  %v6108_v1 = vor.u32 %v7947_v36, %v7931_v19  ;;  %v225_v5 = vmul.f32 %v193_v32, %v7705_v24  ;;  %v239_v63 = vadd.f32 %v223_v35, %v164_v23  ;;  %v8428_v19 = vld [vmem:[#allocation13_spill] sm:$0xff]  ;;  %3470 = vmatmul.bf16.vlgmr.msrb.gmra.mxu0 %v7945_v26 }
  0xbf   :  { %v298_v44 = vmul.f32 %v266_v40, %v7667_v10  ;;  %v8426_v55 = vor.u32 %v7691_v6, %v7689_v62  ;;  %v8427_v14 = vor.u32 %v7701_v50, %v7699_v57  ;;  %v5708_v58 = vor.u32 %v7976_v51, %v7949_v11  ;;  %v8430_v62 = vld [vmem:[#allocation15_spill] sm:$0xff]  ;;  %v8431_v6 = vld [vmem:[#allocation14_spill] sm:$0xff]  ;;  %v8032_v50 = vld [vmem:[#allocation5 + $0xb20] sm:$0xf]  ;;  %3483 = vmatmul.bf16.vlgmr.msrb.gmra.mxu1 %v7968_v30 }
  0xc0   :  { %v197_v23 = vperm.slane %v7654_v3, 6  ;;  %v8429_v36 = vor.u32 %v7718_v47, %v8428_v19  ;;  %v8432_v35 = vor.u32 %v8430_v62, %v8431_v6  ;;  %v8034_v57 = vld [vmem:[#allocation5 + $0xb2c] sm:$0xf0]  ;;  %v8433_v40 = vperm.slane %v7654_v3, 3  ;;  %3496 = vmatmul.bf16.vlgmr.msrb.gmra.mxu2 %v7974_v4  ;;  %3509 = vmatmul.bf16.vlgmr.msrb.gmra.mxu3 %v7992_v38 }
  0xc1   :  { %3517 = vmatpush.bf16.msra.mxu0 %v8426_v55  ;;  %3530 = vmatpush.bf16.msra.mxu1 %v8427_v14  ;;  %v240_v14 = vadd.f32 %v224_v7, %v7884_v41  ;;  %v269_v32 = vperm.slane %v7904_v39, 3  ;;  %v299_v59 = vmul.f32 %v267_v8, %v7667_v10  ;;  %v4583_v47 = vadd.f32 %v4582_v0, %v4568_v2 }
  0xc2   :  { %3543 = vmatpush.bf16.msra.mxu2 %v8429_v36  ;;  %3556 = vmatpush.bf16.msra.mxu3 %v8432_v35  ;;  %v226_v55 = vmul.f32 %v8433_v40, %v7705_v24  ;;  %v198_v19 = vperm.slane %v7654_v3, 7  ;;  %v8434_v36 = vperm.slane %v7654_v3, 4  ;;  %v228_v6 = vmul.f32 %v196_v48, %v7705_v24 }
  0xc3   :  { %v241_v41 = vadd.f32 %v225_v5, %v7889_v46  ;;  %v270_v7 = vperm.slane %v7904_v39, 4  ;;  %v300_v8 = vmul.f32 %v268_v29, %v7667_v10  ;;  %v8054_v35 = vadd.f32 %v298_v44, %v239_v63  ;;  %v8077_v63 = vld [vmem:[#allocation5 + $0x800] sm:$0xf] }
  0xc4   :  { %v227_v62 = vmul.f32 %v8434_v36, %v7705_v24  ;;  %v8435_v2 = vor.u32 %v7813_v20, %v7811_v31  ;;  %v8436_v3 = vor.u32 %v7824_v13, %v7822_v61  ;;  %v6092_v48 = vor.u32 %v8034_v57, %v8032_v50  ;;  %v5819_v57 = vld [vmem:[#allocation5 + $0x900] sm:$0xf] }
  0xc5   :  { %v229_v0 = vmul.f32 %v197_v23, %v7705_v24  ;;  %v271_v5 = vperm.slane %v7904_v39, 5  ;;  %v272_v46 = vperm.slane %v7904_v39, 6  ;;  %v8437_v29 = vor.u32 %v7833_v9, %v7826_v27  ;;  %v7099_v27 = vld [vmem:[#allocation5 + $0x80c] sm:$0xf0]  ;;  %v6315_v36 = vld [vmem:[#allocation5 + $0xce0] sm:$0xf] }
  0xc6   :  { %3518 = vmatpush.bf16.msra.mxu0 %v8435_v2  ;;  %3531 = vmatpush.bf16.msra.mxu1 %v8436_v3  ;;  %v8438_v31 = vor.u32 %v7837_v21, %v7835_v42  ;;  %v242_v61 = vadd.f32 %v226_v55, %v7917_v54  ;;  %v301_v20 = vmul.f32 %v269_v32, %v7667_v10  ;;  %v273_v9 = vperm.slane %v7904_v39, 7  ;;  %v7131_v42 = vld [vmem:[#allocation5 + $0x90c] sm:$0xf0]  ;;  %v5947_v39 = vld [vmem:[#allocation5 + $0xa00] sm:$0xf] }
  0xc7   :  { %3544 = vmatpush.bf16.msra.mxu2 %v8437_v29  ;;  %v8075_v13 = vadd.f32 %v299_v59, %v240_v14  ;;  %v230_v44 = vmul.f32 %v198_v19, %v7705_v24  ;;  %v243_v23 = vadd.f32 %v227_v62, %v7922_v18  ;;  %v244_v50 = vadd.f32 %v228_v6, %v7936_v37  ;;  %v7163_v14 = vld [vmem:[#allocation5 + $0xa0c] sm:$0xf0]  ;;  %v6075_v19 = vld [vmem:[#allocation5 + $0xb00] sm:$0xf] }
  0xc8   :  { %3557 = vmatpush.bf16.msra.mxu3 %v8438_v31  ;;  %v302_v21 = vmul.f32 %v270_v7, %v7667_v10  ;;  %v8084_v54 = vadd.f32 %v300_v8, %v241_v41  ;;  %v4570_v59 = vmul.f32 %v8054_v35, %v8054_v35  ;;  %v4584_v32 = vadd.f32 %v4583_v47, %v4569_v25  ;;  %v7195_v25 = vld [vmem:[#allocation5 + $0xb0c] sm:$0xf0]  ;;  %v6443_v62 = vld [vmem:[#allocation5 + $0xde0] sm:$0xf] }
  0xc9   :  { %v8439_v24 = vor.u32 %v7851_v43, %v7849_v17  ;;  %v8440_v18 = vor.u32 %v7876_v45, %v7874_v16  ;;  %v245_v37 = vadd.f32 %v229_v0, %v7941_v34  ;;  %v303_v40 = vmul.f32 %v271_v5, %v7667_v10  ;;  %v7255_v34 = vld [vmem:[#allocation5 + $0xcec] sm:$0xf0]  ;;  %v6699_v5 = vld [vmem:[#allocation5 + $0xfe0] sm:$0xf] }
  0xca   :  { %v304_v55 = vmul.f32 %v272_v46, %v7667_v10  ;;  %v8097_v47 = vadd.f32 %v301_v20, %v242_v61  ;;  %v4571_v17 = vmul.f32 %v8075_v13, %v8075_v13  ;;  %v4585_v43 = vadd.f32 %v4584_v32, %v4570_v59  ;;  %v7287_v41 = vld [vmem:[#allocation5 + $0xdec] sm:$0xf0]  ;;  %v6299_v20 = vld [vmem:[#allocation5 + $0xcc0] sm:$0xf] }
  0xcb   :  { %3519 = vmatpush.bf16.msra.mxu0 %v8439_v24  ;;  %3532 = vmatpush.bf16.msra.mxu1 %v8440_v18  ;;  %v5692_v16 = vor.u32 %v7099_v27, %v8077_v63  ;;  %v5820_v45 = vor.u32 %v7131_v42, %v5819_v57  ;;  %v246_v6 = vadd.f32 %v230_v44, %v7954_v53  ;;  %v7351_v46 = vld [vmem:[#allocation5 + $0xfec] sm:$0xf0]  ;;  %v6683_v59 = vld [vmem:[#allocation5 + $0xfc0] sm:$0xf] }
  0xcc   :  { %3545 = vmatpush.bf16.msra.mxu2 %v5980_v49  ;;  %3558 = vmatpush.bf16.msra.mxu3 %v6108_v1  ;;  %v6571_v49 = vld [vmem:[#allocation5 + $0xee0] sm:$0xf]  ;;  %v7319_v1 = vld [vmem:[#allocation5 + $0xeec] sm:$0xf0]  ;;  %v305_v7 = vmul.f32 %v273_v9, %v7667_v10  ;;  %v8104_v8 = vadd.f32 %v302_v21, %v243_v23  ;;  %v4572_v2 = vmul.f32 %v8084_v54, %v8084_v54 }
  0xcd   :  { %v4586_v3 = vadd.f32 %v4585_v43, %v4571_v17  ;;  %v8441_v0 = vor.u32 %v7980_v60, %v7978_v33  ;;  %v5948_v53 = vor.u32 %v7163_v14, %v5947_v39  ;;  %v8114_v29 = vadd.f32 %v303_v40, %v244_v50  ;;  %v7251_v63 = vld [vmem:[#allocation5 + $0xccc] sm:$0xf0]  ;;  %v6283_v14 = vld [vmem:[#allocation5 + $0xca0] sm:$0xf] }
  0xce   :  { %v8116_v10 = vadd.f32 %v304_v55, %v245_v37  ;;  %v8442_v31 = vor.u32 %v7996_v22, %v7994_v56  ;;  %v6076_v61 = vor.u32 %v7195_v25, %v6075_v19  ;;  %v4573_v11 = vmul.f32 %v8097_v47, %v8097_v47  ;;  %v6427_v22 = vld [vmem:[#allocation5 + $0xdc0] sm:$0xf]  ;;  %v7283_v56 = vld [vmem:[#allocation5 + $0xdcc] sm:$0xf0] }
  0xcf   :  { %3520 = vmatpush.bf16.msra.mxu0 %v5708_v58  ;;  %3533 = vmatpush.bf16.msra.mxu1 %v8441_v0  ;;  %v4587_v51 = vadd.f32 %v4586_v3, %v4572_v2  ;;  %v6316_v58 = vor.u32 %v7255_v34, %v6315_v36  ;;  %v6444_v33 = vor.u32 %v7287_v41, %v6443_v62  ;;  %v7315_v21 = vld [vmem:[#allocation5 + $0xecc] sm:$0xf0]  ;;  %v6539_v36 = vld [vmem:[#allocation5 + $0xea0] sm:$0xf] }
  0xd0   :  { %3546 = vmatpush.bf16.msra.mxu2 %v8442_v31  ;;  %3559 = vmatpush.bf16.msra.mxu3 %v6092_v48  ;;  %v6572_v60 = vor.u32 %v7319_v1, %v6571_v49  ;;  %v6700_v44 = vor.u32 %v7351_v46, %v6699_v5  ;;  %v8123_v23 = vadd.f32 %v305_v7, %v246_v6  ;;  %v6555_v48 = vld [vmem:[#allocation5 + $0xec0] sm:$0xf]  ;;  %v7347_v32 = vld [vmem:[#allocation5 + $0xfcc] sm:$0xf0] }
  0xd1   :  { %v4574_v50 = vmul.f32 %v8104_v8, %v8104_v8  ;;  %v4588_v9 = vadd.f32 %v4587_v51, %v4573_v11  ;;  %v4575_v27 = vmul.f32 %v8114_v29, %v8114_v29  ;;  %v4576_v57 = vmul.f32 %v8116_v10, %v8116_v10  ;;  %v7247_v19 = vld [vmem:[#allocation5 + $0xcac] sm:$0xf0]  ;;  %v6667_v62 = vld [vmem:[#allocation5 + $0xfa0] sm:$0xf] }
  0xd2   :  { %v8133_v42 = vpack.c.bf16 %v8054_v35, %v8054_v35  ;;  %v8137_v18 = vpack.c.bf16 %v8075_v13, %v8075_v13  ;;  %v8141_v39 = vpack.c.bf16 %v8084_v54, %v8084_v54  ;;  %v8145_v37 = vpack.c.bf16 %v8097_v47, %v8097_v47  ;;  %v7311_v34 = vld [vmem:[#allocation5 + $0xeac] sm:$0xf0]  ;;  %v6267_v2 = vld [vmem:[#allocation5 + $0xc80] sm:$0xf] }
  0xd3   :  { %3521 = vmatpush.bf16.msra.mxu0 %v5692_v16  ;;  %3534 = vmatpush.bf16.msra.mxu1 %v5820_v45  ;;  %v4589_v24 = vadd.f32 %v4588_v9, %v4574_v50  ;;  %v6300_v40 = vor.u32 %v7251_v63, %v6299_v20  ;;  %v6428_v55 = vor.u32 %v7283_v56, %v6427_v22  ;;  %v6411_v16 = vld [vmem:[#allocation5 + $0xda0] sm:$0xf]  ;;  %v7279_v45 = vld [vmem:[#allocation5 + $0xdac] sm:$0xf0] }
  0xd4   :  { %3547 = vmatpush.bf16.msra.mxu2 %v5948_v53  ;;  %3560 = vmatpush.bf16.msra.mxu3 %v6076_v61  ;;  %v6556_v17 = vor.u32 %v7315_v21, %v6555_v48  ;;  %v6684_v43 = vor.u32 %v7347_v32, %v6683_v59  ;;  %v7343_v6 = vld [vmem:[#allocation5 + $0xfac] sm:$0xf0]  ;;  %v4577_v41 = vmul.f32 %v8123_v23, %v8123_v23  ;;  %v6395_v46 = vld [vmem:[#allocation5 + $0xd80] sm:$0xf] }
  0xd5   :  { %v4590_v25 = vadd.f32 %v4589_v24, %v4575_v27  ;;  %v6284_v1 = vor.u32 %v7247_v19, %v6283_v14  ;;  %v6412_v7 = vor.u32 %v7279_v45, %v6411_v16  ;;  %v7243_v3 = vld [vmem:[#allocation5 + $0xc8c] sm:$0xf0]  ;;  %v6540_v53 = vor.u32 %v7311_v34, %v6539_v36  ;;  %v6523_v61 = vld [vmem:[#allocation5 + $0xe80] sm:$0xf] }
  0xd6   :  { %3522 = vmatmul.bf16.vlgmr.msra.gmra.mxu0 %v8133_v42  ;;  %3535 = vmatmul.bf16.vlgmr.msra.gmra.mxu1 %v8137_v18  ;;  %v6668_v5 = vor.u32 %v7343_v6, %v6667_v62  ;;  %v7275_v31 = vld [vmem:[#allocation5 + $0xd8c] sm:$0xf0]  ;;  %v6651_v51 = vld [vmem:[#allocation5 + $0xf80] sm:$0xf] }
  0xd7   :  { %3566 = vmatpush.bf16.msrb.mxu0 %v6316_v58  ;;  %3579 = vmatpush.bf16.msrb.mxu1 %v6444_v33  ;;  %v4591_v49 = vadd.f32 %v4590_v25, %v4576_v57  ;;  %v7307_v11 = vld [vmem:[#allocation5 + $0xe8c] sm:$0xf0]  ;;  %v6268_v33 = vor.u32 %v7243_v3, %v6267_v2  ;;  %v6251_v20 = vld [vmem:[#allocation5 + $0xc60] sm:$0xf] }
  0xd8   :  { %3592 = vmatpush.bf16.msrb.mxu2 %v6572_v60  ;;  %3605 = vmatpush.bf16.msrb.mxu3 %v6700_v44  ;;  %v7339_v58 = vld [vmem:[#allocation5 + $0xf8c] sm:$0xf0]  ;;  %v6396_v60 = vor.u32 %v7275_v31, %v6395_v46  ;;  %v6524_v44 = vor.u32 %v7307_v11, %v6523_v61  ;;  %v6379_v9 = vld [vmem:[#allocation5 + $0xd60] sm:$0xf] }
  0xd9   :  { %3548 = vmatmul.bf16.vlgmr.msra.gmra.mxu2 %v8141_v39  ;;  %3561 = vmatmul.bf16.vlgmr.msra.gmra.mxu3 %v8145_v37  ;;  %v4592_v0 = vadd.f32 %v4591_v49, %v4577_v41  ;;  %v7239_v63 = vld [vmem:[#allocation5 + $0xc6c] sm:$0xf0]  ;;  %v6652_v50 = vor.u32 %v7339_v58, %v6651_v51  ;;  %v6507_v56 = vld [vmem:[#allocation5 + $0xe60] sm:$0xf] }
  0xda   :  { %v7271_v22 = vld [vmem:[#allocation5 + $0xd6c] sm:$0xf0]  ;;  %v6635_v27 = vld [vmem:[#allocation5 + $0xf60] sm:$0xf]  ;;  %v6252_v21 = vor.u32 %v7239_v63, %v6251_v20 }
  0xdb   :  { %3567 = vmatpush.bf16.msrb.mxu0 %v6300_v40  ;;  %3580 = vmatpush.bf16.msrb.mxu1 %v6428_v55  ;;  %v7303_v48 = vld [vmem:[#allocation5 + $0xe6c] sm:$0xf0]  ;;  %v6380_v59 = vor.u32 %v7271_v22, %v6379_v9  ;;  %v6235_v32 = vld [vmem:[#allocation5 + $0xc40] sm:$0xf]  ;;  %v6901_v9 = vld [vmem:[#allocation5 + $0x1e4] sm:$0xf] }
  0xdc   :  { %3593 = vmatpush.bf16.msrb.mxu2 %v6556_v17  ;;  %3606 = vmatpush.bf16.msrb.mxu3 %v6684_v43  ;;  %v7335_v57 = vld [vmem:[#allocation5 + $0xf6c] sm:$0xf0]  ;;  %v6508_v40 = vor.u32 %v7303_v48, %v6507_v56  ;;  %v6363_v14 = vld [vmem:[#allocation5 + $0xd40] sm:$0xf]  ;;  %v4909_v22 = vld [vmem:[#allocation5 + $0x1f0] sm:$0xf0] }
  0xdd   :  { %4593 = vadd.xlane.f32.xlu1 %v4592_v0  ;;  %v7235_v24 = vld [vmem:[#allocation5 + $0xc4c] sm:$0xf0]  ;;  %v6636_v55 = vor.u32 %v7335_v57, %v6635_v27  ;;  %v6491_v25 = vld [vmem:[#allocation5 + $0xe40] sm:$0xf]  ;;  %v6933_v56 = vld [vmem:[#allocation5 + $0x2e4] sm:$0xf] }
  0xde   :  { %v7267_v19 = vld [vmem:[#allocation5 + $0xd4c] sm:$0xf0]  ;;  %v6619_v43 = vld [vmem:[#allocation5 + $0xf40] sm:$0xf]  ;;  %v6236_v45 = vor.u32 %v7235_v24, %v6235_v32  ;;  %v5037_v57 = vld [vmem:[#allocation5 + $0x2f0] sm:$0xf0] }
  0xdf   :  { %3568 = vmatpush.bf16.msrb.mxu0 %v6284_v1  ;;  %3581 = vmatpush.bf16.msrb.mxu1 %v6412_v7  ;;  %v7299_v17 = vld [vmem:[#allocation5 + $0xe4c] sm:$0xf0]  ;;  %v6364_v36 = vor.u32 %v7267_v19, %v6363_v14  ;;  %v6219_v34 = vld [vmem:[#allocation5 + $0xc20] sm:$0xf]  ;;  %v6865_v14 = vld [vmem:[#allocation5 + $0xc4] sm:$0xf] }
  0xe0   :  { %3594 = vmatpush.bf16.msrb.mxu2 %v6540_v53  ;;  %3607 = vmatpush.bf16.msrb.mxu3 %v6668_v5  ;;  %v7331_v16 = vld [vmem:[#allocation5 + $0xf4c] sm:$0xf0]  ;;  %v6492_v6 = vor.u32 %v7299_v17, %v6491_v25  ;;  %v6347_v49 = vld [vmem:[#allocation5 + $0xd20] sm:$0xf]  ;;  %v4765_v19 = vld [vmem:[#allocation5 + $0xd0] sm:$0xf0]  ;;  %v5040_v25 = vor.u32 %v6933_v56, %v5037_v57 }
  0xe1   :  { %v7231_v62 = vld [vmem:[#allocation5 + $0xc2c] sm:$0xf0]  ;;  %v6620_v41 = vor.u32 %v7331_v16, %v6619_v43  ;;  %v6475_v7 = vld [vmem:[#allocation5 + $0xe20] sm:$0xf]  ;;  %v6897_v43 = vld [vmem:[#allocation5 + $0x1c4] sm:$0xf] }
  0xe2   :  { %v7263_v1 = vld [vmem:[#allocation5 + $0xd2c] sm:$0xf0]  ;;  %v6603_v3 = vld [vmem:[#allocation5 + $0xf20] sm:$0xf]  ;;  %v6220_v5 = vor.u32 %v7231_v62, %v6219_v34  ;;  %v4893_v16 = vld [vmem:[#allocation5 + $0x1d0] sm:$0xf0] }
  0xe3   :  { %3569 = vmatpush.bf16.msrb.mxu0 %v6268_v33  ;;  %3582 = vmatpush.bf16.msrb.mxu1 %v6396_v60  ;;  %v7295_v2 = vld [vmem:[#allocation5 + $0xe2c] sm:$0xf0]  ;;  %v6203_v53 = vld [vmem:[#allocation5 + $0xc00] sm:$0xf]  ;;  %v6348_v46 = vor.u32 %v7263_v1, %v6347_v49  ;;  %v6961_v34 = vld [vmem:[#allocation5 + $0x3c4] sm:$0xf]  ;;  %v8163_v49 = vpack.c.bf16 %v8116_v10, %v8116_v10  ;;  %v4768_v1 = vor.u32 %v6865_v14, %v4765_v19 }
  0xe4   :  { %3595 = vmatpush.bf16.msrb.mxu2 %v6524_v44  ;;  %3608 = vmatpush.bf16.msrb.mxu3 %v6652_v50  ;;  %v7327_v0 = vld [vmem:[#allocation5 + $0xf2c] sm:$0xf0]  ;;  %v6331_v61 = vld [vmem:[#allocation5 + $0xd00] sm:$0xf]  ;;  %v6476_v51 = vor.u32 %v7295_v2, %v6475_v7  ;;  %v6869_v44 = vld [vmem:[#allocation5 + $0xe4] sm:$0xf]  ;;  %v4896_v7 = vor.u32 %v6897_v43, %v4893_v16 }
  0xe5   :  { %v7227_v31 = vld [vmem:[#allocation5 + $0xc0c] sm:$0xf0]  ;;  %v6604_v58 = vor.u32 %v7327_v0, %v6603_v3  ;;  %v6459_v33 = vld [vmem:[#allocation5 + $0xe00] sm:$0xf]  ;;  %v4781_v50 = vld [vmem:[#allocation5 + $0xf0] sm:$0xf0]  ;;  %v8167_v0 = vpack.c.bf16 %v8123_v23, %v8123_v23 }
  0xe6   :  { %v7259_v11 = vld [vmem:[#allocation5 + $0xd0c] sm:$0xf0]  ;;  %v6587_v20 = vld [vmem:[#allocation5 + $0xf00] sm:$0xf]  ;;  %v6204_v48 = vor.u32 %v7227_v31, %v6203_v53  ;;  %v5149_v62 = vld [vmem:[#allocation5 + $0x3d0] sm:$0xf0] }
  0xe7   :  { %3570 = vmatpush.bf16.msrb.mxu0 %v6252_v21  ;;  %3583 = vmatpush.bf16.msrb.mxu1 %v6380_v59  ;;  %v7291_v60 = vld [vmem:[#allocation5 + $0xe0c] sm:$0xf0]  ;;  %v6332_v27 = vor.u32 %v7259_v11, %v6331_v61  ;;  %v6965_v21 = vld [vmem:[#allocation5 + $0x3e4] sm:$0xf]  ;;  %v5165_v59 = vld [vmem:[#allocation5 + $0x3f0] sm:$0xf0] }
  0xe8   :  { %3596 = vmatpush.bf16.msrb.mxu2 %v6508_v40  ;;  %3609 = vmatpush.bf16.msrb.mxu3 %v6636_v55  ;;  %v7323_v63 = vld [vmem:[#allocation5 + $0xf0c] sm:$0xf0]  ;;  %v6460_v32 = vor.u32 %v7291_v60, %v6459_v33  ;;  %v4784_v40 = vor.u32 %v6869_v44, %v4781_v50  ;;  %v4912_v55 = vor.u32 %v6901_v9, %v4909_v22  ;;  %v6861_v2 = vld [vmem:[#allocation5 + $0xa4] sm:$0xf]  ;;  %v4749_v3 = vld [vmem:[#allocation5 + $0xb0] sm:$0xf0] }
  0xe9   :  { %v6588_v24 = vor.u32 %v7323_v63, %v6587_v20  ;;  %v5168_v17 = vor.u32 %v6965_v21, %v5165_v59  ;;  %v4877_v31 = vld [vmem:[#allocation5 + $0x1b0] sm:$0xf0]  ;;  %v6925_v61 = vld [vmem:[#allocation5 + $0x2a4] sm:$0xf]  ;;  %v4752_v33 = vor.u32 %v6861_v2, %v4749_v3 }
  0xea   :  { %v5005_v11 = vld [vmem:[#allocation5 + $0x2b0] sm:$0xf0]  ;;  %v6857_v20 = vld [vmem:[#allocation5 + $0x84] sm:$0xf] }
  0xeb   :  { %3571 = vmatpush.bf16.msrb.mxu0 %v6236_v45  ;;  %3584 = vmatpush.bf16.msrb.mxu1 %v6364_v36  ;;  %v6929_v45 = vld [vmem:[#allocation5 + $0x2c4] sm:$0xf]  ;;  %v5021_v36 = vld [vmem:[#allocation5 + $0x2d0] sm:$0xf0]  ;;  %v5008_v44 = vor.u32 %v6925_v61, %v5005_v11 }
  0xec   :  { %3597 = vmatpush.bf16.msrb.mxu2 %v6492_v6  ;;  %3610 = vmatpush.bf16.msrb.mxu3 %v6620_v41  ;;  %v8155_v6 = vpack.c.bf16 %v8104_v8, %v8104_v8  ;;  %v8159_v41 = vpack.c.bf16 %v8114_v29, %v8114_v29  ;;  %v5024_v53 = vor.u32 %v6929_v45, %v5021_v36  ;;  %v4733_v63 = vld [vmem:[#allocation5 + $0x90] sm:$0xf0]  ;;  %v6889_v9 = vld [vmem:[#allocation5 + $0x184] sm:$0xf] }
  0xed   :  { %v4861_v22 = vld [vmem:[#allocation5 + $0x190] sm:$0xf0]  ;;  %v6921_v56 = vld [vmem:[#allocation5 + $0x284] sm:$0xf]  ;;  %v4736_v21 = vor.u32 %v6857_v20, %v4733_v63 }
  0xee   :  { %v5117_v57 = vld [vmem:[#allocation5 + $0x390] sm:$0xf0]  ;;  %v4864_v59 = vor.u32 %v6889_v9, %v4861_v22  ;;  %v6885_v14 = vld [vmem:[#allocation5 + $0x164] sm:$0xf] }
  0xef   :  { %3572 = vmatpush.bf16.msrb.mxu0 %v6220_v5  ;;  %3585 = vmatpush.bf16.msrb.mxu1 %v6348_v46  ;;  %v5152_v5 = vor.u32 %v6961_v34, %v5149_v62  ;;  %v6893_v46 = vld [vmem:[#allocation5 + $0x1a4] sm:$0xf]  ;;  %v4845_v19 = vld [vmem:[#allocation5 + $0x170] sm:$0xf0] }
  0xf0   :  { %3598 = vmatpush.bf16.msrb.mxu2 %v6476_v51  ;;  %3611 = vmatpush.bf16.msrb.mxu3 %v6604_v58  ;;  %v6957_v51 = vld [vmem:[#allocation5 + $0x3a4] sm:$0xf]  ;;  %v5133_v58 = vld [vmem:[#allocation5 + $0x3b0] sm:$0xf0]  ;;  %v4880_v60 = vor.u32 %v6893_v46, %v4877_v31  ;;  %v4848_v36 = vor.u32 %v6885_v14, %v4845_v19 }
  0xf1   :  { %v5136_v50 = vor.u32 %v6957_v51, %v5133_v58  ;;  %v6949_v43 = vld [vmem:[#allocation5 + $0x364] sm:$0xf]  ;;  %v5101_v16 = vld [vmem:[#allocation5 + $0x370] sm:$0xf0] }
  0xf2   :  { %v6849_v34 = vld [vmem:[#allocation5 + $0x44] sm:$0xf]  ;;  %v4701_v62 = vld [vmem:[#allocation5 + $0x50] sm:$0xf0] }
  0xf3   :  { %3573 = vmatpush.bf16.msrb.mxu0 %v6204_v48  ;;  %3586 = vmatpush.bf16.msrb.mxu1 %v6332_v27  ;;  %v4989_v48 = vld [vmem:[#allocation5 + $0x290] sm:$0xf0]  ;;  %v6953_v27 = vld [vmem:[#allocation5 + $0x384] sm:$0xf]  ;;  %v4704_v61 = vor.u32 %v6849_v34, %v4701_v62 }
  0xf4   :  { %3599 = vmatpush.bf16.msrb.mxu2 %v6460_v32  ;;  %3612 = vmatpush.bf16.msrb.mxu3 %v6588_v24  ;;  %v6853_v32 = vld [vmem:[#allocation5 + $0x64] sm:$0xf]  ;;  %v4717_v24 = vld [vmem:[#allocation5 + $0x70] sm:$0xf0] }
  0xf5   :  { %v4720_v45 = vor.u32 %v6853_v32, %v4717_v24  ;;  %v6881_v2 = vld [vmem:[#allocation5 + $0x144] sm:$0xf]  ;;  %v4829_v3 = vld [vmem:[#allocation5 + $0x150] sm:$0xf0] }
  0xf6   :  { %3574 = vmatmul.bf16.vlgmr.msrb.gmra.mxu0 %v8155_v6  ;;  %3587 = vmatmul.bf16.vlgmr.msrb.gmra.mxu1 %v8159_v41  ;;  %v6945_v46 = vld [vmem:[#allocation5 + $0x344] sm:$0xf]  ;;  %v5085_v31 = vld [vmem:[#allocation5 + $0x350] sm:$0xf0]  ;;  %v4832_v11 = vor.u32 %v6881_v2, %v4829_v3 }
  0xf7   :  { %3618 = vmatpush.bf16.msra.mxu0 %v4784_v40  ;;  %3631 = vmatpush.bf16.msra.mxu1 %v4912_v55  ;;  %v4992_v40 = vor.u32 %v6921_v56, %v4989_v48  ;;  %v5120_v55 = vor.u32 %v6953_v27, %v5117_v57  ;;  %v6845_v51 = vld [vmem:[#allocation5 + $0x24] sm:$0xf]  ;;  %v4685_v58 = vld [vmem:[#allocation5 + $0x30] sm:$0xf0] }
  0xf8   :  { %3644 = vmatpush.bf16.msra.mxu2 %v5040_v25  ;;  %3657 = vmatpush.bf16.msra.mxu3 %v5168_v17  ;;  %v6917_v25 = vld [vmem:[#allocation5 + $0x264] sm:$0xf]  ;;  %v4973_v17 = vld [vmem:[#allocation5 + $0x270] sm:$0xf0]  ;;  %v4688_v48 = vor.u32 %v6845_v51, %v4685_v58 }
  0xf9   :  { %3600 = vmatmul.bf16.vlgmr.msrb.gmra.mxu2 %v8163_v49  ;;  %3613 = vmatmul.bf16.vlgmr.msrb.gmra.mxu3 %v8167_v0  ;;  %v6877_v20 = vld [vmem:[#allocation5 + $0x124] sm:$0xf]  ;;  %v4813_v63 = vld [vmem:[#allocation5 + $0x130] sm:$0xf0] }
  0xfa   :  { %v6941_v9 = vld [vmem:[#allocation5 + $0x324] sm:$0xf]  ;;  %v5069_v22 = vld [vmem:[#allocation5 + $0x330] sm:$0xf0]  ;;  %v4816_v27 = vor.u32 %v6877_v20, %v4813_v63 }
  0xfb   :  { %3619 = vmatpush.bf16.msra.mxu0 %v4768_v1  ;;  %3632 = vmatpush.bf16.msra.mxu1 %v4896_v7  ;;  %v4976_v1 = vor.u32 %v6917_v25, %v4973_v17  ;;  %v5104_v7 = vor.u32 %v6949_v43, %v5101_v16  ;;  %v6841_v56 = vld [vmem:[#allocation5 + $0x4] sm:$0xf]  ;;  %v4669_v57 = vld [vmem:[#allocation5 + $0x10] sm:$0xf0]  ;;  %v5072_v24 = vor.u32 %v6941_v9, %v5069_v22 }
  0xfc   :  { %3645 = vmatpush.bf16.msra.mxu2 %v5024_v53  ;;  %3658 = vmatpush.bf16.msra.mxu3 %v5152_v5  ;;  %v6913_v53 = vld [vmem:[#allocation5 + $0x244] sm:$0xf]  ;;  %v4957_v5 = vld [vmem:[#allocation5 + $0x250] sm:$0xf0] }
  0xfd   :  { %v6937_v14 = vld [vmem:[#allocation5 + $0x304] sm:$0xf]  ;;  %v5053_v19 = vld [vmem:[#allocation5 + $0x310] sm:$0xf0] }
  0xfe   :  { %v6997_v25 = vld [vmem:[#allocation5 + $0x4e4] sm:$0xf]  ;;  %v5293_v17 = vld [vmem:[#allocation5 + $0x4f0] sm:$0xf0]  ;;  %v5056_v3 = vor.u32 %v6937_v14, %v5053_v19 }
  0xff   :  { %3620 = vmatpush.bf16.msra.mxu0 %v4752_v33  ;;  %3633 = vmatpush.bf16.msra.mxu1 %v4880_v60  ;;  %v4960_v33 = vor.u32 %v6913_v53, %v4957_v5  ;;  %v5088_v60 = vor.u32 %v6945_v46, %v5085_v31  ;;  %v7029_v43 = vld [vmem:[#allocation5 + $0x5e4] sm:$0xf]  ;;  %v5421_v16 = vld [vmem:[#allocation5 + $0x5f0] sm:$0xf0]  ;;  %v5296_v53 = vor.u32 %v6997_v25, %v5293_v17 }
 0x100   :  { %3646 = vmatpush.bf16.msra.mxu2 %v5008_v44  ;;  %3659 = vmatpush.bf16.msra.mxu3 %v5136_v50  ;;  %v6909_v44 = vld [vmem:[#allocation5 + $0x224] sm:$0xf]  ;;  %v4941_v50 = vld [vmem:[#allocation5 + $0x230] sm:$0xf0]  ;;  %v5424_v5 = vor.u32 %v7029_v43, %v5421_v16 }
 0x101   :  { %v4944_v32 = vor.u32 %v6909_v44, %v4941_v50  ;;  %v5549_v62 = vld [vmem:[#allocation5 + $0x6f0] sm:$0xf0]  ;;  %v6993_v46 = vld [vmem:[#allocation5 + $0x4c4] sm:$0xf] }
 0x102   :  { %v5277_v31 = vld [vmem:[#allocation5 + $0x4d0] sm:$0xf0]  ;;  %v7025_v51 = vld [vmem:[#allocation5 + $0x5c4] sm:$0xf] }
 0x103   :  { %3621 = vmatpush.bf16.msra.mxu0 %v4736_v21  ;;  %3634 = vmatpush.bf16.msra.mxu1 %v4864_v59  ;;  %v6873_v21 = vld [vmem:[#allocation5 + $0x104] sm:$0xf]  ;;  %v4797_v59 = vld [vmem:[#allocation5 + $0x110] sm:$0xf0]  ;;  %v5280_v44 = vor.u32 %v6993_v46, %v5277_v31 }
 0x104   :  { %3647 = vmatpush.bf16.msra.mxu2 %v4992_v40  ;;  %3660 = vmatpush.bf16.msra.mxu3 %v5120_v55  ;;  %v6905_v40 = vld [vmem:[#allocation5 + $0x204] sm:$0xf]  ;;  %v4925_v55 = vld [vmem:[#allocation5 + $0x210] sm:$0xf0]  ;;  %v4800_v34 = vor.u32 %v6873_v21, %v4797_v59 }
 0x105   :  { %v4928_v2 = vor.u32 %v6905_v40, %v4925_v55  ;;  %v5405_v58 = vld [vmem:[#allocation5 + $0x5d0] sm:$0xf0]  ;;  %v7089_v20 = vld [vmem:[#allocation5 + $0x7c4] sm:$0xf] }
 0x106   :  { %v5661_v63 = vld [vmem:[#allocation5 + $0x7d0] sm:$0xf0]  ;;  %v5408_v50 = vor.u32 %v7025_v51, %v5405_v58  ;;  %v6989_v9 = vld [vmem:[#allocation5 + $0x4a4] sm:$0xf] }
 0x107   :  { %3622 = vmatpush.bf16.msra.mxu0 %v4720_v45  ;;  %3635 = vmatpush.bf16.msra.mxu1 %v4848_v36  ;;  %v7061_v45 = vld [vmem:[#allocation5 + $0x6e4] sm:$0xf]  ;;  %v4672_v36 = vor.u32 %v6841_v56, %v4669_v57  ;;  %v5261_v22 = vld [vmem:[#allocation5 + $0x4b0] sm:$0xf0] }
 0x108   :  { %3648 = vmatpush.bf16.msra.mxu2 %v4976_v1  ;;  %3661 = vmatpush.bf16.msra.mxu3 %v5104_v7  ;;  %v7093_v1 = vld [vmem:[#allocation5 + $0x7e4] sm:$0xf]  ;;  %v5677_v7 = vld [vmem:[#allocation5 + $0x7f0] sm:$0xf0]  ;;  %v5264_v19 = vor.u32 %v6989_v9, %v5261_v22 }
 0x109   :  { %v5389_v57 = vld [vmem:[#allocation5 + $0x5b0] sm:$0xf0]  ;;  %v7053_v21 = vld [vmem:[#allocation5 + $0x6a4] sm:$0xf] }
 0x10a   :  { %v8443_v59 = vld [vmem:[#allocation19_spill] sm:$0xff]  ;;  %v7085_v40 = vld [vmem:[#allocation5 + $0x7a4] sm:$0xf] }
 0x10b   :  { %3623 = vmatpush.bf16.msra.mxu0 %v4704_v61  ;;  %3636 = vmatpush.bf16.msra.mxu1 %v4832_v11  ;;  %v5552_v61 = vor.u32 %v7061_v45, %v5549_v62  ;;  %v5680_v11 = vor.u32 %v7093_v1, %v5677_v7  ;;  %v5645_v55 = vld [vmem:[#allocation5 + $0x7b0] sm:$0xf0]  ;;  %v8445_v14 = vld [vmem:[#allocation21_spill] sm:$0xff] }
 0x10c   :  { %3649 = vmatpush.bf16.msra.mxu2 %v4960_v33  ;;  %3662 = vmatpush.bf16.msra.mxu3 %v5088_v60  ;;  %v7057_v33 = vld [vmem:[#allocation5 + $0x6c4] sm:$0xf]  ;;  %v5533_v60 = vld [vmem:[#allocation5 + $0x6d0] sm:$0xf0]  ;;  %v5648_v45 = vor.u32 %v7085_v40, %v5645_v55 }
 0x10d   :  { %v5536_v56 = vor.u32 %v7057_v33, %v5533_v60  ;;  %v6985_v17 = vld [vmem:[#allocation5 + $0x484] sm:$0xf]  ;;  %v5245_v43 = vld [vmem:[#allocation5 + $0x490] sm:$0xf0] }
 0x10e   :  { %v7049_v62 = vld [vmem:[#allocation5 + $0x684] sm:$0xf]  ;;  %v5501_v1 = vld [vmem:[#allocation5 + $0x690] sm:$0xf0] }
 0x10f   :  { %3624 = vmatpush.bf16.msra.mxu0 %v4688_v48  ;;  %3637 = vmatpush.bf16.msra.mxu1 %v4816_v27  ;;  %v5664_v48 = vor.u32 %v7089_v20, %v5661_v63  ;;  %v7021_v27 = vld [vmem:[#allocation5 + $0x5a4] sm:$0xf]  ;;  %v5229_v46 = vld [vmem:[#allocation5 + $0x470] sm:$0xf0]  ;;  %v5504_v31 = vor.u32 %v7049_v62, %v5501_v1 }
 0x110   :  { %3650 = vmatpush.bf16.msra.mxu2 %v4944_v32  ;;  %3663 = vmatpush.bf16.msra.mxu3 %v5072_v24  ;;  %v8444_v32 = vld [vmem:[#allocation20_spill] sm:$0xff]  ;;  %v5517_v24 = vld [vmem:[#allocation5 + $0x6b0] sm:$0xf0]  ;;  %v5392_v25 = vor.u32 %v7021_v27, %v5389_v57  ;;  %v7081_v7 = vld [vmem:[#allocation5 + $0x784] sm:$0xf] }
 0x111   :  { %v5520_v16 = vor.u32 %v7053_v21, %v5517_v24  ;;  %v5357_v51 = vld [vmem:[#allocation5 + $0x570] sm:$0xf0]  ;;  %v7045_v58 = vld [vmem:[#allocation5 + $0x664] sm:$0xf] }
 0x112   :  { %v5485_v33 = vld [vmem:[#allocation5 + $0x670] sm:$0xf0]  ;;  %v7077_v60 = vld [vmem:[#allocation5 + $0x764] sm:$0xf] }
 0x113   :  { %3625 = vmatpush.bf16.msra.mxu0 %v4672_v36  ;;  %3638 = vmatpush.bf16.msra.mxu1 %v4800_v34  ;;  %v7017_v36 = vld [vmem:[#allocation5 + $0x584] sm:$0xf]  ;;  %v5373_v34 = vld [vmem:[#allocation5 + $0x590] sm:$0xf0]  ;;  %v5488_v22 = vor.u32 %v7045_v58, %v5485_v33 }
 0x114   :  { %3651 = vmatpush.bf16.msra.mxu2 %v4928_v2  ;;  %3664 = vmatpush.bf16.msra.mxu3 %v5056_v3  ;;  %v5629_v2 = vld [vmem:[#allocation5 + $0x790] sm:$0xf0]  ;;  %v5248_v3 = vor.u32 %v6985_v17, %v5245_v43  ;;  %v7041_v57 = vld [vmem:[#allocation5 + $0x644] sm:$0xf] }
 0x115   :  { %v5613_v20 = vld [vmem:[#allocation5 + $0x770] sm:$0xf0]  ;;  %v7073_v24 = vld [vmem:[#allocation5 + $0x744] sm:$0xf] }
 0x116   :  { %3626 = vmatmul.bf16.vlgmr.msra.gmra.mxu0 %v8443_v59  ;;  %3639 = vmatmul.bf16.vlgmr.msra.gmra.mxu1 %v8444_v32  ;;  %v5213_v9 = vld [vmem:[#allocation5 + $0x450] sm:$0xf0]  ;;  %v7069_v1 = vld [vmem:[#allocation5 + $0x724] sm:$0xf] }
 0x117   :  { %3670 = vmatpush.bf16.msrb.mxu0 %v5296_v53  ;;  %3683 = vmatpush.bf16.msrb.mxu1 %v5424_v5  ;;  %v5376_v53 = vor.u32 %v7017_v36, %v5373_v34  ;;  %v6981_v5 = vld [vmem:[#allocation5 + $0x464] sm:$0xf]  ;;  %v5341_v27 = vld [vmem:[#allocation5 + $0x550] sm:$0xf0] }
 0x118   :  { %3696 = vmatpush.bf16.msrb.mxu2 %v5552_v61  ;;  %3709 = vmatpush.bf16.msrb.mxu3 %v5680_v11  ;;  %v5632_v61 = vor.u32 %v7081_v7, %v5629_v2  ;;  %v7013_v11 = vld [vmem:[#allocation5 + $0x564] sm:$0xf]  ;;  %v5232_v63 = vor.u32 %v6981_v5, %v5229_v46  ;;  %v5469_v21 = vld [vmem:[#allocation5 + $0x650] sm:$0xf0] }
 0x119   :  { %3652 = vmatmul.bf16.vlgmr.msra.gmra.mxu2 %v8445_v14  ;;  %3665 = vmatmul.bf16.vlgmr.msra.gmra.mxu3 %v7803_v28  ;;  %v5597_v40 = vld [vmem:[#allocation5 + $0x750] sm:$0xf0]  ;;  %v5472_v43 = vor.u32 %v7041_v57, %v5469_v21  ;;  %v7037_v34 = vld [vmem:[#allocation5 + $0x624] sm:$0xf] }
 0x11a   :  { %v5197_v17 = vld [vmem:[#allocation5 + $0x430] sm:$0xf0]  ;;  %v6969_v2 = vld [vmem:[#allocation5 + $0x404] sm:$0xf] }
 0x11b   :  { %3671 = vmatpush.bf16.msrb.mxu0 %v5280_v44  ;;  %3684 = vmatpush.bf16.msrb.mxu1 %v5408_v50  ;;  %v5360_v44 = vor.u32 %v7013_v11, %v5357_v51  ;;  %v6977_v50 = vld [vmem:[#allocation5 + $0x444] sm:$0xf]  ;;  %v5325_v36 = vld [vmem:[#allocation5 + $0x530] sm:$0xf0] }
 0x11c   :  { %3697 = vmatpush.bf16.msrb.mxu2 %v5536_v56  ;;  %3710 = vmatpush.bf16.msrb.mxu3 %v5664_v48  ;;  %v5616_v56 = vor.u32 %v7077_v60, %v5613_v20  ;;  %v7009_v48 = vld [vmem:[#allocation5 + $0x544] sm:$0xf]  ;;  %v5216_v55 = vor.u32 %v6977_v50, %v5213_v9  ;;  %v5453_v62 = vld [vmem:[#allocation5 + $0x630] sm:$0xf0] }
 0x11d   :  { %v5581_v7 = vld [vmem:[#allocation5 + $0x730] sm:$0xf0]  ;;  %v7001_v46 = vld [vmem:[#allocation5 + $0x504] sm:$0xf] }
 0x11e   :  { %v5181_v5 = vld [vmem:[#allocation5 + $0x410] sm:$0xf0]  ;;  %v5584_v11 = vor.u32 %v7069_v1, %v5581_v7  ;;  %v7033_v51 = vld [vmem:[#allocation5 + $0x604] sm:$0xf] }
 0x11f   :  { %3672 = vmatpush.bf16.msrb.mxu0 %v5264_v19  ;;  %3685 = vmatpush.bf16.msrb.mxu1 %v5392_v25  ;;  %v5344_v19 = vor.u32 %v7009_v48, %v5341_v27  ;;  %v6973_v25 = vld [vmem:[#allocation5 + $0x424] sm:$0xf]  ;;  %v5437_v58 = vld [vmem:[#allocation5 + $0x610] sm:$0xf0] }
 0x120   :  { %3698 = vmatpush.bf16.msrb.mxu2 %v5520_v16  ;;  %3711 = vmatpush.bf16.msrb.mxu3 %v5648_v45  ;;  %v5600_v16 = vor.u32 %v7073_v24, %v5597_v40  ;;  %v7005_v45 = vld [vmem:[#allocation5 + $0x524] sm:$0xf]  ;;  %v5565_v60 = vld [vmem:[#allocation5 + $0x710] sm:$0xf0]  ;;  %v5440_v21 = vor.u32 %v7033_v51, %v5437_v58 }
 0x121   :  { %v7065_v33 = vld [vmem:[#allocation5 + $0x704] sm:$0xf]  ;;  %v5933_v50 = vld [vmem:[#allocation5 + $0x9f0] sm:$0xf0] }
 0x122   :  { %v7125_v20 = vld [vmem:[#allocation5 + $0x8e4] sm:$0xf]  ;;  %v6061_v48 = vld [vmem:[#allocation5 + $0xaf0] sm:$0xf0]  ;;  %v5568_v24 = vor.u32 %v7065_v33, %v5565_v60 }
 0x123   :  { %3673 = vmatpush.bf16.msrb.mxu0 %v5248_v3  ;;  %3686 = vmatpush.bf16.msrb.mxu1 %v5376_v53  ;;  %v5200_v3 = vor.u32 %v6973_v25, %v5197_v17  ;;  %v5328_v53 = vor.u32 %v7005_v45, %v5325_v36  ;;  %v7189_v9 = vld [vmem:[#allocation5 + $0xae4] sm:$0xf]  ;;  %v6189_v57 = vld [vmem:[#allocation5 + $0xbf0] sm:$0xf0] }
 0x124   :  { %3699 = vmatpush.bf16.msrb.mxu2 %v5504_v31  ;;  %3712 = vmatpush.bf16.msrb.mxu3 %v5632_v61  ;;  %v5309_v31 = vld [vmem:[#allocation5 + $0x510] sm:$0xf0]  ;;  %v5456_v61 = vor.u32 %v7037_v34, %v5453_v62  ;;  %v7221_v27 = vld [vmem:[#allocation5 + $0xbe4] sm:$0xf]  ;;  %v6064_v17 = vor.u32 %v7189_v9, %v6061_v48 }
 0x125   :  { %v5789_v25 = vld [vmem:[#allocation5 + $0x8d0] sm:$0xf0]  ;;  %v7185_v36 = vld [vmem:[#allocation5 + $0xac4] sm:$0xf] }
 0x126   :  { %v5917_v45 = vld [vmem:[#allocation5 + $0x9d0] sm:$0xf0]  ;;  %v7217_v62 = vld [vmem:[#allocation5 + $0xbc4] sm:$0xf] }
 0x127   :  { %3674 = vmatpush.bf16.msrb.mxu0 %v5232_v63  ;;  %3687 = vmatpush.bf16.msrb.mxu1 %v5360_v44  ;;  %v5805_v63 = vld [vmem:[#allocation5 + $0x8f0] sm:$0xf0]  ;;  %v7157_v44 = vld [vmem:[#allocation5 + $0x9e4] sm:$0xf] }
 0x128   :  { %3700 = vmatpush.bf16.msrb.mxu2 %v5488_v22  ;;  %3713 = vmatpush.bf16.msrb.mxu3 %v5616_v56  ;;  %v5184_v22 = vor.u32 %v6969_v2, %v5181_v5  ;;  %v5312_v56 = vor.u32 %v7001_v46, %v5309_v31  ;;  %v5808_v40 = vor.u32 %v7125_v20, %v5805_v63  ;;  %v6045_v34 = vld [vmem:[#allocation5 + $0xad0] sm:$0xf0]  ;;  %v7149_v31 = vld [vmem:[#allocation5 + $0x9a4] sm:$0xf] }
 0x129   :  { %v6173_v1 = vld [vmem:[#allocation5 + $0xbd0] sm:$0xf0]  ;;  %v6048_v5 = vor.u32 %v7185_v36, %v6045_v34  ;;  %v7213_v58 = vld [vmem:[#allocation5 + $0xba4] sm:$0xf] }
 0x12a   :  { %v6176_v46 = vor.u32 %v7217_v62, %v6173_v1  ;;  %v6029_v51 = vld [vmem:[#allocation5 + $0xab0] sm:$0xf0]  ;;  %v3419_v60 = vpop.f32.mrf.mxu0  ;;  %v3432_v20 = vpop.f32.mrf.mxu1  ;;  %v7113_v9 = vld [vmem:[#allocation5 + $0x884] sm:$0xf] }
 0x12b   :  { %3675 = vmatpush.bf16.msrb.mxu0 %v5216_v55  ;;  %3688 = vmatpush.bf16.msrb.mxu1 %v5344_v19  ;;  %v5936_v55 = vor.u32 %v7157_v44, %v5933_v50  ;;  %v7121_v19 = vld [vmem:[#allocation5 + $0x8c4] sm:$0xf]  ;;  %v6157_v33 = vld [vmem:[#allocation5 + $0xbb0] sm:$0xf0]  ;;  %v3433_v50 = vadd.f32 %v3432_v20, %v3419_v60 }
 0x12c   :  { %3701 = vmatpush.bf16.msrb.mxu2 %v5472_v43  ;;  %3714 = vmatpush.bf16.msrb.mxu3 %v5600_v16  ;;  %v6192_v43 = vor.u32 %v7221_v27, %v6189_v57  ;;  %v7153_v16 = vld [vmem:[#allocation5 + $0x9c4] sm:$0xf]  ;;  %v5792_v7 = vor.u32 %v7121_v19, %v5789_v25  ;;  %v6160_v48 = vor.u32 %v7213_v58, %v6157_v33  ;;  %v5885_v57 = vld [vmem:[#allocation5 + $0x990] sm:$0xf0] }
 0x12d   :  { %v5920_v2 = vor.u32 %v7153_v16, %v5917_v45  ;;  %v7145_v27 = vld [vmem:[#allocation5 + $0x984] sm:$0xf]  ;;  %v5869_v34 = vld [vmem:[#allocation5 + $0x970] sm:$0xf0] }
 0x12e   :  { %v5888_v25 = vor.u32 %v7145_v27, %v5885_v57  ;;  %v7141_v36 = vld [vmem:[#allocation5 + $0x964] sm:$0xf]  ;;  %v5725_v58 = vld [vmem:[#allocation5 + $0x850] sm:$0xf0] }
 0x12f   :  { %3676 = vmatpush.bf16.msrb.mxu0 %v5200_v3  ;;  %3689 = vmatpush.bf16.msrb.mxu1 %v5328_v53  ;;  %v7117_v3 = vld [vmem:[#allocation5 + $0x8a4] sm:$0xf]  ;;  %v5773_v53 = vld [vmem:[#allocation5 + $0x8b0] sm:$0xf0] }
 0x130   :  { %3702 = vmatpush.bf16.msrb.mxu2 %v5456_v61  ;;  %3715 = vmatpush.bf16.msrb.mxu3 %v5584_v11  ;;  %v5901_v61 = vld [vmem:[#allocation5 + $0x9b0] sm:$0xf0]  ;;  %v7181_v11 = vld [vmem:[#allocation5 + $0xaa4] sm:$0xf]  ;;  %v5776_v63 = vor.u32 %v7117_v3, %v5773_v53 }
 0x131   :  { %v5904_v44 = vor.u32 %v7149_v31, %v5901_v61  ;;  %v7173_v62 = vld [vmem:[#allocation5 + $0xa64] sm:$0xf]  ;;  %v3445_v1 = vpop.f32.mrf.mxu2  ;;  %v6125_v53 = vld [vmem:[#allocation5 + $0xb70] sm:$0xf0] }
 0x132   :  { %v7205_v3 = vld [vmem:[#allocation5 + $0xb64] sm:$0xf]  ;;  %v3434_v31 = vpop.f32.mrf.mxu1 }
 0x133   :  { %3677 = vmatpush.bf16.msrb.mxu0 %v5184_v22  ;;  %3690 = vmatpush.bf16.msrb.mxu1 %v5312_v56  ;;  %v5757_v22 = vld [vmem:[#allocation5 + $0x890] sm:$0xf0]  ;;  %v6032_v56 = vor.u32 %v7181_v11, %v6029_v51  ;;  %v5872_v11 = vor.u32 %v7141_v36, %v5869_v34  ;;  %v7105_v51 = vld [vmem:[#allocation5 + $0x844] sm:$0xf]  ;;  %v6128_v20 = vor.u32 %v7205_v3, %v6125_v53 }
 0x134   :  { %3703 = vmatpush.bf16.msrb.mxu2 %v5440_v21  ;;  %3716 = vmatpush.bf16.msrb.mxu3 %v5568_v24  ;;  %v7177_v21 = vld [vmem:[#allocation5 + $0xa84] sm:$0xf]  ;;  %v6013_v24 = vld [vmem:[#allocation5 + $0xa90] sm:$0xf0]  ;;  %v5760_v19 = vor.u32 %v7113_v9, %v5757_v22 }
 0x135   :  { %v6016_v16 = vor.u32 %v7177_v21, %v6013_v24  ;;  %v7169_v9 = vld [vmem:[#allocation5 + $0xa44] sm:$0xf]  ;;  %v5981_v22 = vld [vmem:[#allocation5 + $0xa50] sm:$0xf0] }
 0x136   :  { %3678 = vmatmul.bf16.vlgmr.msrb.gmra.mxu0 %v7945_v26  ;;  %3691 = vmatmul.bf16.vlgmr.msrb.gmra.mxu1 %v7968_v30  ;;  %v7101_v57 = vld [vmem:[#allocation5 + $0x824] sm:$0xf]  ;;  %v5709_v21 = vld [vmem:[#allocation5 + $0x830] sm:$0xf0]  ;;  %v5984_v24 = vor.u32 %v7169_v9, %v5981_v22 }
 0x137   :  { %3722 = vmatpush.bf16.msra.mxu0 %v5808_v40  ;;  %3735 = vmatpush.bf16.msra.mxu1 %v5936_v55  ;;  %v7209_v40 = vld [vmem:[#allocation5 + $0xb84] sm:$0xf]  ;;  %v6141_v55 = vld [vmem:[#allocation5 + $0xb90] sm:$0xf0] }
 0x138   :  { %3748 = vmatpush.bf16.msra.mxu2 %v6064_v17  ;;  %3761 = vmatpush.bf16.msra.mxu3 %v6192_v43  ;;  %v7109_v17 = vld [vmem:[#allocation5 + $0x864] sm:$0xf]  ;;  %v5741_v43 = vld [vmem:[#allocation5 + $0x870] sm:$0xf0]  ;;  %v6144_v45 = vor.u32 %v7209_v40, %v6141_v55 }
 0x139   :  { %3704 = vmatmul.bf16.vlgmr.msrb.gmra.mxu2 %v7974_v4  ;;  %3717 = vmatmul.bf16.vlgmr.msrb.gmra.mxu3 %v7992_v38  ;;  %v5744_v61 = vor.u32 %v7109_v17, %v5741_v43  ;;  %v7133_v55 = vld [vmem:[#allocation5 + $0x924] sm:$0xf]  ;;  %v3447_v17 = vpop.f32.mrf.mxu2  ;;  %v6093_v36 = vld [vmem:[#allocation5 + $0xb30] sm:$0xf0] }
 0x13a   :  { %v7097_v3 = vld [vmem:[#allocation5 + $0x804] sm:$0xf]  ;;  %v5693_v53 = vld [vmem:[#allocation5 + $0x810] sm:$0xf0] }
 0x13b   :  { %3723 = vmatpush.bf16.msra.mxu0 %v5792_v7  ;;  %3736 = vmatpush.bf16.msra.mxu1 %v5920_v2  ;;  %v3458_v7 = vpop.f32.mrf.mxu3  ;;  %v5997_v2 = vld [vmem:[#allocation5 + $0xa70] sm:$0xf0]  ;;  %v7317_v9 = vld [vmem:[#allocation5 + $0xee4] sm:$0xf] }
 0x13c   :  { %3749 = vmatpush.bf16.msra.mxu2 %v6048_v5  ;;  %3762 = vmatpush.bf16.msra.mxu3 %v6176_v46  ;;  %v3446_v5 = vadd.f32 %v3445_v1, %v3433_v50  ;;  %v3421_v46 = vpop.f32.mrf.mxu0  ;;  %v6000_v60 = vor.u32 %v7173_v62, %v5997_v2  ;;  %v5728_v50 = vor.u32 %v7105_v51, %v5725_v58  ;;  %v3484_v62 = vpop.f32.mrf.mxu1  ;;  %v5949_v51 = vld [vmem:[#allocation5 + $0xa10] sm:$0xf0] }
 0x13d   :  { %v5712_v1 = vor.u32 %v7101_v57, %v5709_v21  ;;  %v6573_v22 = vld [vmem:[#allocation5 + $0xef0] sm:$0xf0]  ;;  %v7253_v21 = vld [vmem:[#allocation5 + $0xce4] sm:$0xf] }
 0x13e   :  { %v3459_v33 = vadd.f32 %v3458_v7, %v3446_v5  ;;  %v7129_v5 = vld [vmem:[#allocation5 + $0x904] sm:$0xf] }
 0x13f   :  { %3724 = vmatpush.bf16.msra.mxu0 %v5776_v63  ;;  %3737 = vmatpush.bf16.msra.mxu1 %v5904_v44  ;;  %v7137_v63 = vld [vmem:[#allocation5 + $0x944] sm:$0xf]  ;;  %v5853_v44 = vld [vmem:[#allocation5 + $0x950] sm:$0xf0] }
 0x140   :  { %3750 = vmatpush.bf16.msra.mxu2 %v6032_v56  ;;  %3763 = vmatpush.bf16.msra.mxu3 %v6160_v48  ;;  %v7201_v56 = vld [vmem:[#allocation5 + $0xb44] sm:$0xf]  ;;  %v6109_v48 = vld [vmem:[#allocation5 + $0xb50] sm:$0xf0]  ;;  %v5856_v27 = vor.u32 %v7137_v63, %v5853_v44 }
 0x141   :  { %v6112_v40 = vor.u32 %v7201_v56, %v6109_v48  ;;  %v7285_v63 = vld [vmem:[#allocation5 + $0xde4] sm:$0xf]  ;;  %v6445_v44 = vld [vmem:[#allocation5 + $0xdf0] sm:$0xf0] }
 0x142   :  { %v7349_v48 = vld [vmem:[#allocation5 + $0xfe4] sm:$0xf] }
 0x143   :  { %3725 = vmatpush.bf16.msra.mxu0 %v5760_v19  ;;  %3738 = vmatpush.bf16.msra.mxu1 %v5888_v25  ;;  %v5837_v19 = vld [vmem:[#allocation5 + $0x930] sm:$0xf0]  ;;  %v7165_v25 = vld [vmem:[#allocation5 + $0xa24] sm:$0xf]  ;;  %v3460_v43 = vpop.f32.mrf.mxu3 }
 0x144   :  { %3751 = vmatpush.bf16.msra.mxu2 %v6016_v16  ;;  %3764 = vmatpush.bf16.msra.mxu3 %v6144_v45  ;;  %v5965_v16 = vld [vmem:[#allocation5 + $0xa30] sm:$0xf0]  ;;  %v7197_v45 = vld [vmem:[#allocation5 + $0xb24] sm:$0xf]  ;;  %v3471_v34 = vpop.f32.mrf.mxu0  ;;  %v5840_v7 = vor.u32 %v7133_v55, %v5837_v19  ;;  %v6576_v55 = vor.u32 %v7317_v9, %v6573_v22  ;;  %v3486_v43 = vpop.f32.mrf.mxu1 }
 0x145   :  { %v3472_v2 = vadd.f32 %v3471_v34, %v3459_v33  ;;  %v5968_v46 = vor.u32 %v7165_v25, %v5965_v16  ;;  %v6096_v31 = vor.u32 %v7197_v45, %v6093_v36  ;;  %v5696_v33 = vor.u32 %v7097_v3, %v5693_v53  ;;  %v7249_v16 = vld [vmem:[#allocation5 + $0xcc4] sm:$0xf]  ;;  %v6301_v45 = vld [vmem:[#allocation5 + $0xcd0] sm:$0xf0]  ;;  %v3497_v34 = vpop.f32.mrf.mxu2 }
 0x146   :  { %v7281_v36 = vld [vmem:[#allocation5 + $0xdc4] sm:$0xf]  ;;  %v6557_v3 = vld [vmem:[#allocation5 + $0xed0] sm:$0xf0] }
 0x147   :  { %3726 = vmatpush.bf16.msra.mxu0 %v5744_v61  ;;  %3739 = vmatpush.bf16.msra.mxu1 %v5872_v11  ;;  %v5821_v61 = vld [vmem:[#allocation5 + $0x910] sm:$0xf0]  ;;  %v7161_v11 = vld [vmem:[#allocation5 + $0xa04] sm:$0xf]  ;;  %v3485_v58 = vadd.f32 %v3484_v62, %v3472_v2 }
 0x148   :  { %3752 = vmatpush.bf16.msra.mxu2 %v6000_v60  ;;  %3765 = vmatpush.bf16.msra.mxu3 %v6128_v20  ;;  %v7193_v60 = vld [vmem:[#allocation5 + $0xb04] sm:$0xf]  ;;  %v6077_v20 = vld [vmem:[#allocation5 + $0xb10] sm:$0xf0]  ;;  %v5824_v56 = vor.u32 %v7129_v5, %v5821_v61 }
 0x149   :  { %v6080_v57 = vor.u32 %v7193_v60, %v6077_v20  ;;  %v7313_v2 = vld [vmem:[#allocation5 + $0xec4] sm:$0xf]  ;;  %v3498_v53 = vadd.f32 %v3497_v34, %v3485_v58  ;;  %v6685_v61 = vld [vmem:[#allocation5 + $0xfd0] sm:$0xf0] }
 0x14a   :  { %v7277_v58 = vld [vmem:[#allocation5 + $0xda4] sm:$0xf]  ;;  %v6413_v9 = vld [vmem:[#allocation5 + $0xdb0] sm:$0xf0] }
 0x14b   :  { %3727 = vmatpush.bf16.msra.mxu0 %v5728_v50  ;;  %3740 = vmatpush.bf16.msra.mxu1 %v5856_v27  ;;  %v6701_v50 = vld [vmem:[#allocation5 + $0xff0] sm:$0xf0]  ;;  %v5952_v27 = vor.u32 %v7161_v11, %v5949_v51  ;;  %v3510_v62 = vpop.f32.mrf.mxu3  ;;  %v7309_v22 = vld [vmem:[#allocation5 + $0xea4] sm:$0xf] }
 0x14c   :  { %3753 = vmatpush.bf16.msra.mxu2 %v5984_v24  ;;  %3766 = vmatpush.bf16.msra.mxu3 %v6112_v40  ;;  %v6317_v24 = vld [vmem:[#allocation5 + $0xcf0] sm:$0xf0]  ;;  %v6448_v40 = vor.u32 %v7285_v63, %v6445_v44  ;;  %v6704_v19 = vor.u32 %v7349_v48, %v6701_v50  ;;  %v3473_v17 = vpop.f32.mrf.mxu0  ;;  %v3511_v20 = vadd.f32 %v3510_v62, %v3498_v53  ;;  %v7245_v63 = vld [vmem:[#allocation5 + $0xca4] sm:$0xf] }
 0x14d   :  { %v6320_v25 = vor.u32 %v7253_v21, %v6317_v24  ;;  %v6285_v44 = vld [vmem:[#allocation5 + $0xcb0] sm:$0xf0]  ;;  %v7341_v50 = vld [vmem:[#allocation5 + $0xfa4] sm:$0xf] }
 0x14e   :  { %v6541_v48 = vld [vmem:[#allocation5 + $0xeb0] sm:$0xf0]  ;;  %v7241_v24 = vld [vmem:[#allocation5 + $0xc84] sm:$0xf] }
 0x14f   :  { %3728 = vmatpush.bf16.msra.mxu0 %v5712_v1  ;;  %3741 = vmatpush.bf16.msra.mxu1 %v5840_v7  ;;  %v6304_v1 = vor.u32 %v7249_v16, %v6301_v45  ;;  %v6429_v7 = vld [vmem:[#allocation5 + $0xdd0] sm:$0xf0]  ;;  %v7305_v43 = vld [vmem:[#allocation5 + $0xe84] sm:$0xf] }
 0x150   :  { %3754 = vmatpush.bf16.msra.mxu2 %v5968_v46  ;;  %3767 = vmatpush.bf16.msra.mxu3 %v6096_v31  ;;  %v6432_v5 = vor.u32 %v7281_v36, %v6429_v7  ;;  %v6560_v46 = vor.u32 %v7313_v2, %v6557_v3  ;;  %v7345_v31 = vld [vmem:[#allocation5 + $0xfc4] sm:$0xf]  ;;  %v4594_v11 = vpop.xlane.xlu1 %4593  ;;  %v6397_v17 = vld [vmem:[#allocation5 + $0xd90] sm:$0xf0] }
 0x151   :  { %v6688_v51 = vor.u32 %v7345_v31, %v6685_v61  ;;  %v8183_v60 = vmax.f32 %v4594_v11, 1e-24  ;;  %v6525_v16 = vld [vmem:[#allocation5 + $0xe90] sm:$0xf0]  ;;  %v7337_v7 = vld [vmem:[#allocation5 + $0xf84] sm:$0xf] }
 0x152   :  { %v6653_v2 = vld [vmem:[#allocation5 + $0xf90] sm:$0xf0]  ;;  %v7237_v3 = vld [vmem:[#allocation5 + $0xc64] sm:$0xf] }
 0x153   :  { %3729 = vmatpush.bf16.msra.mxu0 %v5696_v33  ;;  %3742 = vmatpush.bf16.msra.mxu1 %v5824_v56  ;;  %7395 = vrsqrt.f32 %v8183_v60  ;;  %v6288_v33 = vor.u32 %v7245_v63, %v6285_v44  ;;  %v6416_v56 = vor.u32 %v7277_v58, %v6413_v9  ;;  %v3536_v36 = vpop.f32.mrf.mxu1  ;;  %v7269_v31 = vld [vmem:[#allocation5 + $0xd64] sm:$0xf]  ;;  %v6381_v61 = vld [vmem:[#allocation5 + $0xd70] sm:$0xf0]  ;;  %vm4602_vm1 = vweird.f32 %v8183_v60 }
 0x154   :  { %3755 = vmatpush.bf16.msra.mxu2 %v5952_v27  ;;  %3768 = vmatpush.bf16.msra.mxu3 %v6080_v57  ;;  %v6669_v27 = vld [vmem:[#allocation5 + $0xfb0] sm:$0xf0]  ;;  %v6544_v57 = vor.u32 %v7309_v22, %v6541_v48  ;;  %v3523_v45 = vpop.f32.mrf.mxu0  ;;  %v7301_v63 = vld [vmem:[#allocation5 + $0xe64] sm:$0xf] }
 0x155   :  { %v6672_v21 = vor.u32 %v7341_v50, %v6669_v27  ;;  %v3524_v53 = vadd.f32 %v3523_v45, %v3511_v20  ;;  %v6509_v44 = vld [vmem:[#allocation5 + $0xe70] sm:$0xf0]  ;;  %v7333_v58 = vld [vmem:[#allocation5 + $0xf64] sm:$0xf] }
 0x156   :  { %3730 = vmatmul.bf16.vlgmr.msra.gmra.mxu0 %v8133_v42  ;;  %3743 = vmatmul.bf16.vlgmr.msra.gmra.mxu1 %v8137_v18  ;;  %v7233_v48 = vld [vmem:[#allocation5 + $0xc44] sm:$0xf]  ;;  %v6237_v27 = vld [vmem:[#allocation5 + $0xc50] sm:$0xf0] }
 0x157   :  { %3787 = vmatpush.bf16.msrb.mxu1 %v6448_v40  ;;  %3774 = vmatpush.bf16.msrb.mxu0 %v6320_v25  ;;  %v6269_v40 = vld [vmem:[#allocation5 + $0xc90] sm:$0xf0]  ;;  %v3512_v25 = vpop.f32.mrf.mxu3  ;;  %v3537_v22 = vadd.f32 %v3536_v36, %v3524_v53 }
 0x158   :  { %3800 = vmatpush.bf16.msrb.mxu2 %v6576_v55  ;;  %3813 = vmatpush.bf16.msrb.mxu3 %v6704_v19  ;;  %v7273_v55 = vld [vmem:[#allocation5 + $0xd84] sm:$0xf]  ;;  %v3499_v19 = vpop.f32.mrf.mxu2  ;;  %v6272_v34 = vor.u32 %v7241_v24, %v6269_v40  ;;  %v6621_v25 = vld [vmem:[#allocation5 + $0xf50] sm:$0xf0] }
 0x159   :  { %3756 = vmatmul.bf16.vlgmr.msra.gmra.mxu2 %v8141_v39  ;;  %3769 = vmatmul.bf16.vlgmr.msra.gmra.mxu3 %v8145_v37  ;;  %v6400_v62 = vor.u32 %v7273_v55, %v6397_v17  ;;  %v7396_v11 = vpop.eup %7395  ;;  %v7297_v40 = vld [vmem:[#allocation5 + $0xe44] sm:$0xf]  ;;  %v6493_v55 = vld [vmem:[#allocation5 + $0xe50] sm:$0xf0] }
 0x15a   :  { %v4597_v9 = vmul.f32 %v7396_v11, %v8183_v60  ;;  %v7329_v19 = vld [vmem:[#allocation5 + $0xf44] sm:$0xf]  ;;  %vm4603_vm0 = vweird.f32 %v7396_v11  ;;  %v6496_v36 = vor.u32 %v7297_v40, %v6493_v55  ;;  %v6349_v53 = vld [vmem:[#allocation5 + $0xd30] sm:$0xf0] }
 0x15b   :  { %3788 = vmatpush.bf16.msrb.mxu1 %v6432_v5  ;;  %3775 = vmatpush.bf16.msrb.mxu0 %v6304_v1  ;;  %v6528_v1 = vor.u32 %v7305_v43, %v6525_v16  ;;  %v6656_v5 = vor.u32 %v7337_v7, %v6653_v2  ;;  %v6240_v7 = vor.u32 %v7233_v48, %v6237_v27  ;;  %vm8191_vm2 = vmor %vm4602_vm1, %vm4603_vm0  ;;  %v7257_v60 = vld [vmem:[#allocation5 + $0xd04] sm:$0xf]  ;;  %v6205_v27 = vld [vmem:[#allocation5 + $0xc10] sm:$0xf0] }
 0x15c   :  { %3801 = vmatpush.bf16.msrb.mxu2 %v6560_v46  ;;  %3814 = vmatpush.bf16.msrb.mxu3 %v6688_v51  ;;  %v6253_v46 = vld [vmem:[#allocation5 + $0xc70] sm:$0xf0]  ;;  %v6384_v51 = vor.u32 %v7269_v31, %v6381_v61  ;;  %v4598_v24 = vmul.f32 %v7396_v11, %v4597_v9  ;;  %v6624_v2 = vor.u32 %v7329_v19, %v6621_v25  ;;  %v7229_v61 = vld [vmem:[#allocation5 + $0xc24] sm:$0xf]  ;;  %v8450_v19 = vld [vmem:[#allocation18_spill] sm:$0xff] }
 0x15d   :  { %v6256_v20 = vor.u32 %v7237_v3, %v6253_v46  ;;  %v7261_v3 = vld [vmem:[#allocation5 + $0xd24] sm:$0xf]  ;;  %v6477_v9 = vld [vmem:[#allocation5 + $0xe30] sm:$0xf0]  ;;  %v5043_v46 = vld [vmem:[#allocation5 + $0x2e8] sm:$0xf] }
 0x15e   :  { %v4599_v17 = vmul.f32 0.5, %v4598_v24  ;;  %v8449_v40 = vld [vmem:[#allocation17_spill] sm:$0xff] }
 0x15f   :  { %3789 = vmatpush.bf16.msrb.mxu1 %v6416_v56  ;;  %3776 = vmatpush.bf16.msrb.mxu0 %v6288_v33  ;;  %v6512_v33 = vor.u32 %v7301_v63, %v6509_v44  ;;  %v6637_v56 = vld [vmem:[#allocation5 + $0xf70] sm:$0xf0]  ;;  %v3562_v16 = vpop.f32.mrf.mxu3  ;;  %v6352_v44 = vor.u32 %v7261_v3, %v6349_v53  ;;  %v6904_v3 = vld [vmem:[#allocation5 + $0x1f4] sm:$0xf0] }
 0x160   :  { %3802 = vmatpush.bf16.msrb.mxu2 %v6544_v57  ;;  %3815 = vmatpush.bf16.msrb.mxu3 %v6672_v21  ;;  %v6640_v50 = vor.u32 %v7333_v58, %v6637_v56  ;;  %v7265_v57 = vld [vmem:[#allocation5 + $0xd44] sm:$0xf]  ;;  %v6365_v21 = vld [vmem:[#allocation5 + $0xd50] sm:$0xf0]  ;;  %v3549_v43 = vpop.f32.mrf.mxu2 }
 0x161   :  { %v6368_v45 = vor.u32 %v7265_v57, %v6365_v21  ;;  %v7293_v58 = vld [vmem:[#allocation5 + $0xe24] sm:$0xf]  ;;  %v6333_v56 = vld [vmem:[#allocation5 + $0xd10] sm:$0xf0]  ;;  %v8448_v21 = vld [vmem:[#allocation16_spill] sm:$0xff] }
 0x162   :  { %v7289_v57 = vld [vmem:[#allocation5 + $0xe04] sm:$0xf] }
 0x163   :  { %3790 = vmatpush.bf16.msrb.mxu1 %v6400_v62  ;;  %3777 = vmatpush.bf16.msrb.mxu0 %v6272_v34  ;;  %v3550_v34 = vadd.f32 %v3549_v43, %v3537_v22  ;;  %v3525_v62 = vpop.f32.mrf.mxu0  ;;  %v7325_v22 = vld [vmem:[#allocation5 + $0xf24] sm:$0xf]  ;;  %v6461_v43 = vld [vmem:[#allocation5 + $0xe10] sm:$0xf0] }
 0x164   :  { %3803 = vmatpush.bf16.msrb.mxu2 %v6528_v1  ;;  %3816 = vmatpush.bf16.msrb.mxu3 %v6656_v5  ;;  %v3538_v1 = vpop.f32.mrf.mxu1  ;;  %v4600_v5 = vsub.f32 1.5, %v4599_v17  ;;  %v6480_v17 = vor.u32 %v7293_v58, %v6477_v9  ;;  %v6968_v58 = vld [vmem:[#allocation5 + $0x3f4] sm:$0xf0] }
 0x165   :  { %v8195_v31 = vadd.f32 %v3562_v16, %v3550_v34  ;;  %v7321_v16 = vld [vmem:[#allocation5 + $0xf04] sm:$0xf]  ;;  %v6336_v1 = vor.u32 %v7257_v60, %v6333_v56  ;;  %v8452_v9 = vld [vmem:[#allocation23_spill] sm:$0xff]  ;;  %v4771_v60 = vld [vmem:[#allocation5 + $0xc8] sm:$0xf] }
 0x166   :  { %v4601_v63 = vmul.f32 %v7396_v11, %v4600_v5  ;;  %v6872_v5 = vld [vmem:[#allocation5 + $0xf4] sm:$0xf0] }
 0x167   :  { %3791 = vmatpush.bf16.msrb.mxu1 %v6384_v51  ;;  %3778 = vmatpush.bf16.msrb.mxu0 %v6256_v20  ;;  %v6221_v51 = vld [vmem:[#allocation5 + $0xc30] sm:$0xf0]  ;;  %v3564_v62 = vpop.f32.mrf.mxu3  ;;  %v6868_v56 = vld [vmem:[#allocation5 + $0xd4] sm:$0xf0] }
 0x168   :  { %3804 = vmatpush.bf16.msrb.mxu2 %v6512_v33  ;;  %3817 = vmatpush.bf16.msrb.mxu3 %v6640_v50  ;;  %v6605_v33 = vld [vmem:[#allocation5 + $0xf30] sm:$0xf0]  ;;  %v8199_v48 = vsel %vm8191_vm2, %v7396_v11, %v4601_v63  ;;  %v6224_v20 = vor.u32 %v7229_v61, %v6221_v51  ;;  %v7225_v50 = vld [vmem:[#allocation5 + $0xc04] sm:$0xf]  ;;  %v3551_v34 = vpop.f32.mrf.mxu2  ;;  %v6936_v61 = vld [vmem:[#allocation5 + $0x2f4] sm:$0xf0] }
 0x169   :  { %v4606_v24 = vmul.f32 %v8199_v48, %v8448_v21  ;;  %v4607_v55 = vmul.f32 %v8199_v48, %v8449_v40  ;;  %v4608_v25 = vmul.f32 %v8199_v48, %v8450_v19  ;;  %v4609_v11 = vmul.f32 %v8199_v48, %v7774_v15  ;;  %v8451_v51 = vld [vmem:[#allocation22_spill] sm:$0xff]  ;;  %v6900_v40 = vld [vmem:[#allocation5 + $0x1d4] sm:$0xf0] }
 0x16a   :  { %v4610_v53 = vmul.f32 %v8199_v48, %v7847_v12  ;;  %v4611_v15 = vmul.f32 %v8199_v48, %v8451_v51  ;;  %v6208_v63 = vor.u32 %v7225_v50, %v6205_v27  ;;  %v4612_v12 = vmul.f32 %v8199_v48, %v8452_v9  ;;  %v6932_v19 = vld [vmem:[#allocation5 + $0x2d4] sm:$0xf0] }
 0x16b   :  { %3792 = vmatpush.bf16.msrb.mxu1 %v6368_v45  ;;  %3779 = vmatpush.bf16.msrb.mxu0 %v6240_v7  ;;  %v6589_v45 = vld [vmem:[#allocation5 + $0xf10] sm:$0xf0]  ;;  %v4787_v7 = vld [vmem:[#allocation5 + $0xe8] sm:$0xf]  ;;  %4622 = vst [vmem:[%s8368_s5] sm:$0xff] %v4606_v24  ;;  %v4613_v21 = vmul.f32 %v8199_v48, %v7912_v52  ;;  %v6896_v34 = vld [vmem:[#allocation5 + $0x1b4] sm:$0xf0]  ;;  %v4618_v62 = vmul.f32 %v8199_v48, %v8104_v8 }
 0x16c   :  { %3805 = vmatpush.bf16.msrb.mxu2 %v6496_v36  ;;  %3818 = vmatpush.bf16.msrb.mxu3 %v6624_v2  ;;  %v6608_v36 = vor.u32 %v7325_v22, %v6605_v33  ;;  %v4915_v2 = vld [vmem:[#allocation5 + $0x1e8] sm:$0xf]  ;;  %4623 = vst [vmem:[%s8368_s5 + $0x8] sm:$0xff] %v4607_v55  ;;  %v6464_v22 = vor.u32 %v7289_v57, %v6461_v43  ;;  %v6964_v43 = vld [vmem:[#allocation5 + $0x3d4] sm:$0xf0] }
 0x16d   :  { %4624 = vst [vmem:[%s8368_s5 + $0x10] sm:$0xff] %v4608_v25  ;;  %v4916_v33 = vor.u32 %v6904_v3, %v4915_v2  ;;  %v6592_v50 = vor.u32 %v7321_v16, %v6589_v45  ;;  %v4788_v27 = vor.u32 %v6872_v5, %v4787_v7  ;;  %v4899_v24 = vld [vmem:[#allocation5 + $0x1c8] sm:$0xf]  ;;  %v5044_v57 = vor.u32 %v6936_v61, %v5043_v46  ;;  %v6864_v45 = vld [vmem:[#allocation5 + $0xb4] sm:$0xf0] }
 0x16e   :  { %4625 = vst [vmem:[%s8368_s5 + $0x18] sm:$0xff] %v4609_v11  ;;  %v5027_v55 = vld [vmem:[#allocation5 + $0x2c8] sm:$0xf]  ;;  %v4615_v25 = vmul.f32 %v8199_v48, %v8075_v13  ;;  %v4617_v13 = vmul.f32 %v8199_v48, %v8097_v47  ;;  %v4772_v11 = vor.u32 %v6868_v56, %v4771_v60  ;;  %v6928_v2 = vld [vmem:[#allocation5 + $0x2b4] sm:$0xf0]  ;;  %v4619_v3 = vmul.f32 %v8199_v48, %v8114_v29 }
 0x16f   :  { %3793 = vmatpush.bf16.msrb.mxu1 %v6352_v44  ;;  %v5171_v44 = vld [vmem:[#allocation5 + $0x3e8] sm:$0xf]  ;;  %3780 = vmatpush.bf16.msrb.mxu0 %v6224_v20  ;;  %v4614_v20 = vmul.f32 %v8199_v48, %v8054_v35  ;;  %4626 = vst [vmem:[%s8368_s5 + $0x20] sm:$0xff] %v4610_v53  ;;  %v4616_v35 = vmul.f32 %v8199_v48, %v8084_v54  ;;  %v6960_v53 = vld [vmem:[#allocation5 + $0x3b4] sm:$0xf0] }
 0x170   :  { %3806 = vmatpush.bf16.msrb.mxu2 %v6480_v17  ;;  %3819 = vmatpush.bf16.msrb.mxu3 %v6608_v36  ;;  %v5172_v52 = vor.u32 %v6968_v58, %v5171_v44  ;;  %4627 = vst [vmem:[%s8368_s5 + $0x28] sm:$0xff] %v4611_v15  ;;  %v5155_v17 = vld [vmem:[#allocation5 + $0x3c8] sm:$0xf]  ;;  %v4900_v36 = vor.u32 %v6900_v40, %v4899_v24  ;;  %v6860_v46 = vld [vmem:[#allocation5 + $0x94] sm:$0xf0] }
 0x171   :  { %4628 = vst [vmem:[%s8368_s5 + $0x30] sm:$0xff] %v4612_v12  ;;  %v4755_v16 = vld [vmem:[#allocation5 + $0xa8] sm:$0xf]  ;;  %v5028_v47 = vor.u32 %v6932_v19, %v5027_v55  ;;  %v4620_v5 = vmul.f32 %v8199_v48, %v8116_v10  ;;  %v4621_v61 = vmul.f32 %v8199_v48, %v8123_v23  ;;  %v6924_v12 = vld [vmem:[#allocation5 + $0x294] sm:$0xf0] }
 0x172   :  { %4629 = vst [vmem:[%s8368_s5 + $0x38] sm:$0xff] %v4613_v21  ;;  %v4883_v54 = vld [vmem:[#allocation5 + $0x1a8] sm:$0xf]  ;;  %v4756_v10 = vor.u32 %v6864_v45, %v4755_v16  ;;  %v6956_v60 = vld [vmem:[#allocation5 + $0x394] sm:$0xf0] }
 0x173   :  { %3794 = vmatpush.bf16.msrb.mxu1 %v6336_v1  ;;  %3781 = vmatpush.bf16.msrb.mxu0 %v6208_v63  ;;  %4630 = vst [vmem:[%s8368_s5 + $0x40] sm:$0xff] %v4614_v20  ;;  %v5156_v1 = vor.u32 %v6964_v43, %v5155_v17  ;;  %v5011_v7 = vld [vmem:[#allocation5 + $0x2a8] sm:$0xf]  ;;  %v4884_v51 = vor.u32 %v6896_v34, %v4883_v54  ;;  %v6892_v63 = vld [vmem:[#allocation5 + $0x194] sm:$0xf0]  ;;  %v3575_v9 = vpop.f32.mrf.mxu0  ;;  %v3588_v23 = vpop.f32.mrf.mxu1 }
 0x174   :  { %3807 = vmatpush.bf16.msrb.mxu2 %v6464_v22  ;;  %3820 = vmatpush.bf16.msrb.mxu3 %v6592_v50  ;;  %4631 = vst [vmem:[%s8368_s5 + $0x48] sm:$0xff] %v4615_v25  ;;  %v5139_v8 = vld [vmem:[#allocation5 + $0x3a8] sm:$0xf]  ;;  %v5012_v44 = vor.u32 %v6928_v2, %v5011_v7  ;;  %v3576_v22 = vadd.f32 %v3575_v9, %v8195_v31  ;;  %v6856_v24 = vld [vmem:[#allocation5 + $0x74] sm:$0xf0] }
 0x175   :  { %4632 = vst [vmem:[%s8368_s5 + $0x50] sm:$0xff] %v4616_v35  ;;  %v4739_v29 = vld [vmem:[#allocation5 + $0x88] sm:$0xf]  ;;  %v5140_v58 = vor.u32 %v6960_v53, %v5139_v8  ;;  %v6920_v55 = vld [vmem:[#allocation5 + $0x274] sm:$0xf0] }
 0x176   :  { %3782 = vmatmul.bf16.vlgmr.msrb.gmra.mxu0 %v8155_v6  ;;  %3795 = vmatmul.bf16.vlgmr.msrb.gmra.mxu1 %v8159_v41  ;;  %4633 = vst [vmem:[%s8368_s5 + $0x58] sm:$0xff] %v4617_v13  ;;  %v4867_v15 = vld [vmem:[#allocation5 + $0x188] sm:$0xf]  ;;  %v3589_v56 = vadd.f32 %v3588_v23, %v3576_v22  ;;  %v4740_v21 = vor.u32 %v6860_v46, %v4739_v29  ;;  %v6952_v25 = vld [vmem:[#allocation5 + $0x374] sm:$0xf0] }
 0x177   :  { %3839 = vmatpush.bf16.msra.mxu1 %v4916_v33  ;;  %3826 = vmatpush.bf16.msra.mxu0 %v4788_v27  ;;  %4634 = vst [vmem:[%s8368_s5 + $0x60] sm:$0xff] %v4618_v62  ;;  %v4995_v48 = vld [vmem:[#allocation5 + $0x288] sm:$0xf]  ;;  %v4868_v50 = vor.u32 %v6892_v63, %v4867_v15  ;;  %v6852_v13 = vld [vmem:[#allocation5 + $0x54] sm:$0xf0] }
 0x178   :  { %3852 = vmatpush.bf16.msra.mxu2 %v5044_v57  ;;  %3865 = vmatpush.bf16.msra.mxu3 %v5172_v52  ;;  %4635 = vst [vmem:[%s8368_s5 + $0x68] sm:$0xff] %v4619_v3  ;;  %v5123_v33 = vld [vmem:[#allocation5 + $0x388] sm:$0xf]  ;;  %v4996_v31 = vor.u32 %v6924_v12, %v4995_v48  ;;  %v6888_v57 = vld [vmem:[#allocation5 + $0x174] sm:$0xf0] }
 0x179   :  { %3808 = vmatmul.bf16.vlgmr.msrb.gmra.mxu2 %v8163_v49  ;;  %3821 = vmatmul.bf16.vlgmr.msrb.gmra.mxu3 %v8167_v0  ;;  %4636 = vst [vmem:[%s8368_s5 + $0x70] sm:$0xff] %v4620_v5  ;;  %v4723_v27 = vld [vmem:[#allocation5 + $0x68] sm:$0xf]  ;;  %v5124_v40 = vor.u32 %v6956_v60, %v5123_v33  ;;  %v6916_v2 = vld [vmem:[#allocation5 + $0x254] sm:$0xf0] }
 0x17a   :  { %4637 = vst [vmem:[%s8368_s5 + $0x78] sm:$0xff] %v4621_v61  ;;  %v4851_v20 = vld [vmem:[#allocation5 + $0x168] sm:$0xf]  ;;  %v4724_v17 = vor.u32 %v6856_v24, %v4723_v27  ;;  %v6948_v8 = vld [vmem:[#allocation5 + $0x354] sm:$0xf0] }
 0x17b   :  { %3827 = vmatpush.bf16.msra.mxu0 %v4772_v11  ;;  %3840 = vmatpush.bf16.msra.mxu1 %v4900_v36  ;;  %v4979_v52 = vld [vmem:[#allocation5 + $0x268] sm:$0xf]  ;;  %v4852_v43 = vor.u32 %v6888_v57, %v4851_v20  ;;  %v3577_v34 = vpop.f32.mrf.mxu0  ;;  %v3590_v62 = vpop.f32.mrf.mxu1  ;;  %v6848_v61 = vld [vmem:[#allocation5 + $0x34] sm:$0xf0] }
 0x17c   :  { %3853 = vmatpush.bf16.msra.mxu2 %v5028_v47  ;;  %3866 = vmatpush.bf16.msra.mxu3 %v5156_v1  ;;  %v5107_v19 = vld [vmem:[#allocation5 + $0x368] sm:$0xf]  ;;  %v3601_v35 = vpop.f32.mrf.mxu2  ;;  %v3614_v16 = vpop.f32.mrf.mxu3  ;;  %v4980_v11 = vor.u32 %v6920_v55, %v4979_v52  ;;  %v6884_v1 = vld [vmem:[#allocation5 + $0x154] sm:$0xf0] }
 0x17d   :  { %v4707_v45 = vld [vmem:[#allocation5 + $0x48] sm:$0xf]  ;;  %v5108_v36 = vor.u32 %v6952_v25, %v5107_v19  ;;  %v3602_v54 = vadd.f32 %v3601_v35, %v3589_v56  ;;  %v6880_v63 = vld [vmem:[#allocation5 + $0x134] sm:$0xf0] }
 0x17e   :  { %v4835_v47 = vld [vmem:[#allocation5 + $0x148] sm:$0xf]  ;;  %v4708_v5 = vor.u32 %v6852_v13, %v4707_v45  ;;  %v6944_v23 = vld [vmem:[#allocation5 + $0x334] sm:$0xf0] }
 0x17f   :  { %3828 = vmatpush.bf16.msra.mxu0 %v4756_v10  ;;  %3841 = vmatpush.bf16.msra.mxu1 %v4884_v51  ;;  %v4963_v7 = vld [vmem:[#allocation5 + $0x248] sm:$0xf]  ;;  %v8286_v53 = vadd.f32 %v3614_v16, %v3602_v54  ;;  %v4836_v29 = vor.u32 %v6884_v1, %v4835_v47  ;;  %v6844_v56 = vld [vmem:[#allocation5 + $0x14] sm:$0xf0] }
 0x180   :  { %3854 = vmatpush.bf16.msra.mxu2 %v5012_v44  ;;  %3867 = vmatpush.bf16.msra.mxu3 %v5140_v58  ;;  %v5091_v3 = vld [vmem:[#allocation5 + $0x348] sm:$0xf]  ;;  %v4964_v10 = vor.u32 %v6916_v2, %v4963_v7  ;;  %v6912_v58 = vld [vmem:[#allocation5 + $0x234] sm:$0xf0] }
 0x181   :  { %v4691_v46 = vld [vmem:[#allocation5 + $0x28] sm:$0xf]  ;;  %v5092_v51 = vor.u32 %v6948_v8, %v5091_v3  ;;  %v6940_v57 = vld [vmem:[#allocation5 + $0x314] sm:$0xf0] }
 0x182   :  { %v4819_v15 = vld [vmem:[#allocation5 + $0x128] sm:$0xf]  ;;  %v4692_v12 = vor.u32 %v6848_v61, %v4691_v46  ;;  %v7000_v55 = vld [vmem:[#allocation5 + $0x4f4] sm:$0xf0] }
 0x183   :  { %3829 = vmatpush.bf16.msra.mxu0 %v4740_v21  ;;  %3842 = vmatpush.bf16.msra.mxu1 %v4868_v50  ;;  %v4947_v44 = vld [vmem:[#allocation5 + $0x228] sm:$0xf]  ;;  %v4820_v22 = vor.u32 %v6880_v63, %v4819_v15  ;;  %v6876_v50 = vld [vmem:[#allocation5 + $0x114] sm:$0xf0] }
 0x184   :  { %3855 = vmatpush.bf16.msra.mxu2 %v4996_v31  ;;  %3868 = vmatpush.bf16.msra.mxu3 %v5124_v40  ;;  %v5075_v9 = vld [vmem:[#allocation5 + $0x328] sm:$0xf]  ;;  %v3603_v33 = vpop.f32.mrf.mxu2  ;;  %v3616_v60 = vpop.f32.mrf.mxu3  ;;  %v4948_v27 = vor.u32 %v6912_v58, %v4947_v44  ;;  %v6908_v40 = vld [vmem:[#allocation5 + $0x214] sm:$0xf0] }
 0x185   :  { %v4675_v48 = vld [vmem:[#allocation5 + $0x8] sm:$0xf]  ;;  %v5076_v24 = vor.u32 %v6944_v23, %v5075_v9  ;;  %v7032_v25 = vld [vmem:[#allocation5 + $0x5f4] sm:$0xf0] }
 0x186   :  { %v4803_v21 = vld [vmem:[#allocation5 + $0x108] sm:$0xf]  ;;  %v7064_v16 = vld [vmem:[#allocation5 + $0x6f4] sm:$0xf0] }
 0x187   :  { %3830 = vmatpush.bf16.msra.mxu0 %v4724_v17  ;;  %3843 = vmatpush.bf16.msra.mxu1 %v4852_v43  ;;  %v4931_v31 = vld [vmem:[#allocation5 + $0x208] sm:$0xf]  ;;  %v4676_v43 = vor.u32 %v6844_v56, %v4675_v48  ;;  %v4804_v35 = vor.u32 %v6876_v50, %v4803_v21  ;;  %v7096_v13 = vld [vmem:[#allocation5 + $0x7f4] sm:$0xf0] }
 0x188   :  { %3856 = vmatpush.bf16.msra.mxu2 %v4980_v11  ;;  %3869 = vmatpush.bf16.msra.mxu3 %v5108_v36  ;;  %v5059_v20 = vld [vmem:[#allocation5 + $0x308] sm:$0xf]  ;;  %v4932_v11 = vor.u32 %v6908_v40, %v4931_v31  ;;  %v6996_v47 = vld [vmem:[#allocation5 + $0x4d4] sm:$0xf0] }
 0x189   :  { %v5299_v52 = vld [vmem:[#allocation5 + $0x4e8] sm:$0xf]  ;;  %v5060_v36 = vor.u32 %v6940_v57, %v5059_v20  ;;  %v7028_v3 = vld [vmem:[#allocation5 + $0x5d4] sm:$0xf0] }
 0x18a   :  { %v5427_v19 = vld [vmem:[#allocation5 + $0x5e8] sm:$0xf]  ;;  %v5300_v54 = vor.u32 %v7000_v55, %v5299_v52  ;;  %v7092_v46 = vld [vmem:[#allocation5 + $0x7d4] sm:$0xf0] }
 0x18b   :  { %3831 = vmatpush.bf16.msra.mxu0 %v4708_v5  ;;  %3844 = vmatpush.bf16.msra.mxu1 %v4836_v29  ;;  %v5555_v17 = vld [vmem:[#allocation5 + $0x6e8] sm:$0xf]  ;;  %v5428_v34 = vor.u32 %v7032_v25, %v5427_v19  ;;  %v7060_v5 = vld [vmem:[#allocation5 + $0x6d4] sm:$0xf0] }
 0x18c   :  { %3857 = vmatpush.bf16.msra.mxu2 %v4964_v10  ;;  %3870 = vmatpush.bf16.msra.mxu3 %v5092_v51  ;;  %v5683_v45 = vld [vmem:[#allocation5 + $0x7e8] sm:$0xf]  ;;  %v5556_v1 = vor.u32 %v7064_v16, %v5555_v17  ;;  %v6992_v15 = vld [vmem:[#allocation5 + $0x4b4] sm:$0xf0] }
 0x18d   :  { %v5283_v62 = vld [vmem:[#allocation5 + $0x4c8] sm:$0xf]  ;;  %v5684_v7 = vor.u32 %v7096_v13, %v5683_v45  ;;  %v7024_v9 = vld [vmem:[#allocation5 + $0x5b4] sm:$0xf0] }
 0x18e   :  { %v5411_v2 = vld [vmem:[#allocation5 + $0x5c8] sm:$0xf]  ;;  %v5284_v61 = vor.u32 %v6996_v47, %v5283_v62  ;;  %v7056_v48 = vld [vmem:[#allocation5 + $0x6b4] sm:$0xf0] }
 0x18f   :  { %3832 = vmatpush.bf16.msra.mxu0 %v4692_v12  ;;  %3845 = vmatpush.bf16.msra.mxu1 %v4820_v22  ;;  %v5539_v8 = vld [vmem:[#allocation5 + $0x6c8] sm:$0xf]  ;;  %v5412_v10 = vor.u32 %v7028_v3, %v5411_v2  ;;  %v7088_v22 = vld [vmem:[#allocation5 + $0x7b4] sm:$0xf0] }
 0x190   :  { %3858 = vmatpush.bf16.msra.mxu2 %v4948_v27  ;;  %3871 = vmatpush.bf16.msra.mxu3 %v5076_v24  ;;  %v5667_v29 = vld [vmem:[#allocation5 + $0x7c8] sm:$0xf]  ;;  %v5540_v63 = vor.u32 %v7060_v5, %v5539_v8  ;;  %v6988_v21 = vld [vmem:[#allocation5 + $0x494] sm:$0xf0] }
 0x191   :  { %v5267_v51 = vld [vmem:[#allocation5 + $0x4a8] sm:$0xf]  ;;  %v5668_v44 = vor.u32 %v7092_v46, %v5667_v29  ;;  %v7020_v20 = vld [vmem:[#allocation5 + $0x594] sm:$0xf0] }
 0x192   :  { %v5395_v58 = vld [vmem:[#allocation5 + $0x5a8] sm:$0xf]  ;;  %v5268_v33 = vor.u32 %v6992_v15, %v5267_v51  ;;  %v7052_v55 = vld [vmem:[#allocation5 + $0x694] sm:$0xf0] }
 0x193   :  { %3833 = vmatpush.bf16.msra.mxu0 %v4676_v43  ;;  %3846 = vmatpush.bf16.msra.mxu1 %v4804_v35  ;;  %v5523_v23 = vld [vmem:[#allocation5 + $0x6a8] sm:$0xf]  ;;  %v5396_v60 = vor.u32 %v7024_v9, %v5395_v58  ;;  %v3627_v24 = vpop.f32.mrf.mxu0  ;;  %v3640_v31 = vpop.f32.mrf.mxu1  ;;  %v7084_v25 = vld [vmem:[#allocation5 + $0x794] sm:$0xf0] }
 0x194   :  { %3859 = vmatpush.bf16.msra.mxu2 %v4932_v11  ;;  %3872 = vmatpush.bf16.msra.mxu3 %v5060_v36  ;;  %v5651_v12 = vld [vmem:[#allocation5 + $0x7a8] sm:$0xf]  ;;  %v5524_v50 = vor.u32 %v7056_v48, %v5523_v23  ;;  %v3641_v52 = vadd.f32 %v3640_v31, %v3627_v24  ;;  %v6984_v16 = vld [vmem:[#allocation5 + $0x474] sm:$0xf0] }
 0x195   :  { %v5251_v56 = vld [vmem:[#allocation5 + $0x488] sm:$0xf]  ;;  %v5652_v27 = vor.u32 %v7088_v22, %v5651_v12  ;;  %v7016_v36 = vld [vmem:[#allocation5 + $0x574] sm:$0xf0] }
 0x196   :  { %3834 = vmatmul.bf16.vlgmr.msra.gmra.mxu0 %v8443_v59  ;;  %3847 = vmatmul.bf16.vlgmr.msra.gmra.mxu1 %v8444_v32  ;;  %v5379_v40 = vld [vmem:[#allocation5 + $0x588] sm:$0xf]  ;;  %v5252_v17 = vor.u32 %v6988_v21, %v5251_v56  ;;  %v7080_v47 = vld [vmem:[#allocation5 + $0x774] sm:$0xf0] }
 0x197   :  { %3878 = vmatpush.bf16.msrb.mxu0 %v5300_v54  ;;  %3891 = vmatpush.bf16.msrb.mxu1 %v5428_v34  ;;  %v5507_v57 = vld [vmem:[#allocation5 + $0x688] sm:$0xf]  ;;  %v5380_v43 = vor.u32 %v7020_v20, %v5379_v40  ;;  %v7048_v34 = vld [vmem:[#allocation5 + $0x674] sm:$0xf0] }
 0x198   :  { %3904 = vmatpush.bf16.msrb.mxu2 %v5556_v1  ;;  %3917 = vmatpush.bf16.msrb.mxu3 %v5684_v7  ;;  %v5635_v19 = vld [vmem:[#allocation5 + $0x788] sm:$0xf]  ;;  %v5508_v45 = vor.u32 %v7052_v55, %v5507_v57  ;;  %v6980_v5 = vld [vmem:[#allocation5 + $0x454] sm:$0xf0] }
 0x199   :  { %3860 = vmatmul.bf16.vlgmr.msra.gmra.mxu2 %v8445_v14  ;;  %3873 = vmatmul.bf16.vlgmr.msra.gmra.mxu3 %v7803_v28  ;;  %v5235_v35 = vld [vmem:[#allocation5 + $0x468] sm:$0xf]  ;;  %v5636_v13 = vor.u32 %v7084_v25, %v5635_v19  ;;  %v7044_v58 = vld [vmem:[#allocation5 + $0x654] sm:$0xf0] }
 0x19a   :  { %v5363_v11 = vld [vmem:[#allocation5 + $0x568] sm:$0xf]  ;;  %v5236_v1 = vor.u32 %v6984_v16, %v5235_v35  ;;  %v7076_v23 = vld [vmem:[#allocation5 + $0x754] sm:$0xf0] }
 0x19b   :  { %3879 = vmatpush.bf16.msrb.mxu0 %v5284_v61  ;;  %3892 = vmatpush.bf16.msrb.mxu1 %v5412_v10  ;;  %v5491_v54 = vld [vmem:[#allocation5 + $0x668] sm:$0xf]  ;;  %v5364_v7 = vor.u32 %v7016_v36, %v5363_v11  ;;  %v3629_v10 = vpop.f32.mrf.mxu0  ;;  %v3642_v51 = vpop.f32.mrf.mxu1  ;;  %v7040_v31 = vld [vmem:[#allocation5 + $0x634] sm:$0xf0] }
 0x19c   :  { %3905 = vmatpush.bf16.msrb.mxu2 %v5540_v63  ;;  %3918 = vmatpush.bf16.msrb.mxu3 %v5668_v44  ;;  %v5619_v62 = vld [vmem:[#allocation5 + $0x768] sm:$0xf]  ;;  %v3653_v2 = vpop.f32.mrf.mxu2  ;;  %v3666_v3 = vpop.f32.mrf.mxu3  ;;  %v5492_v29 = vor.u32 %v7048_v34, %v5491_v54  ;;  %v7012_v63 = vld [vmem:[#allocation5 + $0x554] sm:$0xf0] }
 0x19d   :  { %v5219_v8 = vld [vmem:[#allocation5 + $0x448] sm:$0xf]  ;;  %v5620_v46 = vor.u32 %v7080_v47, %v5619_v62  ;;  %v3654_v61 = vadd.f32 %v3653_v2, %v3641_v52  ;;  %v7072_v20 = vld [vmem:[#allocation5 + $0x734] sm:$0xf0] }
 0x19e   :  { %v5347_v15 = vld [vmem:[#allocation5 + $0x548] sm:$0xf]  ;;  %v5220_v12 = vor.u32 %v6980_v5, %v5219_v8  ;;  %v7004_v35 = vld [vmem:[#allocation5 + $0x514] sm:$0xf0] }
 0x19f   :  { %3880 = vmatpush.bf16.msrb.mxu0 %v5268_v33  ;;  %3893 = vmatpush.bf16.msrb.mxu1 %v5396_v60  ;;  %v5475_v44 = vld [vmem:[#allocation5 + $0x648] sm:$0xf]  ;;  %v8292_v48 = vadd.f32 %v3666_v3, %v3654_v61  ;;  %v5348_v22 = vor.u32 %v7012_v63, %v5347_v15  ;;  %v6976_v60 = vld [vmem:[#allocation5 + $0x434] sm:$0xf0] }
 0x1a0   :  { %3906 = vmatpush.bf16.msrb.mxu2 %v5524_v50  ;;  %3919 = vmatpush.bf16.msrb.mxu3 %v5652_v27  ;;  %v5603_v9 = vld [vmem:[#allocation5 + $0x748] sm:$0xf]  ;;  %v5476_v56 = vor.u32 %v7044_v58, %v5475_v44  ;;  %v7008_v27 = vld [vmem:[#allocation5 + $0x534] sm:$0xf0] }
 0x1a1   :  { %v5203_v33 = vld [vmem:[#allocation5 + $0x428] sm:$0xf]  ;;  %v5604_v21 = vor.u32 %v7076_v23, %v5603_v9  ;;  %v7036_v11 = vld [vmem:[#allocation5 + $0x614] sm:$0xf0] }
 0x1a2   :  { %v5331_v50 = vld [vmem:[#allocation5 + $0x528] sm:$0xf]  ;;  %v5204_v52 = vor.u32 %v6976_v60, %v5203_v33  ;;  %v7068_v54 = vld [vmem:[#allocation5 + $0x714] sm:$0xf0] }
 0x1a3   :  { %3881 = vmatpush.bf16.msrb.mxu0 %v5252_v17  ;;  %3894 = vmatpush.bf16.msrb.mxu1 %v5380_v43  ;;  %v5459_v24 = vld [vmem:[#allocation5 + $0x628] sm:$0xf]  ;;  %v5332_v55 = vor.u32 %v7008_v27, %v5331_v50  ;;  %v6972_v17 = vld [vmem:[#allocation5 + $0x414] sm:$0xf0] }
 0x1a4   :  { %3907 = vmatpush.bf16.msrb.mxu2 %v5508_v45  ;;  %3920 = vmatpush.bf16.msrb.mxu3 %v5636_v13  ;;  %v5587_v40 = vld [vmem:[#allocation5 + $0x728] sm:$0xf]  ;;  %v3655_v19 = vpop.f32.mrf.mxu2  ;;  %v3668_v25 = vpop.f32.mrf.mxu3  ;;  %v5460_v16 = vor.u32 %v7040_v31, %v5459_v24  ;;  %v7128_v62 = vld [vmem:[#allocation5 + $0x8f4] sm:$0xf0] }
 0x1a5   :  { %v5187_v57 = vld [vmem:[#allocation5 + $0x408] sm:$0xf]  ;;  %v5588_v45 = vor.u32 %v7072_v20, %v5587_v40  ;;  %v7192_v8 = vld [vmem:[#allocation5 + $0xaf4] sm:$0xf0] }
 0x1a6   :  { %v5315_v43 = vld [vmem:[#allocation5 + $0x508] sm:$0xf]  ;;  %v5188_v2 = vor.u32 %v6972_v17, %v5187_v57  ;;  %v7124_v63 = vld [vmem:[#allocation5 + $0x8d4] sm:$0xf0] }
 0x1a7   :  { %3882 = vmatpush.bf16.msrb.mxu0 %v5236_v1  ;;  %3895 = vmatpush.bf16.msrb.mxu1 %v5364_v7  ;;  %v5443_v13 = vld [vmem:[#allocation5 + $0x608] sm:$0xf]  ;;  %v7160_v1 = vld [vmem:[#allocation5 + $0x9f4] sm:$0xf0]  ;;  %v5316_v3 = vor.u32 %v7004_v35, %v5315_v43 }
 0x1a8   :  { %3908 = vmatpush.bf16.msrb.mxu2 %v5492_v29  ;;  %3921 = vmatpush.bf16.msrb.mxu3 %v5620_v46  ;;  %v5571_v36 = vld [vmem:[#allocation5 + $0x708] sm:$0xf]  ;;  %v7224_v29 = vld [vmem:[#allocation5 + $0xbf4] sm:$0xf0]  ;;  %v5444_v46 = vor.u32 %v7036_v11, %v5443_v13 }
 0x1a9   :  { %v5811_v34 = vld [vmem:[#allocation5 + $0x8e8] sm:$0xf]  ;;  %v5572_v61 = vor.u32 %v7068_v54, %v5571_v36  ;;  %v7156_v23 = vld [vmem:[#allocation5 + $0x9d4] sm:$0xf0] }
 0x1aa   :  { %v5939_v47 = vld [vmem:[#allocation5 + $0x9e8] sm:$0xf]  ;;  %v5812_v10 = vor.u32 %v7128_v62, %v5811_v34  ;;  %v7220_v60 = vld [vmem:[#allocation5 + $0xbd4] sm:$0xf0] }
 0x1ab   :  { %3883 = vmatpush.bf16.msrb.mxu0 %v5220_v12  ;;  %3896 = vmatpush.bf16.msrb.mxu1 %v5348_v22  ;;  %v6067_v7 = vld [vmem:[#allocation5 + $0xae8] sm:$0xf]  ;;  %v5940_v51 = vor.u32 %v7160_v1, %v5939_v47  ;;  %v7188_v22 = vld [vmem:[#allocation5 + $0xad4] sm:$0xf0] }
 0x1ac   :  { %3909 = vmatpush.bf16.msrb.mxu2 %v5476_v56  ;;  %3922 = vmatpush.bf16.msrb.mxu3 %v5604_v21  ;;  %v6195_v5 = vld [vmem:[#allocation5 + $0xbe8] sm:$0xf]  ;;  %v6068_v44 = vor.u32 %v7192_v8, %v6067_v7  ;;  %v7120_v27 = vld [vmem:[#allocation5 + $0x8b4] sm:$0xf0] }
 0x1ad   :  { %v5795_v15 = vld [vmem:[#allocation5 + $0x8c8] sm:$0xf]  ;;  %v6196_v58 = vor.u32 %v7224_v29, %v6195_v5  ;;  %v7152_v20 = vld [vmem:[#allocation5 + $0x9b4] sm:$0xf0] }
 0x1ae   :  { %v5923_v9 = vld [vmem:[#allocation5 + $0x9c8] sm:$0xf]  ;;  %v5796_v56 = vor.u32 %v7124_v63, %v5795_v15  ;;  %v7216_v19 = vld [vmem:[#allocation5 + $0xbb4] sm:$0xf0] }
 0x1af   :  { %3884 = vmatpush.bf16.msrb.mxu0 %v5204_v52  ;;  %3897 = vmatpush.bf16.msrb.mxu1 %v5332_v55  ;;  %v6051_v12 = vld [vmem:[#allocation5 + $0xac8] sm:$0xf]  ;;  %v5924_v21 = vor.u32 %v7156_v23, %v5923_v9  ;;  %v7184_v52 = vld [vmem:[#allocation5 + $0xab4] sm:$0xf0] }
 0x1b0   :  { %3910 = vmatpush.bf16.msrb.mxu2 %v5460_v16  ;;  %3923 = vmatpush.bf16.msrb.mxu3 %v5588_v45  ;;  %v6179_v33 = vld [vmem:[#allocation5 + $0xbc8] sm:$0xf]  ;;  %v6052_v24 = vor.u32 %v7188_v22, %v6051_v12  ;;  %v7116_v35 = vld [vmem:[#allocation5 + $0x894] sm:$0xf0] }
 0x1b1   :  { %v5779_v50 = vld [vmem:[#allocation5 + $0x8a8] sm:$0xf]  ;;  %v6180_v31 = vor.u32 %v7220_v60, %v6179_v33  ;;  %v7148_v54 = vld [vmem:[#allocation5 + $0x994] sm:$0xf0] }
 0x1b2   :  { %v5907_v40 = vld [vmem:[#allocation5 + $0x9a8] sm:$0xf]  ;;  %v5780_v25 = vor.u32 %v7120_v27, %v5779_v50  ;;  %v7180_v47 = vld [vmem:[#allocation5 + $0xa94] sm:$0xf0] }
 0x1b3   :  { %3885 = vmatpush.bf16.msrb.mxu0 %v5188_v2  ;;  %3898 = vmatpush.bf16.msrb.mxu1 %v5316_v3  ;;  %v6035_v57 = vld [vmem:[#allocation5 + $0xaa8] sm:$0xf]  ;;  %v5908_v17 = vor.u32 %v7152_v20, %v5907_v40  ;;  %v3679_v13 = vpop.f32.mrf.mxu0  ;;  %v3692_v11 = vpop.f32.mrf.mxu1  ;;  %v7212_v7 = vld [vmem:[#allocation5 + $0xb94] sm:$0xf0] }
 0x1b4   :  { %3911 = vmatpush.bf16.msrb.mxu2 %v5444_v46  ;;  %3924 = vmatpush.bf16.msrb.mxu3 %v5572_v61  ;;  %v6163_v55 = vld [vmem:[#allocation5 + $0xba8] sm:$0xf]  ;;  %v6036_v16 = vor.u32 %v7184_v52, %v6035_v57  ;;  %v3680_v62 = vadd.f32 %v3679_v13, %v8292_v48  ;;  %v7112_v29 = vld [vmem:[#allocation5 + $0x874] sm:$0xf0] }
 0x1b5   :  { %v5763_v43 = vld [vmem:[#allocation5 + $0x888] sm:$0xf]  ;;  %v6164_v45 = vor.u32 %v7216_v19, %v6163_v55  ;;  %v7176_v63 = vld [vmem:[#allocation5 + $0xa74] sm:$0xf0] }
 0x1b6   :  { %3886 = vmatmul.bf16.vlgmr.msrb.gmra.mxu0 %v7945_v26  ;;  %3899 = vmatmul.bf16.vlgmr.msrb.gmra.mxu1 %v7968_v30  ;;  %v5891_v36 = vld [vmem:[#allocation5 + $0x988] sm:$0xf]  ;;  %v3693_v2 = vadd.f32 %v3692_v11, %v3680_v62  ;;  %v5764_v3 = vor.u32 %v7116_v35, %v5763_v43  ;;  %v7208_v48 = vld [vmem:[#allocation5 + $0xb74] sm:$0xf0] }
 0x1b7   :  { %3930 = vmatpush.bf16.msra.mxu0 %v5812_v10  ;;  %3943 = vmatpush.bf16.msra.mxu1 %v5940_v51  ;;  %v6019_v34 = vld [vmem:[#allocation5 + $0xa88] sm:$0xf]  ;;  %v5892_v8 = vor.u32 %v7148_v54, %v5891_v36  ;;  %v7144_v51 = vld [vmem:[#allocation5 + $0x974] sm:$0xf0] }
 0x1b8   :  { %3956 = vmatpush.bf16.msra.mxu2 %v6068_v44  ;;  %3969 = vmatpush.bf16.msra.mxu3 %v6196_v58  ;;  %v6147_v1 = vld [vmem:[#allocation5 + $0xb88] sm:$0xf]  ;;  %v6020_v46 = vor.u32 %v7180_v47, %v6019_v34  ;;  %v7108_v33 = vld [vmem:[#allocation5 + $0x854] sm:$0xf0] }
 0x1b9   :  { %3912 = vmatmul.bf16.vlgmr.msrb.gmra.mxu2 %v7974_v4  ;;  %3925 = vmatmul.bf16.vlgmr.msrb.gmra.mxu3 %v7992_v38  ;;  %v5747_v5 = vld [vmem:[#allocation5 + $0x868] sm:$0xf]  ;;  %v6148_v61 = vor.u32 %v7212_v7, %v6147_v1  ;;  %v7172_v20 = vld [vmem:[#allocation5 + $0xa54] sm:$0xf0] }
 0x1ba   :  { %v5875_v10 = vld [vmem:[#allocation5 + $0x968] sm:$0xf]  ;;  %v5748_v58 = vor.u32 %v7112_v29, %v5747_v5  ;;  %v7204_v52 = vld [vmem:[#allocation5 + $0xb54] sm:$0xf0] }
 0x1bb   :  { %3931 = vmatpush.bf16.msra.mxu0 %v5796_v56  ;;  %3944 = vmatpush.bf16.msra.mxu1 %v5924_v21  ;;  %v6003_v15 = vld [vmem:[#allocation5 + $0xa68] sm:$0xf]  ;;  %v5876_v9 = vor.u32 %v7144_v51, %v5875_v10  ;;  %v3681_v50 = vpop.f32.mrf.mxu0  ;;  %v3694_v27 = vpop.f32.mrf.mxu1  ;;  %v7104_v43 = vld [vmem:[#allocation5 + $0x834] sm:$0xf0] }
 0x1bc   :  { %3957 = vmatpush.bf16.msra.mxu2 %v6052_v24  ;;  %3970 = vmatpush.bf16.msra.mxu3 %v6180_v31  ;;  %v6131_v44 = vld [vmem:[#allocation5 + $0xb68] sm:$0xf]  ;;  %v3705_v23 = vpop.f32.mrf.mxu2  ;;  %v3718_v12 = vpop.f32.mrf.mxu3  ;;  %v6004_v60 = vor.u32 %v7176_v63, %v6003_v15  ;;  %v7140_v31 = vld [vmem:[#allocation5 + $0x954] sm:$0xf0] }
 0x1bd   :  { %v5731_v22 = vld [vmem:[#allocation5 + $0x848] sm:$0xf]  ;;  %v6132_v56 = vor.u32 %v7208_v48, %v6131_v44  ;;  %v3706_v21 = vadd.f32 %v3705_v23, %v3693_v2  ;;  %v7136_v13 = vld [vmem:[#allocation5 + $0x934] sm:$0xf0] }
 0x1be   :  { %v5859_v24 = vld [vmem:[#allocation5 + $0x948] sm:$0xf]  ;;  %v5732_v19 = vor.u32 %v7108_v33, %v5731_v22  ;;  %v7168_v36 = vld [vmem:[#allocation5 + $0xa34] sm:$0xf0] }
 0x1bf   :  { %3932 = vmatpush.bf16.msra.mxu0 %v5780_v25  ;;  %3945 = vmatpush.bf16.msra.mxu1 %v5908_v17  ;;  %v5987_v40 = vld [vmem:[#allocation5 + $0xa48] sm:$0xf]  ;;  %v8299_v55 = vadd.f32 %v3718_v12, %v3706_v21  ;;  %v5860_v25 = vor.u32 %v7140_v31, %v5859_v24  ;;  %v7200_v34 = vld [vmem:[#allocation5 + $0xb34] sm:$0xf0] }
 0x1c0   :  { %3958 = vmatpush.bf16.msra.mxu2 %v6036_v16  ;;  %3971 = vmatpush.bf16.msra.mxu3 %v6164_v45  ;;  %v6115_v57 = vld [vmem:[#allocation5 + $0xb48] sm:$0xf]  ;;  %v5988_v35 = vor.u32 %v7172_v20, %v5987_v40  ;;  %v7132_v5 = vld [vmem:[#allocation5 + $0x914] sm:$0xf0] }
 0x1c1   :  { %v5715_v17 = vld [vmem:[#allocation5 + $0x828] sm:$0xf]  ;;  %v6116_v16 = vor.u32 %v7204_v52, %v6115_v57  ;;  %v7164_v10 = vld [vmem:[#allocation5 + $0xa14] sm:$0xf0] }
 0x1c2   :  { %v5843_v45 = vld [vmem:[#allocation5 + $0x928] sm:$0xf]  ;;  %v5716_v47 = vor.u32 %v7104_v43, %v5715_v17  ;;  %v7196_v15 = vld [vmem:[#allocation5 + $0xb14] sm:$0xf0] }
 0x1c3   :  { %3933 = vmatpush.bf16.msra.mxu0 %v5764_v3  ;;  %3946 = vmatpush.bf16.msra.mxu1 %v5892_v8  ;;  %v5971_v11 = vld [vmem:[#allocation5 + $0xa28] sm:$0xf]  ;;  %v5844_v1 = vor.u32 %v7136_v13, %v5843_v45  ;;  %v7100_v3 = vld [vmem:[#allocation5 + $0x814] sm:$0xf0] }
 0x1c4   :  { %3959 = vmatpush.bf16.msra.mxu2 %v6020_v46  ;;  %3972 = vmatpush.bf16.msra.mxu3 %v6148_v61  ;;  %v6099_v54 = vld [vmem:[#allocation5 + $0xb28] sm:$0xf]  ;;  %v3707_v7 = vpop.f32.mrf.mxu2  ;;  %v3720_v2 = vpop.f32.mrf.mxu3  ;;  %v5972_v29 = vor.u32 %v7168_v36, %v5971_v11  ;;  %v7256_v44 = vld [vmem:[#allocation5 + $0xcf4] sm:$0xf0] }
 0x1c5   :  { %v5699_v62 = vld [vmem:[#allocation5 + $0x808] sm:$0xf]  ;;  %v6100_v46 = vor.u32 %v7200_v34, %v6099_v54  ;;  %v7320_v22 = vld [vmem:[#allocation5 + $0xef4] sm:$0xf0] }
 0x1c6   :  { %v5827_v8 = vld [vmem:[#allocation5 + $0x908] sm:$0xf]  ;;  %v5700_v23 = vor.u32 %v7100_v3, %v5699_v62  ;;  %v7252_v31 = vld [vmem:[#allocation5 + $0xcd4] sm:$0xf0] }
 0x1c7   :  { %3934 = vmatpush.bf16.msra.mxu0 %v5748_v58  ;;  %3947 = vmatpush.bf16.msra.mxu1 %v5876_v9  ;;  %v5955_v61 = vld [vmem:[#allocation5 + $0xa08] sm:$0xf]  ;;  %v7288_v58 = vld [vmem:[#allocation5 + $0xdf4] sm:$0xf0]  ;;  %v5828_v12 = vor.u32 %v7132_v5, %v5827_v8 }
 0x1c8   :  { %3960 = vmatpush.bf16.msra.mxu2 %v6004_v60  ;;  %3973 = vmatpush.bf16.msra.mxu3 %v6132_v56  ;;  %v6083_v51 = vld [vmem:[#allocation5 + $0xb08] sm:$0xf]  ;;  %v7352_v60 = vld [vmem:[#allocation5 + $0xff4] sm:$0xf0]  ;;  %v5956_v56 = vor.u32 %v7164_v10, %v5955_v61 }
 0x1c9   :  { %v6323_v63 = vld [vmem:[#allocation5 + $0xce8] sm:$0xf]  ;;  %v6084_v21 = vor.u32 %v7196_v15, %v6083_v51  ;;  %v7284_v52 = vld [vmem:[#allocation5 + $0xdd4] sm:$0xf0] }
 0x1ca   :  { %v6451_v48 = vld [vmem:[#allocation5 + $0xde8] sm:$0xf]  ;;  %v6324_v50 = vor.u32 %v7256_v44, %v6323_v63  ;;  %v7348_v43 = vld [vmem:[#allocation5 + $0xfd4] sm:$0xf0] }
 0x1cb   :  { %3935 = vmatpush.bf16.msra.mxu0 %v5732_v19  ;;  %3948 = vmatpush.bf16.msra.mxu1 %v5860_v25  ;;  %v6579_v9 = vld [vmem:[#allocation5 + $0xee8] sm:$0xf]  ;;  %v6452_v27 = vor.u32 %v7288_v58, %v6451_v48  ;;  %v7316_v25 = vld [vmem:[#allocation5 + $0xed4] sm:$0xf0] }
 0x1cc   :  { %3961 = vmatpush.bf16.msra.mxu2 %v5988_v35  ;;  %3974 = vmatpush.bf16.msra.mxu3 %v6116_v16  ;;  %v6707_v33 = vld [vmem:[#allocation5 + $0xfe8] sm:$0xf]  ;;  %v6580_v40 = vor.u32 %v7320_v22, %v6579_v9  ;;  %v7248_v13 = vld [vmem:[#allocation5 + $0xcb4] sm:$0xf0] }
 0x1cd   :  { %v6307_v24 = vld [vmem:[#allocation5 + $0xcc8] sm:$0xf]  ;;  %v6708_v20 = vor.u32 %v7352_v60, %v6707_v33  ;;  %v7280_v34 = vld [vmem:[#allocation5 + $0xdb4] sm:$0xf0] }
 0x1ce   :  { %v6435_v57 = vld [vmem:[#allocation5 + $0xdc8] sm:$0xf]  ;;  %v6308_v35 = vor.u32 %v7252_v31, %v6307_v24  ;;  %v7344_v7 = vld [vmem:[#allocation5 + $0xfb4] sm:$0xf0] }
 0x1cf   :  { %3936 = vmatpush.bf16.msra.mxu0 %v5716_v47  ;;  %3949 = vmatpush.bf16.msra.mxu1 %v5844_v1  ;;  %v6563_v19 = vld [vmem:[#allocation5 + $0xec8] sm:$0xf]  ;;  %v6436_v16 = vor.u32 %v7284_v52, %v6435_v57  ;;  %v7312_v47 = vld [vmem:[#allocation5 + $0xeb4] sm:$0xf0] }
 0x1d0   :  { %3962 = vmatpush.bf16.msra.mxu2 %v5972_v29  ;;  %3975 = vmatpush.bf16.msra.mxu3 %v6100_v46  ;;  %v6691_v17 = vld [vmem:[#allocation5 + $0xfc8] sm:$0xf]  ;;  %v6564_v11 = vor.u32 %v7316_v25, %v6563_v19  ;;  %v7244_v5 = vld [vmem:[#allocation5 + $0xc94] sm:$0xf0] }
 0x1d1   :  { %v6291_v45 = vld [vmem:[#allocation5 + $0xca8] sm:$0xf]  ;;  %v6692_v36 = vor.u32 %v7348_v43, %v6691_v17  ;;  %v7276_v15 = vld [vmem:[#allocation5 + $0xd94] sm:$0xf0] }
 0x1d2   :  { %v6419_v54 = vld [vmem:[#allocation5 + $0xda8] sm:$0xf]  ;;  %v6292_v2 = vor.u32 %v7248_v13, %v6291_v45  ;;  %v7308_v48 = vld [vmem:[#allocation5 + $0xe94] sm:$0xf0] }
 0x1d3   :  { %3937 = vmatpush.bf16.msra.mxu0 %v5700_v23  ;;  %3950 = vmatpush.bf16.msra.mxu1 %v5828_v12  ;;  %v6547_v62 = vld [vmem:[#allocation5 + $0xea8] sm:$0xf]  ;;  %v6420_v3 = vor.u32 %v7280_v34, %v6419_v54  ;;  %v3731_v61 = vpop.f32.mrf.mxu0  ;;  %v3744_v10 = vpop.f32.mrf.mxu1  ;;  %v7340_v9 = vld [vmem:[#allocation5 + $0xf94] sm:$0xf0] }
 0x1d4   :  { %3963 = vmatpush.bf16.msra.mxu2 %v5956_v56  ;;  %3976 = vmatpush.bf16.msra.mxu3 %v6084_v21  ;;  %v6675_v1 = vld [vmem:[#allocation5 + $0xfa8] sm:$0xf]  ;;  %v6548_v29 = vor.u32 %v7312_v47, %v6547_v62  ;;  %v3732_v44 = vadd.f32 %v3731_v61, %v8299_v55  ;;  %v7240_v60 = vld [vmem:[#allocation5 + $0xc74] sm:$0xf0] }
 0x1d5   :  { %v6275_v8 = vld [vmem:[#allocation5 + $0xc88] sm:$0xf]  ;;  %v6676_v46 = vor.u32 %v7344_v7, %v6675_v1  ;;  %v7304_v31 = vld [vmem:[#allocation5 + $0xe74] sm:$0xf0] }
 0x1d6   :  { %3938 = vmatmul.bf16.vlgmr.msra.gmra.mxu0 %v8133_v42  ;;  %3951 = vmatmul.bf16.vlgmr.msra.gmra.mxu1 %v8137_v18  ;;  %v6403_v51 = vld [vmem:[#allocation5 + $0xd88] sm:$0xf]  ;;  %v3745_v23 = vadd.f32 %v3744_v10, %v3732_v44  ;;  %v6276_v12 = vor.u32 %v7244_v5, %v6275_v8  ;;  %v7336_v55 = vld [vmem:[#allocation5 + $0xf74] sm:$0xf0] }
 0x1d7   :  { %3982 = vmatpush.bf16.msrb.mxu0 %v6324_v50  ;;  %3995 = vmatpush.bf16.msrb.mxu1 %v6452_v27  ;;  %v6531_v63 = vld [vmem:[#allocation5 + $0xe88] sm:$0xf]  ;;  %v6404_v22 = vor.u32 %v7276_v15, %v6403_v51  ;;  %v7272_v27 = vld [vmem:[#allocation5 + $0xd74] sm:$0xf0] }
 0x1d8   :  { %4008 = vmatpush.bf16.msrb.mxu2 %v6580_v40  ;;  %4021 = vmatpush.bf16.msrb.mxu3 %v6708_v20  ;;  %v6659_v58 = vld [vmem:[#allocation5 + $0xf88] sm:$0xf]  ;;  %v6532_v56 = vor.u32 %v7308_v48, %v6531_v63  ;;  %v7236_v17 = vld [vmem:[#allocation5 + $0xc54] sm:$0xf0] }
 0x1d9   :  { %3964 = vmatmul.bf16.vlgmr.msra.gmra.mxu2 %v8141_v39  ;;  %3977 = vmatmul.bf16.vlgmr.msra.gmra.mxu3 %v8145_v37  ;;  %v6259_v33 = vld [vmem:[#allocation5 + $0xc68] sm:$0xf]  ;;  %v6660_v21 = vor.u32 %v7340_v9, %v6659_v58  ;;  %v7300_v34 = vld [vmem:[#allocation5 + $0xe54] sm:$0xf0] }
 0x1da   :  { %v6387_v50 = vld [vmem:[#allocation5 + $0xd68] sm:$0xf]  ;;  %v6260_v20 = vor.u32 %v7240_v60, %v6259_v33  ;;  %v7332_v47 = vld [vmem:[#allocation5 + $0xf54] sm:$0xf0] }
 0x1db   :  { %3983 = vmatpush.bf16.msrb.mxu0 %v6308_v35  ;;  %3996 = vmatpush.bf16.msrb.mxu1 %v6436_v16  ;;  %v6515_v24 = vld [vmem:[#allocation5 + $0xe68] sm:$0xf]  ;;  %v6388_v57 = vor.u32 %v7272_v27, %v6387_v50  ;;  %v3733_v45 = vpop.f32.mrf.mxu0  ;;  %v3746_v13 = vpop.f32.mrf.mxu1  ;;  %v7232_v8 = vld [vmem:[#allocation5 + $0xc34] sm:$0xf0] }
 0x1dc   :  { %4009 = vmatpush.bf16.msrb.mxu2 %v6564_v11  ;;  %4022 = vmatpush.bf16.msrb.mxu3 %v6692_v36  ;;  %v6643_v40 = vld [vmem:[#allocation5 + $0xf68] sm:$0xf]  ;;  %v3757_v52 = vpop.f32.mrf.mxu2  ;;  %v3770_v19 = vpop.f32.mrf.mxu3  ;;  %v6516_v43 = vor.u32 %v7304_v31, %v6515_v24  ;;  %v7268_v36 = vld [vmem:[#allocation5 + $0xd54] sm:$0xf0]  ;;  %v6870_v31 = vld [vmem:[#allocation5 + $0xec] sm:$0xf] }
 0x1dd   :  { %v6243_v25 = vld [vmem:[#allocation5 + $0xc48] sm:$0xf]  ;;  %v6644_v35 = vor.u32 %v7336_v55, %v6643_v40  ;;  %v3758_v16 = vadd.f32 %v3757_v52, %v3745_v23  ;;  %v7264_v61 = vld [vmem:[#allocation5 + $0xd34] sm:$0xf0]  ;;  %v4789_v40 = vld [vmem:[#allocation5 + $0xf8] sm:$0xf0] }
 0x1de   :  { %v6371_v11 = vld [vmem:[#allocation5 + $0xd48] sm:$0xf]  ;;  %v6244_v7 = vor.u32 %v7236_v17, %v6243_v25  ;;  %v7296_v51 = vld [vmem:[#allocation5 + $0xe34] sm:$0xf0]  ;;  %v6902_v55 = vld [vmem:[#allocation5 + $0x1ec] sm:$0xf]  ;;  %v4792_v45 = vor.u32 %v6870_v31, %v4789_v40 }
 0x1df   :  { %3984 = vmatpush.bf16.msrb.mxu0 %v6292_v2  ;;  %3997 = vmatpush.bf16.msrb.mxu1 %v6420_v3  ;;  %v6499_v54 = vld [vmem:[#allocation5 + $0xe48] sm:$0xf]  ;;  %v8306_v1 = vadd.f32 %v3770_v19, %v3758_v16  ;;  %v6372_v2 = vor.u32 %v7268_v36, %v6371_v11  ;;  %v7328_v63 = vld [vmem:[#allocation5 + $0xf34] sm:$0xf0]  ;;  %v5045_v25 = vld [vmem:[#allocation5 + $0x2f8] sm:$0xf0] }
 0x1e0   :  { %4010 = vmatpush.bf16.msrb.mxu2 %v6548_v29  ;;  %4023 = vmatpush.bf16.msrb.mxu3 %v6676_v46  ;;  %v6627_v62 = vld [vmem:[#allocation5 + $0xf48] sm:$0xf]  ;;  %v6500_v5 = vor.u32 %v7300_v34, %v6499_v54  ;;  %v7260_v33 = vld [vmem:[#allocation5 + $0xd14] sm:$0xf0]  ;;  %v6966_v17 = vld [vmem:[#allocation5 + $0x3ec] sm:$0xf] }
 0x1e1   :  { %v6227_v3 = vld [vmem:[#allocation5 + $0xc28] sm:$0xf]  ;;  %v6628_v29 = vor.u32 %v7332_v47, %v6627_v62  ;;  %v7292_v50 = vld [vmem:[#allocation5 + $0xe14] sm:$0xf0]  ;;  %v6866_v11 = vld [vmem:[#allocation5 + $0xcc] sm:$0xf] }
 0x1e2   :  { %v6355_v46 = vld [vmem:[#allocation5 + $0xd28] sm:$0xf]  ;;  %v6228_v48 = vor.u32 %v7232_v8, %v6227_v3  ;;  %v7324_v24 = vld [vmem:[#allocation5 + $0xf14] sm:$0xf0]  ;;  %v4773_v36 = vld [vmem:[#allocation5 + $0xd8] sm:$0xf0] }
 0x1e3   :  { %3985 = vmatpush.bf16.msrb.mxu0 %v6276_v12  ;;  %3998 = vmatpush.bf16.msrb.mxu1 %v6404_v22  ;;  %v6483_v10 = vld [vmem:[#allocation5 + $0xe28] sm:$0xf]  ;;  %v6356_v58 = vor.u32 %v7264_v61, %v6355_v46  ;;  %v7228_v12 = vld [vmem:[#allocation5 + $0xc14] sm:$0xf0]  ;;  %v6898_v62 = vld [vmem:[#allocation5 + $0x1cc] sm:$0xf] }
 0x1e4   :  { %4011 = vmatpush.bf16.msrb.mxu2 %v6532_v56  ;;  %4024 = vmatpush.bf16.msrb.mxu3 %v6660_v21  ;;  %v6611_v15 = vld [vmem:[#allocation5 + $0xf28] sm:$0xf]  ;;  %v3759_v9 = vpop.f32.mrf.mxu2  ;;  %v3772_v23 = vpop.f32.mrf.mxu3  ;;  %v6484_v60 = vor.u32 %v7296_v51, %v6483_v10  ;;  %v4901_v47 = vld [vmem:[#allocation5 + $0x1d8] sm:$0xf0]  ;;  %v6962_v3 = vld [vmem:[#allocation5 + $0x3cc] sm:$0xf] }
 0x1e5   :  { %v6211_v44 = vld [vmem:[#allocation5 + $0xc08] sm:$0xf]  ;;  %v6612_v56 = vor.u32 %v7328_v63, %v6611_v15  ;;  %v5157_v8 = vld [vmem:[#allocation5 + $0x3d8] sm:$0xf0]  ;;  %v6862_v46 = vld [vmem:[#allocation5 + $0xac] sm:$0xf] }
 0x1e6   :  { %v6339_v22 = vld [vmem:[#allocation5 + $0xd08] sm:$0xf]  ;;  %v6212_v52 = vor.u32 %v7228_v12, %v6211_v44  ;;  %v4757_v61 = vld [vmem:[#allocation5 + $0xb8] sm:$0xf0]  ;;  %v5160_v51 = vor.u32 %v6962_v3, %v5157_v8  ;;  %v6894_v15 = vld [vmem:[#allocation5 + $0x1ac] sm:$0xf] }
 0x1e7   :  { %3986 = vmatpush.bf16.msrb.mxu0 %v6260_v20  ;;  %3999 = vmatpush.bf16.msrb.mxu1 %v6388_v57  ;;  %v6467_v21 = vld [vmem:[#allocation5 + $0xe08] sm:$0xf]  ;;  %v4917_v20 = vld [vmem:[#allocation5 + $0x1f8] sm:$0xf0]  ;;  %v6934_v57 = vld [vmem:[#allocation5 + $0x2ec] sm:$0xf]  ;;  %v6340_v19 = vor.u32 %v7260_v33, %v6339_v22  ;;  %v4760_v23 = vor.u32 %v6862_v46, %v4757_v61 }
 0x1e8   :  { %4012 = vmatpush.bf16.msrb.mxu2 %v6516_v43  ;;  %4025 = vmatpush.bf16.msrb.mxu3 %v6644_v35  ;;  %v6595_v27 = vld [vmem:[#allocation5 + $0xf08] sm:$0xf]  ;;  %v5173_v43 = vld [vmem:[#allocation5 + $0x3f8] sm:$0xf0]  ;;  %v6468_v35 = vor.u32 %v7292_v50, %v6467_v21  ;;  %v4920_v13 = vor.u32 %v6902_v55, %v4917_v20  ;;  %v5048_v54 = vor.u32 %v6934_v57, %v5045_v25  ;;  %v6926_v44 = vld [vmem:[#allocation5 + $0x2ac] sm:$0xf] }
 0x1e9   :  { %v6596_v16 = vor.u32 %v7324_v24, %v6595_v27  ;;  %v5176_v34 = vor.u32 %v6966_v17, %v5173_v43  ;;  %v4885_v63 = vld [vmem:[#allocation5 + $0x1b8] sm:$0xf0]  ;;  %v6858_v22 = vld [vmem:[#allocation5 + $0x8c] sm:$0xf] }
 0x1ea   :  { %v5141_v9 = vld [vmem:[#allocation5 + $0x3b8] sm:$0xf0]  ;;  %v4888_v12 = vor.u32 %v6894_v15, %v4885_v63  ;;  %v6890_v21 = vld [vmem:[#allocation5 + $0x18c] sm:$0xf] }
 0x1eb   :  { %3987 = vmatpush.bf16.msrb.mxu0 %v6244_v7  ;;  %4000 = vmatpush.bf16.msrb.mxu1 %v6372_v2  ;;  %v6930_v7 = vld [vmem:[#allocation5 + $0x2cc] sm:$0xf]  ;;  %v5029_v2 = vld [vmem:[#allocation5 + $0x2d8] sm:$0xf0] }
 0x1ec   :  { %4013 = vmatpush.bf16.msrb.mxu2 %v6500_v5  ;;  %4026 = vmatpush.bf16.msrb.mxu3 %v6628_v29  ;;  %v4776_v5 = vor.u32 %v6866_v11, %v4773_v36  ;;  %v4904_v29 = vor.u32 %v6898_v62, %v4901_v47  ;;  %v5032_v10 = vor.u32 %v6930_v7, %v5029_v2  ;;  %v4741_v33 = vld [vmem:[#allocation5 + $0x98] sm:$0xf0]  ;;  %v6922_v27 = vld [vmem:[#allocation5 + $0x28c] sm:$0xf] }
 0x1ed   :  { %v4869_v50 = vld [vmem:[#allocation5 + $0x198] sm:$0xf0]  ;;  %v6954_v31 = vld [vmem:[#allocation5 + $0x38c] sm:$0xf] }
 0x1ee   :  { %v4997_v24 = vld [vmem:[#allocation5 + $0x298] sm:$0xf0]  ;;  %v6854_v25 = vld [vmem:[#allocation5 + $0x6c] sm:$0xf] }
 0x1ef   :  { %3988 = vmatpush.bf16.msrb.mxu0 %v6228_v48  ;;  %4001 = vmatpush.bf16.msrb.mxu1 %v6356_v58  ;;  %v5013_v48 = vld [vmem:[#allocation5 + $0x2b8] sm:$0xf0]  ;;  %v6958_v58 = vld [vmem:[#allocation5 + $0x3ac] sm:$0xf]  ;;  %v5000_v43 = vor.u32 %v6922_v27, %v4997_v24 }
 0x1f0   :  { %4014 = vmatpush.bf16.msrb.mxu2 %v6484_v60  ;;  %4027 = vmatpush.bf16.msrb.mxu3 %v6612_v56  ;;  %v5016_v60 = vor.u32 %v6926_v44, %v5013_v48  ;;  %v5144_v56 = vor.u32 %v6958_v58, %v5141_v9  ;;  %v5125_v40 = vld [vmem:[#allocation5 + $0x398] sm:$0xf0]  ;;  %v6882_v8 = vld [vmem:[#allocation5 + $0x14c] sm:$0xf] }
 0x1f1   :  { %v4725_v17 = vld [vmem:[#allocation5 + $0x78] sm:$0xf0]  ;;  %v6942_v24 = vld [vmem:[#allocation5 + $0x32c] sm:$0xf] }
 0x1f2   :  { %v4981_v36 = vld [vmem:[#allocation5 + $0x278] sm:$0xf0]  ;;  %v4728_v62 = vor.u32 %v6854_v25, %v4725_v17 }
 0x1f3   :  { %3989 = vmatpush.bf16.msrb.mxu0 %v6212_v52  ;;  %4002 = vmatpush.bf16.msrb.mxu1 %v6340_v19  ;;  %v3783_v55 = vpop.f32.mrf.mxu0  ;;  %v3796_v20 = vpop.f32.mrf.mxu1  ;;  %v4744_v52 = vor.u32 %v6858_v22, %v4741_v33  ;;  %v4872_v19 = vor.u32 %v6890_v21, %v4869_v50  ;;  %v4709_v7 = vld [vmem:[#allocation5 + $0x58] sm:$0xf0]  ;;  %v6910_v50 = vld [vmem:[#allocation5 + $0x22c] sm:$0xf] }
 0x1f4   :  { %4015 = vmatpush.bf16.msrb.mxu2 %v6468_v35  ;;  %4028 = vmatpush.bf16.msrb.mxu3 %v6596_v16  ;;  %v3784_v57 = vadd.f32 %v3783_v55, %v8306_v1  ;;  %v5128_v35 = vor.u32 %v6954_v31, %v5125_v40  ;;  %v6886_v16 = vld [vmem:[#allocation5 + $0x16c] sm:$0xf]  ;;  %v5093_v15 = vld [vmem:[#allocation5 + $0x358] sm:$0xf0] }
 0x1f5   :  { %v6850_v1 = vld [vmem:[#allocation5 + $0x4c] sm:$0xf]  ;;  %v4821_v21 = vld [vmem:[#allocation5 + $0x138] sm:$0xf0] }
 0x1f6   :  { %3990 = vmatmul.bf16.vlgmr.msrb.gmra.mxu0 %v8155_v6  ;;  %4003 = vmatmul.bf16.vlgmr.msrb.gmra.mxu1 %v8159_v41  ;;  %v3797_v11 = vadd.f32 %v3796_v20, %v3784_v57  ;;  %v4712_v58 = vor.u32 %v6850_v1, %v4709_v7  ;;  %v4949_v27 = vld [vmem:[#allocation5 + $0x238] sm:$0xf0]  ;;  %v6842_v40 = vld [vmem:[#allocation5 + $0xc] sm:$0xf] }
 0x1f7   :  { %4034 = vmatpush.bf16.msra.mxu0 %v4792_v45  ;;  %4047 = vmatpush.bf16.msra.mxu1 %v4920_v13  ;;  %v4853_v45 = vld [vmem:[#allocation5 + $0x178] sm:$0xf0]  ;;  %v6918_v13 = vld [vmem:[#allocation5 + $0x26c] sm:$0xf]  ;;  %v4952_v25 = vor.u32 %v6910_v50, %v4949_v27 }
 0x1f8   :  { %4060 = vmatpush.bf16.msra.mxu2 %v5048_v54  ;;  %4073 = vmatpush.bf16.msra.mxu3 %v5176_v34  ;;  %v6950_v54 = vld [vmem:[#allocation5 + $0x36c] sm:$0xf]  ;;  %v5109_v34 = vld [vmem:[#allocation5 + $0x378] sm:$0xf0]  ;;  %v4856_v47 = vor.u32 %v6886_v16, %v4853_v45  ;;  %v4984_v2 = vor.u32 %v6918_v13, %v4981_v36 }
 0x1f9   :  { %4016 = vmatmul.bf16.vlgmr.msrb.gmra.mxu2 %v8163_v49  ;;  %4029 = vmatmul.bf16.vlgmr.msrb.gmra.mxu3 %v8167_v0  ;;  %v5112_v3 = vor.u32 %v6950_v54, %v5109_v34  ;;  %v5077_v31 = vld [vmem:[#allocation5 + $0x338] sm:$0xf0]  ;;  %v6938_v16 = vld [vmem:[#allocation5 + $0x30c] sm:$0xf] }
 0x1fa   :  { %v4677_v57 = vld [vmem:[#allocation5 + $0x18] sm:$0xf0]  ;;  %v5080_v17 = vor.u32 %v6942_v24, %v5077_v31  ;;  %v6998_v36 = vld [vmem:[#allocation5 + $0x4ec] sm:$0xf] }
 0x1fb   :  { %4035 = vmatpush.bf16.msra.mxu0 %v4776_v5  ;;  %4048 = vmatpush.bf16.msra.mxu1 %v4904_v29  ;;  %v4837_v5 = vld [vmem:[#allocation5 + $0x158] sm:$0xf0]  ;;  %v6914_v29 = vld [vmem:[#allocation5 + $0x24c] sm:$0xf]  ;;  %v3785_v44 = vpop.f32.mrf.mxu0  ;;  %v3798_v48 = vpop.f32.mrf.mxu1  ;;  %v4680_v1 = vor.u32 %v6842_v40, %v4677_v57 }
 0x1fc   :  { %4061 = vmatpush.bf16.msra.mxu2 %v5032_v10  ;;  %4074 = vmatpush.bf16.msra.mxu3 %v5160_v51  ;;  %v3809_v46 = vpop.f32.mrf.mxu2  ;;  %v3822_v61 = vpop.f32.mrf.mxu3  ;;  %v4965_v10 = vld [vmem:[#allocation5 + $0x258] sm:$0xf0]  ;;  %v6946_v51 = vld [vmem:[#allocation5 + $0x34c] sm:$0xf]  ;;  %v4840_v9 = vor.u32 %v6882_v8, %v4837_v5 }
 0x1fd   :  { %v3810_v63 = vadd.f32 %v3809_v46, %v3797_v11  ;;  %v4968_v33 = vor.u32 %v6914_v29, %v4965_v10  ;;  %v5061_v11 = vld [vmem:[#allocation5 + $0x318] sm:$0xf0]  ;;  %v7030_v34 = vld [vmem:[#allocation5 + $0x5ec] sm:$0xf] }
 0x1fe   :  { %v5301_v54 = vld [vmem:[#allocation5 + $0x4f8] sm:$0xf0]  ;;  %v5064_v29 = vor.u32 %v6938_v16, %v5061_v11  ;;  %v6994_v10 = vld [vmem:[#allocation5 + $0x4cc] sm:$0xf] }
 0x1ff   :  { %4036 = vmatpush.bf16.msra.mxu0 %v4760_v23  ;;  %4049 = vmatpush.bf16.msra.mxu1 %v4888_v12  ;;  %v6846_v23 = vld [vmem:[#allocation5 + $0x2c] sm:$0xf]  ;;  %v4693_v12 = vld [vmem:[#allocation5 + $0x38] sm:$0xf0]  ;;  %v8313_v22 = vadd.f32 %v3822_v61, %v3810_v63  ;;  %v5304_v46 = vor.u32 %v6998_v36, %v5301_v54 }
 0x200   :  { %4062 = vmatpush.bf16.msra.mxu2 %v5016_v60  ;;  %4075 = vmatpush.bf16.msra.mxu3 %v5144_v56  ;;  %v5096_v60 = vor.u32 %v6946_v51, %v5093_v15  ;;  %v6878_v56 = vld [vmem:[#allocation5 + $0x12c] sm:$0xf]  ;;  %v4696_v55 = vor.u32 %v6846_v23, %v4693_v12  ;;  %v5685_v8 = vld [vmem:[#allocation5 + $0x7f8] sm:$0xf0] }
 0x201   :  { %v4824_v20 = vor.u32 %v6878_v56, %v4821_v21  ;;  %v5285_v51 = vld [vmem:[#allocation5 + $0x4d8] sm:$0xf0]  ;;  %v7026_v44 = vld [vmem:[#allocation5 + $0x5cc] sm:$0xf] }
 0x202   :  { %v5413_v48 = vld [vmem:[#allocation5 + $0x5d8] sm:$0xf0]  ;;  %v7090_v23 = vld [vmem:[#allocation5 + $0x7cc] sm:$0xf] }
 0x203   :  { %4037 = vmatpush.bf16.msra.mxu0 %v4744_v52  ;;  %4050 = vmatpush.bf16.msra.mxu1 %v4872_v19  ;;  %v6874_v52 = vld [vmem:[#allocation5 + $0x10c] sm:$0xf]  ;;  %v4805_v19 = vld [vmem:[#allocation5 + $0x118] sm:$0xf0] }
 0x204   :  { %4063 = vmatpush.bf16.msra.mxu2 %v5000_v43  ;;  %4076 = vmatpush.bf16.msra.mxu3 %v5128_v35  ;;  %v6906_v43 = vld [vmem:[#allocation5 + $0x20c] sm:$0xf]  ;;  %v4933_v35 = vld [vmem:[#allocation5 + $0x218] sm:$0xf0]  ;;  %v3811_v45 = vpop.f32.mrf.mxu2  ;;  %v3824_v13 = vpop.f32.mrf.mxu3  ;;  %v4808_v7 = vor.u32 %v6874_v52, %v4805_v19 }
 0x205   :  { %v4936_v5 = vor.u32 %v6906_v43, %v4933_v35  ;;  %v5669_v12 = vld [vmem:[#allocation5 + $0x7d8] sm:$0xf0]  ;;  %v6990_v56 = vld [vmem:[#allocation5 + $0x4ac] sm:$0xf] }
 0x206   :  { %v5269_v21 = vld [vmem:[#allocation5 + $0x4b8] sm:$0xf0]  ;;  %v5672_v27 = vor.u32 %v7090_v23, %v5669_v12  ;;  %v7022_v24 = vld [vmem:[#allocation5 + $0x5ac] sm:$0xf] }
 0x207   :  { %4038 = vmatpush.bf16.msra.mxu0 %v4728_v62  ;;  %4051 = vmatpush.bf16.msra.mxu1 %v4856_v47  ;;  %v5429_v62 = vld [vmem:[#allocation5 + $0x5f8] sm:$0xf0]  ;;  %v7062_v47 = vld [vmem:[#allocation5 + $0x6ec] sm:$0xf]  ;;  %v5272_v52 = vor.u32 %v6990_v56, %v5269_v21 }
 0x208   :  { %4064 = vmatpush.bf16.msra.mxu2 %v4984_v2  ;;  %4077 = vmatpush.bf16.msra.mxu3 %v5112_v3  ;;  %v5557_v2 = vld [vmem:[#allocation5 + $0x6f8] sm:$0xf0]  ;;  %v7094_v3 = vld [vmem:[#allocation5 + $0x7ec] sm:$0xf]  ;;  %v5432_v61 = vor.u32 %v7030_v34, %v5429_v62 }
 0x209   :  { %v5560_v15 = vor.u32 %v7062_v47, %v5557_v2  ;;  %v5688_v63 = vor.u32 %v7094_v3, %v5685_v8  ;;  %v5397_v31 = vld [vmem:[#allocation5 + $0x5b8] sm:$0xf0]  ;;  %v7054_v40 = vld [vmem:[#allocation5 + $0x6ac] sm:$0xf] }
 0x20a   :  { %v5653_v57 = vld [vmem:[#allocation5 + $0x7b8] sm:$0xf0]  ;;  %v5400_v19 = vor.u32 %v7022_v24, %v5397_v31  ;;  %v7082_v13 = vld [vmem:[#allocation5 + $0x78c] sm:$0xf] }
 0x20b   :  { %4039 = vmatpush.bf16.msra.mxu0 %v4712_v58  ;;  %4052 = vmatpush.bf16.msra.mxu1 %v4840_v9  ;;  %v7058_v58 = vld [vmem:[#allocation5 + $0x6cc] sm:$0xf]  ;;  %v5541_v9 = vld [vmem:[#allocation5 + $0x6d8] sm:$0xf0] }
 0x20c   :  { %4065 = vmatpush.bf16.msra.mxu2 %v4968_v33  ;;  %4078 = vmatpush.bf16.msra.mxu3 %v5096_v60  ;;  %v5288_v33 = vor.u32 %v6994_v10, %v5285_v51  ;;  %v5416_v60 = vor.u32 %v7026_v44, %v5413_v48  ;;  %v5544_v50 = vor.u32 %v7058_v58, %v5541_v9  ;;  %v5381_v16 = vld [vmem:[#allocation5 + $0x598] sm:$0xf0]  ;;  %v6982_v62 = vld [vmem:[#allocation5 + $0x46c] sm:$0xf] }
 0x20d   :  { %v5509_v45 = vld [vmem:[#allocation5 + $0x698] sm:$0xf0]  ;;  %v7014_v2 = vld [vmem:[#allocation5 + $0x56c] sm:$0xf] }
 0x20e   :  { %v5637_v11 = vld [vmem:[#allocation5 + $0x798] sm:$0xf0]  ;;  %v7046_v8 = vld [vmem:[#allocation5 + $0x66c] sm:$0xf] }
 0x20f   :  { %4040 = vmatpush.bf16.msra.mxu0 %v4696_v55  ;;  %4053 = vmatpush.bf16.msra.mxu1 %v4824_v20  ;;  %v5525_v55 = vld [vmem:[#allocation5 + $0x6b8] sm:$0xf0]  ;;  %v7086_v20 = vld [vmem:[#allocation5 + $0x7ac] sm:$0xf] }
 0x210   :  { %4066 = vmatpush.bf16.msra.mxu2 %v4952_v25  ;;  %4079 = vmatpush.bf16.msra.mxu3 %v5080_v17  ;;  %v6986_v25 = vld [vmem:[#allocation5 + $0x48c] sm:$0xf]  ;;  %v5253_v17 = vld [vmem:[#allocation5 + $0x498] sm:$0xf0]  ;;  %v5528_v43 = vor.u32 %v7054_v40, %v5525_v55  ;;  %v5656_v35 = vor.u32 %v7086_v20, %v5653_v57 }
 0x211   :  { %v5256_v54 = vor.u32 %v6986_v25, %v5253_v17  ;;  %v5237_v47 = vld [vmem:[#allocation5 + $0x478] sm:$0xf0]  ;;  %v6978_v51 = vld [vmem:[#allocation5 + $0x44c] sm:$0xf] }
 0x212   :  { %v5365_v3 = vld [vmem:[#allocation5 + $0x578] sm:$0xf0]  ;;  %v7010_v48 = vld [vmem:[#allocation5 + $0x54c] sm:$0xf] }
 0x213   :  { %4041 = vmatpush.bf16.msra.mxu0 %v4680_v1  ;;  %4054 = vmatpush.bf16.msra.mxu1 %v4808_v7  ;;  %v3835_v36 = vpop.f32.mrf.mxu0  ;;  %v5640_v7 = vor.u32 %v7082_v13, %v5637_v11  ;;  %v5368_v10 = vor.u32 %v7014_v2, %v5365_v3  ;;  %v5349_v58 = vld [vmem:[#allocation5 + $0x558] sm:$0xf0]  ;;  %v7042_v9 = vld [vmem:[#allocation5 + $0x64c] sm:$0xf] }
 0x214   :  { %4067 = vmatpush.bf16.msra.mxu2 %v4936_v5  ;;  %4080 = vmatpush.bf16.msra.mxu3 %v5064_v29  ;;  %v5493_v5 = vld [vmem:[#allocation5 + $0x678] sm:$0xf0]  ;;  %v7078_v29 = vld [vmem:[#allocation5 + $0x76c] sm:$0xf]  ;;  %v5352_v31 = vor.u32 %v7010_v48, %v5349_v58 }
 0x215   :  { %v5605_v56 = vld [vmem:[#allocation5 + $0x758] sm:$0xf0]  ;;  %v6974_v40 = vld [vmem:[#allocation5 + $0x42c] sm:$0xf] }
 0x216   :  { %4042 = vmatmul.bf16.vlgmr.msra.gmra.mxu0 %v8443_v59  ;;  %4055 = vmatmul.bf16.vlgmr.msra.gmra.mxu1 %v8444_v32  ;;  %v7018_v59 = vld [vmem:[#allocation5 + $0x58c] sm:$0xf]  ;;  %v5205_v55 = vld [vmem:[#allocation5 + $0x438] sm:$0xf0] }
 0x217   :  { %4086 = vmatpush.bf16.msrb.mxu0 %v5304_v46  ;;  %4099 = vmatpush.bf16.msrb.mxu1 %v5432_v61  ;;  %v7050_v32 = vld [vmem:[#allocation5 + $0x68c] sm:$0xf]  ;;  %v5384_v34 = vor.u32 %v7018_v59, %v5381_v16  ;;  %v5621_v46 = vld [vmem:[#allocation5 + $0x778] sm:$0xf0]  ;;  %v5240_v61 = vor.u32 %v6982_v62, %v5237_v47 }
 0x218   :  { %4112 = vmatpush.bf16.msrb.mxu2 %v5560_v15  ;;  %4125 = vmatpush.bf16.msrb.mxu3 %v5688_v63  ;;  %v5512_v1 = vor.u32 %v7050_v32, %v5509_v45  ;;  %v5221_v15 = vld [vmem:[#allocation5 + $0x458] sm:$0xf0]  ;;  %v5496_v63 = vor.u32 %v7046_v8, %v5493_v5  ;;  %v5624_v44 = vor.u32 %v7078_v29, %v5621_v46  ;;  %v7038_v17 = vld [vmem:[#allocation5 + $0x62c] sm:$0xf] }
 0x219   :  { %4068 = vmatmul.bf16.vlgmr.msra.gmra.mxu2 %v8445_v14  ;;  %4081 = vmatmul.bf16.vlgmr.msra.gmra.mxu3 %v7803_v28  ;;  %v3848_v14 = vpop.f32.mrf.mxu1  ;;  %v5224_v24 = vor.u32 %v6978_v51, %v5221_v15  ;;  %v5333_v25 = vld [vmem:[#allocation5 + $0x538] sm:$0xf0]  ;;  %v6970_v16 = vld [vmem:[#allocation5 + $0x40c] sm:$0xf]  ;;  %v5208_v32 = vor.u32 %v6974_v40, %v5205_v55 }
 0x21a   :  { %v3849_v28 = vadd.f32 %v3848_v14, %v3835_v36  ;;  %v5589_v59 = vld [vmem:[#allocation5 + $0x738] sm:$0xf0]  ;;  %v7002_v11 = vld [vmem:[#allocation5 + $0x50c] sm:$0xf] }
 0x21b   :  { %4087 = vmatpush.bf16.msrb.mxu0 %v5288_v33  ;;  %4100 = vmatpush.bf16.msrb.mxu1 %v5416_v60  ;;  %v5477_v33 = vld [vmem:[#allocation5 + $0x658] sm:$0xf0]  ;;  %v7074_v60 = vld [vmem:[#allocation5 + $0x74c] sm:$0xf] }
 0x21c   :  { %4113 = vmatpush.bf16.msrb.mxu2 %v5544_v50  ;;  %4126 = vmatpush.bf16.msrb.mxu3 %v5672_v27  ;;  %v3861_v23 = vpop.f32.mrf.mxu2  ;;  %v3874_v12 = vpop.f32.mrf.mxu3  ;;  %v5480_v57 = vor.u32 %v7042_v9, %v5477_v33  ;;  %v5189_v13 = vld [vmem:[#allocation5 + $0x418] sm:$0xf0]  ;;  %v7066_v62 = vld [vmem:[#allocation5 + $0x70c] sm:$0xf] }
 0x21d   :  { %v3862_v21 = vadd.f32 %v3861_v23, %v3849_v28  ;;  %v3837_v50 = vpop.f32.mrf.mxu0  ;;  %v5317_v36 = vld [vmem:[#allocation5 + $0x518] sm:$0xf0]  ;;  %v7126_v2 = vld [vmem:[#allocation5 + $0x8ec] sm:$0xf]  ;;  %v5192_v46 = vor.u32 %v6970_v16, %v5189_v13 }
 0x21e   :  { %v5813_v3 = vld [vmem:[#allocation5 + $0x8f8] sm:$0xf0]  ;;  %v7158_v8 = vld [vmem:[#allocation5 + $0x9ec] sm:$0xf] }
 0x21f   :  { %4088 = vmatpush.bf16.msrb.mxu0 %v5272_v52  ;;  %4101 = vmatpush.bf16.msrb.mxu1 %v5400_v19  ;;  %v8319_v20 = vadd.f32 %v3874_v12, %v3862_v21  ;;  %v5608_v52 = vor.u32 %v7074_v60, %v5605_v56  ;;  %v7006_v19 = vld [vmem:[#allocation5 + $0x52c] sm:$0xf]  ;;  %v5941_v5 = vld [vmem:[#allocation5 + $0x9f8] sm:$0xf0]  ;;  %v5816_v48 = vor.u32 %v7126_v2, %v5813_v3 }
 0x220   :  { %4114 = vmatpush.bf16.msrb.mxu2 %v5528_v43  ;;  %4127 = vmatpush.bf16.msrb.mxu3 %v5656_v35  ;;  %v5461_v43 = vld [vmem:[#allocation5 + $0x638] sm:$0xf0]  ;;  %v7070_v35 = vld [vmem:[#allocation5 + $0x72c] sm:$0xf]  ;;  %v5336_v45 = vor.u32 %v7006_v19, %v5333_v25  ;;  %v5944_v58 = vor.u32 %v7158_v8, %v5941_v5 }
 0x221   :  { %v3850_v27 = vpop.f32.mrf.mxu1  ;;  %v5464_v14 = vor.u32 %v7038_v17, %v5461_v43  ;;  %v5592_v28 = vor.u32 %v7070_v35, %v5589_v59  ;;  %v7190_v29 = vld [vmem:[#allocation5 + $0xaec] sm:$0xf]  ;;  %v6197_v15 = vld [vmem:[#allocation5 + $0xbf8] sm:$0xf0] }
 0x222   :  { %v7222_v51 = vld [vmem:[#allocation5 + $0xbec] sm:$0xf]  ;;  %v5797_v23 = vld [vmem:[#allocation5 + $0x8d8] sm:$0xf0] }
 0x223   :  { %4089 = vmatpush.bf16.msrb.mxu0 %v5256_v54  ;;  %4102 = vmatpush.bf16.msrb.mxu1 %v5384_v34  ;;  %v7034_v54 = vld [vmem:[#allocation5 + $0x60c] sm:$0xf]  ;;  %v5445_v34 = vld [vmem:[#allocation5 + $0x618] sm:$0xf0]  ;;  %v6200_v33 = vor.u32 %v7222_v51, %v6197_v15 }
 0x224   :  { %4115 = vmatpush.bf16.msrb.mxu2 %v5512_v1  ;;  %4128 = vmatpush.bf16.msrb.mxu3 %v5640_v7  ;;  %v3863_v47 = vpop.f32.mrf.mxu2  ;;  %v3876_v1 = vpop.f32.mrf.mxu3  ;;  %v5573_v7 = vld [vmem:[#allocation5 + $0x718] sm:$0xf0]  ;;  %v7122_v9 = vld [vmem:[#allocation5 + $0x8cc] sm:$0xf] }
 0x225   :  { %v7154_v60 = vld [vmem:[#allocation5 + $0x9cc] sm:$0xf]  ;;  %v5925_v56 = vld [vmem:[#allocation5 + $0x9d8] sm:$0xf0] }
 0x226   :  { %v7186_v21 = vld [vmem:[#allocation5 + $0xacc] sm:$0xf]  ;;  %v6053_v50 = vld [vmem:[#allocation5 + $0xad8] sm:$0xf0]  ;;  %v5928_v40 = vor.u32 %v7154_v60, %v5925_v56 }
 0x227   :  { %4090 = vmatpush.bf16.msrb.mxu0 %v5240_v61  ;;  %4103 = vmatpush.bf16.msrb.mxu1 %v5368_v10  ;;  %v5320_v61 = vor.u32 %v7002_v11, %v5317_v36  ;;  %v6069_v10 = vld [vmem:[#allocation5 + $0xaf8] sm:$0xf0]  ;;  %v7218_v27 = vld [vmem:[#allocation5 + $0xbcc] sm:$0xf] }
 0x228   :  { %4116 = vmatpush.bf16.msrb.mxu2 %v5496_v63  ;;  %4129 = vmatpush.bf16.msrb.mxu3 %v5624_v44  ;;  %v5448_v63 = vor.u32 %v7034_v54, %v5445_v34  ;;  %v5576_v44 = vor.u32 %v7066_v62, %v5573_v7  ;;  %v6072_v12 = vor.u32 %v7190_v29, %v6069_v10  ;;  %v7118_v55 = vld [vmem:[#allocation5 + $0x8ac] sm:$0xf]  ;;  %v5909_v17 = vld [vmem:[#allocation5 + $0x9b8] sm:$0xf0] }
 0x229   :  { %v7150_v25 = vld [vmem:[#allocation5 + $0x9ac] sm:$0xf]  ;;  %v6037_v35 = vld [vmem:[#allocation5 + $0xab8] sm:$0xf0] }
 0x22a   :  { %v7182_v43 = vld [vmem:[#allocation5 + $0xaac] sm:$0xf]  ;;  %v6165_v16 = vld [vmem:[#allocation5 + $0xbb8] sm:$0xf0] }
 0x22b   :  { %4091 = vmatpush.bf16.msrb.mxu0 %v5224_v24  ;;  %4104 = vmatpush.bf16.msrb.mxu1 %v5352_v31  ;;  %v6181_v24 = vld [vmem:[#allocation5 + $0xbd8] sm:$0xf0]  ;;  %v5800_v31 = vor.u32 %v7122_v9, %v5797_v23  ;;  %v7214_v59 = vld [vmem:[#allocation5 + $0xbac] sm:$0xf]  ;;  %v6040_v36 = vor.u32 %v7182_v43, %v6037_v35 }
 0x22c   :  { %4117 = vmatpush.bf16.msrb.mxu2 %v5480_v57  ;;  %4130 = vmatpush.bf16.msrb.mxu3 %v5608_v52  ;;  %v5781_v57 = vld [vmem:[#allocation5 + $0x8b8] sm:$0xf0]  ;;  %v6056_v52 = vor.u32 %v7186_v21, %v6053_v50  ;;  %v6184_v19 = vor.u32 %v7218_v27, %v6181_v24  ;;  %v7114_v13 = vld [vmem:[#allocation5 + $0x88c] sm:$0xf] }
 0x22d   :  { %v5765_v11 = vld [vmem:[#allocation5 + $0x898] sm:$0xf0]  ;;  %v7210_v34 = vld [vmem:[#allocation5 + $0xb8c] sm:$0xf] }
 0x22e   :  { %v6021_v54 = vld [vmem:[#allocation5 + $0xa98] sm:$0xf0]  ;;  %v7110_v7 = vld [vmem:[#allocation5 + $0x86c] sm:$0xf] }
 0x22f   :  { %4092 = vmatpush.bf16.msrb.mxu0 %v5208_v32  ;;  %4105 = vmatpush.bf16.msrb.mxu1 %v5336_v45  ;;  %v5784_v32 = vor.u32 %v7118_v55, %v5781_v57  ;;  %v5912_v45 = vor.u32 %v7150_v25, %v5909_v17  ;;  %v6149_v62 = vld [vmem:[#allocation5 + $0xb98] sm:$0xf0]  ;;  %v7142_v5 = vld [vmem:[#allocation5 + $0x96c] sm:$0xf] }
 0x230   :  { %4118 = vmatpush.bf16.msrb.mxu2 %v5464_v14  ;;  %4131 = vmatpush.bf16.msrb.mxu3 %v5592_v28  ;;  %v6168_v14 = vor.u32 %v7214_v59, %v6165_v16  ;;  %v5893_v28 = vld [vmem:[#allocation5 + $0x998] sm:$0xf0]  ;;  %v6152_v8 = vor.u32 %v7210_v34, %v6149_v62  ;;  %v7206_v10 = vld [vmem:[#allocation5 + $0xb6c] sm:$0xf] }
 0x231   :  { %v5749_v2 = vld [vmem:[#allocation5 + $0x878] sm:$0xf0]  ;;  %v7138_v23 = vld [vmem:[#allocation5 + $0x94c] sm:$0xf] }
 0x232   :  { %v5877_v29 = vld [vmem:[#allocation5 + $0x978] sm:$0xf0]  ;;  %v5752_v15 = vor.u32 %v7110_v7, %v5749_v2  ;;  %v7202_v50 = vld [vmem:[#allocation5 + $0xb4c] sm:$0xf] }
 0x233   :  { %4093 = vmatpush.bf16.msrb.mxu0 %v5192_v46  ;;  %4106 = vmatpush.bf16.msrb.mxu1 %v5320_v61  ;;  %v8325_v47 = vpop.f32.mrf.mxu0  ;;  %v7174_v46 = vld [vmem:[#allocation5 + $0xa6c] sm:$0xf]  ;;  %v6005_v61 = vld [vmem:[#allocation5 + $0xa78] sm:$0xf0] }
 0x234   :  { %4119 = vmatpush.bf16.msrb.mxu2 %v5448_v63  ;;  %4132 = vmatpush.bf16.msrb.mxu3 %v5576_v44  ;;  %v6133_v51 = vld [vmem:[#allocation5 + $0xb78] sm:$0xf0]  ;;  %v5880_v63 = vor.u32 %v7142_v5, %v5877_v29  ;;  %v7106_v44 = vld [vmem:[#allocation5 + $0x84c] sm:$0xf] }
 0x235   :  { %v6136_v9 = vor.u32 %v7206_v10, %v6133_v51  ;;  %v5989_v21 = vld [vmem:[#allocation5 + $0xa58] sm:$0xf0]  ;;  %v7102_v57 = vld [vmem:[#allocation5 + $0x82c] sm:$0xf] }
 0x236   :  { %4094 = vmatmul.bf16.vlgmr.msrb.gmra.mxu0 %v7945_v26  ;;  %4107 = vmatmul.bf16.vlgmr.msrb.gmra.mxu1 %v7968_v30  ;;  %v7146_v26 = vld [vmem:[#allocation5 + $0x98c] sm:$0xf]  ;;  %v6117_v27 = vld [vmem:[#allocation5 + $0xb58] sm:$0xf0] }
 0x237   :  { %4138 = vmatpush.bf16.msra.mxu0 %v5816_v48  ;;  %4151 = vmatpush.bf16.msra.mxu1 %v5944_v58  ;;  %v7178_v30 = vld [vmem:[#allocation5 + $0xa8c] sm:$0xf]  ;;  %v5896_v1 = vor.u32 %v7146_v26, %v5893_v28  ;;  %v5733_v48 = vld [vmem:[#allocation5 + $0x858] sm:$0xf0]  ;;  %v6008_v58 = vor.u32 %v7174_v46, %v6005_v61  ;;  %v6120_v25 = vor.u32 %v7202_v50, %v6117_v27 }
 0x238   :  { %4164 = vmatpush.bf16.msra.mxu2 %v6072_v12  ;;  %4177 = vmatpush.bf16.msra.mxu3 %v6200_v33  ;;  %v6024_v3 = vor.u32 %v7178_v30, %v6021_v54  ;;  %v5861_v12 = vld [vmem:[#allocation5 + $0x958] sm:$0xf0]  ;;  %v7170_v33 = vld [vmem:[#allocation5 + $0xa4c] sm:$0xf] }
 0x239   :  { %4120 = vmatmul.bf16.vlgmr.msrb.gmra.mxu2 %v7974_v4  ;;  %4133 = vmatmul.bf16.vlgmr.msrb.gmra.mxu3 %v7992_v38  ;;  %v8327_v4 = vpop.f32.mrf.mxu1  ;;  %v5768_v38 = vor.u32 %v7114_v13, %v5765_v11  ;;  %v5864_v55 = vor.u32 %v7138_v23, %v5861_v12  ;;  %v7134_v17 = vld [vmem:[#allocation5 + $0x92c] sm:$0xf]  ;;  %v5845_v43 = vld [vmem:[#allocation5 + $0x938] sm:$0xf0] }
 0x23a   :  { %v7166_v35 = vld [vmem:[#allocation5 + $0xa2c] sm:$0xf]  ;;  %v5973_v59 = vld [vmem:[#allocation5 + $0xa38] sm:$0xf0]  ;;  %v5848_v11 = vor.u32 %v7134_v17, %v5845_v43 }
 0x23b   :  { %4139 = vmatpush.bf16.msra.mxu0 %v5800_v31  ;;  %4152 = vmatpush.bf16.msra.mxu1 %v5928_v40  ;;  %v3889_v24 = vpop.f32.mrf.mxu0  ;;  %v5736_v40 = vor.u32 %v7106_v44, %v5733_v48  ;;  %v7198_v16 = vld [vmem:[#allocation5 + $0xb2c] sm:$0xf]  ;;  %v5829_v26 = vld [vmem:[#allocation5 + $0x918] sm:$0xf0]  ;;  %v5976_v28 = vor.u32 %v7166_v35, %v5973_v59 }
 0x23c   :  { %4165 = vmatpush.bf16.msra.mxu2 %v6056_v52  ;;  %4178 = vmatpush.bf16.msra.mxu3 %v6184_v19  ;;  %v8329_v60 = vpop.f32.mrf.mxu2  ;;  %v8331_v56 = vpop.f32.mrf.mxu3  ;;  %v5717_v52 = vld [vmem:[#allocation5 + $0x838] sm:$0xf0]  ;;  %v5992_v19 = vor.u32 %v7170_v33, %v5989_v21  ;;  %v7162_v54 = vld [vmem:[#allocation5 + $0xa0c] sm:$0xf] }
 0x23d   :  { %v5720_v13 = vor.u32 %v7102_v57, %v5717_v52  ;;  %v5957_v34 = vld [vmem:[#allocation5 + $0xa18] sm:$0xf0]  ;;  %v7194_v62 = vld [vmem:[#allocation5 + $0xb0c] sm:$0xf] }
 0x23e   :  { %v6085_v7 = vld [vmem:[#allocation5 + $0xb18] sm:$0xf0]  ;;  %v7254_v2 = vld [vmem:[#allocation5 + $0xcec] sm:$0xf] }
 0x23f   :  { %4140 = vmatpush.bf16.msra.mxu0 %v5784_v32  ;;  %4153 = vmatpush.bf16.msra.mxu1 %v5912_v45  ;;  %v6101_v32 = vld [vmem:[#allocation5 + $0xb38] sm:$0xf0]  ;;  %v7098_v45 = vld [vmem:[#allocation5 + $0x80c] sm:$0xf]  ;;  %v6088_v44 = vor.u32 %v7194_v62, %v6085_v7 }
 0x240   :  { %4166 = vmatpush.bf16.msra.mxu2 %v6040_v36  ;;  %4179 = vmatpush.bf16.msra.mxu3 %v6168_v14  ;;  %v5701_v36 = vld [vmem:[#allocation5 + $0x818] sm:$0xf0]  ;;  %v7130_v14 = vld [vmem:[#allocation5 + $0x90c] sm:$0xf]  ;;  %v6104_v30 = vor.u32 %v7198_v16, %v6101_v32 }
 0x241   :  { %v3902_v31 = vpop.f32.mrf.mxu1  ;;  %v6453_v5 = vld [vmem:[#allocation5 + $0xdf8] sm:$0xf0]  ;;  %v7318_v29 = vld [vmem:[#allocation5 + $0xeec] sm:$0xf]  ;;  %v5704_v46 = vor.u32 %v7098_v45, %v5701_v36  ;;  %v5832_v61 = vor.u32 %v7130_v14, %v5829_v26 }
 0x242   :  { %v6581_v10 = vld [vmem:[#allocation5 + $0xef8] sm:$0xf0]  ;;  %v7350_v51 = vld [vmem:[#allocation5 + $0xfec] sm:$0xf] }
 0x243   :  { %4141 = vmatpush.bf16.msra.mxu0 %v5768_v38  ;;  %4154 = vmatpush.bf16.msra.mxu1 %v5896_v1  ;;  %v6309_v23 = vld [vmem:[#allocation5 + $0xcd8] sm:$0xf0]  ;;  %v6584_v12 = vor.u32 %v7318_v29, %v6581_v10  ;;  %v7282_v21 = vld [vmem:[#allocation5 + $0xdcc] sm:$0xf] }
 0x244   :  { %4167 = vmatpush.bf16.msra.mxu2 %v6024_v3  ;;  %4180 = vmatpush.bf16.msra.mxu3 %v6152_v8  ;;  %v3915_v38 = vpop.f32.mrf.mxu2  ;;  %v3928_v1 = vpop.f32.mrf.mxu3  ;;  %v6325_v3 = vld [vmem:[#allocation5 + $0xcf8] sm:$0xf0]  ;;  %v7286_v8 = vld [vmem:[#allocation5 + $0xdec] sm:$0xf] }
 0x245   :  { %v6328_v48 = vor.u32 %v7254_v2, %v6325_v3  ;;  %v6437_v50 = vld [vmem:[#allocation5 + $0xdd8] sm:$0xf0]  ;;  %v7314_v27 = vld [vmem:[#allocation5 + $0xecc] sm:$0xf] }
 0x246   :  { %v6565_v24 = vld [vmem:[#allocation5 + $0xed8] sm:$0xf0]  ;;  %v7346_v31 = vld [vmem:[#allocation5 + $0xfcc] sm:$0xf]  ;;  %v6440_v57 = vor.u32 %v7282_v21, %v6437_v50 }
 0x247   :  { %4142 = vmatpush.bf16.msra.mxu0 %v5752_v15  ;;  %4155 = vmatpush.bf16.msra.mxu1 %v5880_v63  ;;  %v6709_v15 = vld [vmem:[#allocation5 + $0xff8] sm:$0xf0]  ;;  %v5960_v63 = vor.u32 %v7162_v54, %v5957_v34  ;;  %v7246_v52 = vld [vmem:[#allocation5 + $0xcac] sm:$0xf] }
 0x248   :  { %4168 = vmatpush.bf16.msra.mxu2 %v6008_v58  ;;  %4181 = vmatpush.bf16.msra.mxu3 %v6136_v9  ;;  %v6456_v58 = vor.u32 %v7286_v8, %v6453_v5  ;;  %v7250_v9 = vld [vmem:[#allocation5 + $0xccc] sm:$0xf]  ;;  %v6712_v33 = vor.u32 %v7350_v51, %v6709_v15  ;;  %v6421_v35 = vld [vmem:[#allocation5 + $0xdb8] sm:$0xf0] }
 0x249   :  { %v7278_v43 = vld [vmem:[#allocation5 + $0xdac] sm:$0xf]  ;;  %v6549_v16 = vld [vmem:[#allocation5 + $0xeb8] sm:$0xf0] }
 0x24a   :  { %v7310_v59 = vld [vmem:[#allocation5 + $0xeac] sm:$0xf]  ;;  %v6677_v45 = vld [vmem:[#allocation5 + $0xfb8] sm:$0xf0] }
 0x24b   :  { %4143 = vmatpush.bf16.msra.mxu0 %v5736_v40  ;;  %4156 = vmatpush.bf16.msra.mxu1 %v5864_v55  ;;  %v6693_v40 = vld [vmem:[#allocation5 + $0xfd8] sm:$0xf0]  ;;  %v6312_v55 = vor.u32 %v7250_v9, %v6309_v23  ;;  %v7342_v32 = vld [vmem:[#allocation5 + $0xfac] sm:$0xf]  ;;  %v6552_v26 = vor.u32 %v7310_v59, %v6549_v16 }
 0x24c   :  { %4169 = vmatpush.bf16.msra.mxu2 %v5992_v19  ;;  %4182 = vmatpush.bf16.msra.mxu3 %v6120_v25  ;;  %v6293_v19 = vld [vmem:[#allocation5 + $0xcb8] sm:$0xf0]  ;;  %v6568_v25 = vor.u32 %v7314_v27, %v6565_v24  ;;  %v6696_v17 = vor.u32 %v7346_v31, %v6693_v40  ;;  %v7242_v36 = vld [vmem:[#allocation5 + $0xc8c] sm:$0xf] }
 0x24d   :  { %v6277_v14 = vld [vmem:[#allocation5 + $0xc98] sm:$0xf0]  ;;  %v7338_v34 = vld [vmem:[#allocation5 + $0xf8c] sm:$0xf] }
 0x24e   :  { %v6533_v54 = vld [vmem:[#allocation5 + $0xe98] sm:$0xf0]  ;;  %v7238_v7 = vld [vmem:[#allocation5 + $0xc6c] sm:$0xf] }
 0x24f   :  { %4144 = vmatpush.bf16.msra.mxu0 %v5720_v13  ;;  %4157 = vmatpush.bf16.msra.mxu1 %v5848_v11  ;;  %v6296_v13 = vor.u32 %v7246_v52, %v6293_v19  ;;  %v6424_v11 = vor.u32 %v7278_v43, %v6421_v35  ;;  %v6661_v62 = vld [vmem:[#allocation5 + $0xf98] sm:$0xf0]  ;;  %v7270_v5 = vld [vmem:[#allocation5 + $0xd6c] sm:$0xf] }
 0x250   :  { %4170 = vmatpush.bf16.msra.mxu2 %v5976_v28  ;;  %4183 = vmatpush.bf16.msra.mxu3 %v6104_v30  ;;  %v6680_v28 = vor.u32 %v7342_v32, %v6677_v45  ;;  %v6405_v30 = vld [vmem:[#allocation5 + $0xd98] sm:$0xf0]  ;;  %v6664_v8 = vor.u32 %v7338_v34, %v6661_v62  ;;  %v7334_v10 = vld [vmem:[#allocation5 + $0xf6c] sm:$0xf]  ;;  %v3888_v32 = vadd.f32 %v8325_v47, %v8319_v20 }
 0x251   :  { %v6261_v2 = vld [vmem:[#allocation5 + $0xc78] sm:$0xf0]  ;;  %v7266_v23 = vld [vmem:[#allocation5 + $0xd4c] sm:$0xf] }
 0x252   :  { %v6389_v29 = vld [vmem:[#allocation5 + $0xd78] sm:$0xf0]  ;;  %v6264_v15 = vor.u32 %v7238_v7, %v6261_v2  ;;  %v7330_v24 = vld [vmem:[#allocation5 + $0xf4c] sm:$0xf]  ;;  %v3901_v62 = vadd.f32 %v8327_v4, %v3888_v32  ;;  %v7353_v32 = vld [vmem:[#allocation7] sm:$0xff] }
 0x253   :  { %4145 = vmatpush.bf16.msra.mxu0 %v5704_v46  ;;  %4158 = vmatpush.bf16.msra.mxu1 %v5832_v61  ;;  %v8337_v38 = vpop.f32.mrf.mxu0  ;;  %v7302_v46 = vld [vmem:[#allocation5 + $0xe6c] sm:$0xf]  ;;  %v6517_v61 = vld [vmem:[#allocation5 + $0xe78] sm:$0xf0] }
 0x254   :  { %4171 = vmatpush.bf16.msra.mxu2 %v5960_v63  ;;  %4184 = vmatpush.bf16.msra.mxu3 %v6088_v44  ;;  %v6645_v51 = vld [vmem:[#allocation5 + $0xf78] sm:$0xf0]  ;;  %v6392_v63 = vor.u32 %v7270_v5, %v6389_v29  ;;  %v7234_v44 = vld [vmem:[#allocation5 + $0xc4c] sm:$0xf]  ;;  %v3914_v2 = vadd.f32 %v8329_v60, %v3901_v62  ;;  %v7359_v60 = vld [vmem:[#allocation7 + $0x30] sm:$0xff] }
 0x255   :  { %v6648_v9 = vor.u32 %v7334_v10, %v6645_v51  ;;  %v6501_v27 = vld [vmem:[#allocation5 + $0xe58] sm:$0xf0]  ;;  %v7230_v19 = vld [vmem:[#allocation5 + $0xc2c] sm:$0xf] }
 0x256   :  { %4146 = vmatmul.bf16.vlgmr.msra.gmra.mxu0 %v8133_v42  ;;  %4159 = vmatmul.bf16.vlgmr.msra.gmra.mxu1 %v8137_v18  ;;  %v7274_v42 = vld [vmem:[#allocation5 + $0xd8c] sm:$0xf]  ;;  %v6629_v31 = vld [vmem:[#allocation5 + $0xf58] sm:$0xf0]  ;;  %v3927_v4 = vadd.f32 %v8331_v56, %v3914_v2 }
 0x257   :  { %4190 = vmatpush.bf16.msrb.mxu0 %v6328_v48  ;;  %4203 = vmatpush.bf16.msrb.mxu1 %v6456_v58  ;;  %v7306_v18 = vld [vmem:[#allocation5 + $0xe8c] sm:$0xf]  ;;  %v6408_v1 = vor.u32 %v7274_v42, %v6405_v30  ;;  %v6245_v48 = vld [vmem:[#allocation5 + $0xc58] sm:$0xf0]  ;;  %v6520_v58 = vor.u32 %v7302_v46, %v6517_v61  ;;  %v6632_v43 = vor.u32 %v7330_v24, %v6629_v31 }
 0x258   :  { %4216 = vmatpush.bf16.msrb.mxu2 %v6584_v12  ;;  %4229 = vmatpush.bf16.msrb.mxu3 %v6712_v33  ;;  %v6536_v3 = vor.u32 %v7306_v18, %v6533_v54  ;;  %v6373_v12 = vld [vmem:[#allocation5 + $0xd58] sm:$0xf0]  ;;  %v7298_v33 = vld [vmem:[#allocation5 + $0xe4c] sm:$0xf]  ;;  %v3940_v51 = vadd.f32 %v8337_v38, %v3927_v4 }
 0x259   :  { %4172 = vmatmul.bf16.vlgmr.msra.gmra.mxu2 %v8141_v39  ;;  %4185 = vmatmul.bf16.vlgmr.msra.gmra.mxu3 %v8145_v37  ;;  %v8339_v39 = vpop.f32.mrf.mxu1  ;;  %v6280_v37 = vor.u32 %v7242_v36, %v6277_v14  ;;  %v6376_v52 = vor.u32 %v7266_v23, %v6373_v12  ;;  %v7262_v35 = vld [vmem:[#allocation5 + $0xd2c] sm:$0xf]  ;;  %v6357_v59 = vld [vmem:[#allocation5 + $0xd38] sm:$0xf0] }
 0x25a   :  { %v7294_v16 = vld [vmem:[#allocation5 + $0xe2c] sm:$0xf]  ;;  %v6485_v45 = vld [vmem:[#allocation5 + $0xe38] sm:$0xf0]  ;;  %v6360_v14 = vor.u32 %v7262_v35, %v6357_v59  ;;  %v3953_v56 = vadd.f32 %v8339_v39, %v3940_v51 }
 0x25b   :  { %4191 = vmatpush.bf16.msrb.mxu0 %v6312_v55  ;;  %4204 = vmatpush.bf16.msrb.mxu1 %v6440_v57  ;;  %v3941_v40 = vpop.f32.mrf.mxu0  ;;  %v6248_v57 = vor.u32 %v7234_v44, %v6245_v48  ;;  %v6488_v42 = vor.u32 %v7294_v16, %v6485_v45  ;;  %v7258_v18 = vld [vmem:[#allocation5 + $0xd0c] sm:$0xf]  ;;  %v6341_v54 = vld [vmem:[#allocation5 + $0xd18] sm:$0xf0]  ;;  %v7361_v45 = vld [vmem:[#allocation7 + $0x40] sm:$0xff] }
 0x25c   :  { %4217 = vmatpush.bf16.msrb.mxu2 %v6568_v25  ;;  %4230 = vmatpush.bf16.msrb.mxu3 %v6696_v17  ;;  %v8341_v21 = vpop.f32.mrf.mxu2  ;;  %v8343_v50 = vpop.f32.mrf.mxu3  ;;  %v6229_v25 = vld [vmem:[#allocation5 + $0xc38] sm:$0xf0]  ;;  %v6504_v17 = vor.u32 %v7298_v33, %v6501_v27  ;;  %v7290_v34 = vld [vmem:[#allocation5 + $0xe0c] sm:$0xf] }
 0x25d   :  { %v6232_v36 = vor.u32 %v7230_v19, %v6229_v25  ;;  %v6469_v47 = vld [vmem:[#allocation5 + $0xe18] sm:$0xf0]  ;;  %v7358_v44 = vld [vmem:[#allocation7 + $0x28] sm:$0xff]  ;;  %v7371_v19 = vld [vmem:[#allocation7 + $0x90] sm:$0xff] }
 0x25e   :  { %v6597_v7 = vld [vmem:[#allocation5 + $0xf18] sm:$0xf0]  ;;  %v6472_v5 = vor.u32 %v7290_v34, %v6469_v47  ;;  %v7366_v38 = vld [vmem:[#allocation7 + $0x68] sm:$0xff] }
 0x25f   :  { %4192 = vmatpush.bf16.msrb.mxu0 %v6296_v13  ;;  %4205 = vmatpush.bf16.msrb.mxu1 %v6424_v11  ;;  %v7326_v13 = vld [vmem:[#allocation5 + $0xf2c] sm:$0xf]  ;;  %v6613_v11 = vld [vmem:[#allocation5 + $0xf38] sm:$0xf0] }
 0x260   :  { %4218 = vmatpush.bf16.msrb.mxu2 %v6552_v26  ;;  %4231 = vmatpush.bf16.msrb.mxu3 %v6680_v28  ;;  %v7226_v26 = vld [vmem:[#allocation5 + $0xc0c] sm:$0xf]  ;;  %v6213_v28 = vld [vmem:[#allocation5 + $0xc18] sm:$0xf0]  ;;  %v6616_v30 = vor.u32 %v7326_v13, %v6613_v11  ;;  %v4242_v13 = vmax.f32 %v8286_v53, 0.0  ;;  %v4243_v11 = vmax.f32 %v8313_v22, 0.0 }
 0x261   :  { %v3954_v55 = vpop.f32.mrf.mxu1  ;;  %v7360_v46 = vld [vmem:[#allocation7 + $0x38] sm:$0xff]  ;;  %v7374_v48 = vld [vmem:[#allocation7 + $0xa8] sm:$0xff] }
 0x262   :  { %v7368_v61 = vld [vmem:[#allocation7 + $0x78] sm:$0xff]  ;;  %v7382_v51 = vld [vmem:[#allocation7 + $0xe8] sm:$0xff] }
 0x263   :  { %4193 = vmatpush.bf16.msrb.mxu0 %v6280_v37  ;;  %4206 = vmatpush.bf16.msrb.mxu1 %v6408_v1  ;;  %v7322_v1 = vld [vmem:[#allocation5 + $0xf0c] sm:$0xf]  ;;  %v7376_v10 = vld [vmem:[#allocation7 + $0xb8] sm:$0xff] }
 0x264   :  { %4219 = vmatpush.bf16.msrb.mxu2 %v6536_v3  ;;  %4232 = vmatpush.bf16.msrb.mxu3 %v6664_v8  ;;  %v3967_v37 = vpop.f32.mrf.mxu2  ;;  %v3980_v20 = vpop.f32.mrf.mxu3  ;;  %v6216_v3 = vor.u32 %v7226_v26, %v6213_v28  ;;  %v6344_v8 = vor.u32 %v7258_v18, %v6341_v54  ;;  %v6600_v29 = vor.u32 %v7322_v1, %v6597_v7  ;;  %v7356_v39 = vld [vmem:[#allocation7 + $0x18] sm:$0xff] }
 0x265   :  { %v7364_v33 = vld [vmem:[#allocation7 + $0x58] sm:$0xff]  ;;  %v4246_v26 = vpack.c.bf16 %v4242_v13, %v4242_v13  ;;  %v4247_v28 = vpack.c.bf16 %v4243_v11, %v4243_v11  ;;  %v7394_v13 = vld [vmem:[#allocation8] ss:$0 sm:$0xff] }
 0x266   :  { %v7372_v27 = vld [vmem:[#allocation7 + $0x98] sm:$0xff] }
 0x267   :  { %4194 = vmatpush.bf16.msrb.mxu0 %v6264_v15  ;;  %4207 = vmatpush.bf16.msrb.mxu1 %v6392_v63  ;;  %v7367_v15 = vld [vmem:[#allocation7 + $0x70] sm:$0xff] }
 0x268   :  { %4220 = vmatpush.bf16.msrb.mxu2 %v6520_v58  ;;  %4233 = vmatpush.bf16.msrb.mxu3 %v6648_v9  ;;  %v7375_v63 = vld [vmem:[#allocation7 + $0xb0] sm:$0xff]  ;;  %v3966_v58 = vadd.f32 %v8341_v21, %v3953_v56  ;;  %v7380_v56 = vld [vmem:[#allocation7 + $0xd8] sm:$0xff] }
 0x26b   :  { %4195 = vmatpush.bf16.msrb.mxu0 %v6248_v57  ;;  %4208 = vmatpush.bf16.msrb.mxu1 %v6376_v52  ;;  %v7355_v57 = vld [vmem:[#allocation7 + $0x10] sm:$0xff] }
 0x26c   :  { %4221 = vmatpush.bf16.msrb.mxu2 %v6504_v17  ;;  %4234 = vmatpush.bf16.msrb.mxu3 %v6632_v43  ;;  %v7363_v52 = vld [vmem:[#allocation7 + $0x50] sm:$0xff]  ;;  %v7362_v17 = vld [vmem:[#allocation7 + $0x48] sm:$0xff] }
 0x26d   :  { %v7370_v43 = vld [vmem:[#allocation7 + $0x88] sm:$0xff] }
 0x26f   :  { %4196 = vmatpush.bf16.msrb.mxu0 %v6232_v36  ;;  %4209 = vmatpush.bf16.msrb.mxu1 %v6360_v14  ;;  %v7369_v36 = vld [vmem:[#allocation7 + $0x80] sm:$0xff] }
 0x270   :  { %4222 = vmatpush.bf16.msrb.mxu2 %v6488_v42  ;;  %4235 = vmatpush.bf16.msrb.mxu3 %v6616_v30 }
 0x273   :  { %4197 = vmatpush.bf16.msrb.mxu0 %v6216_v3  ;;  %4210 = vmatpush.bf16.msrb.mxu1 %v6344_v8  ;;  %v3991_v9 = vpop.f32.mrf.mxu0  ;;  %v4004_v23 = vpop.f32.mrf.mxu1 }
 0x274   :  { %4223 = vmatpush.bf16.msrb.mxu2 %v6472_v5  ;;  %4236 = vmatpush.bf16.msrb.mxu3 %v6600_v29 }
 0x276   :  { %4198 = vmatmul.bf16.vlgmr.msrb.gmra.mxu0 %v8155_v6  ;;  %4211 = vmatmul.bf16.vlgmr.msrb.gmra.mxu1 %v8159_v41  ;;  %v7357_v6 = vld [vmem:[#allocation7 + $0x20] sm:$0xff] }
 0x277   :  { %4510 = vmatpush.bf16.msra.mxu0 %v7360_v46  ;;  %4523 = vmatpush.bf16.msra.mxu1 %v7368_v61  ;;  %v7365_v41 = vld [vmem:[#allocation7 + $0x60] sm:$0xff]  ;;  %v7384_v46 = vld [vmem:[#allocation7 + $0xf8] sm:$0xff]  ;;  %v7383_v61 = vld [vmem:[#allocation7 + $0xf0] sm:$0xff] }
 0x278   :  { %4536 = vmatpush.bf16.msra.mxu2 %v7376_v10  ;;  %4237 = vmatmul.bf16.vlgmr.msrb.gmra.mxu3 %v8167_v0  ;;  %v3979_v0 = vadd.f32 %v8343_v50, %v3966_v58  ;;  %v7354_v50 = vld [vmem:[#allocation7 + $0x8] sm:$0xff] }
 0x279   :  { %4224 = vmatmul.bf16.vlgmr.msrb.gmra.mxu2 %v8163_v49  ;;  %v7373_v49 = vld [vmem:[#allocation7 + $0xa0] sm:$0xff]  ;;  %4549 = vmatpush.bf16.msra.mxu3 %v7384_v46 }
 0x27a   :  { %v3992_v12 = vadd.f32 %v3991_v9, %v3979_v0  ;;  %v7377_v0 = vld [vmem:[#allocation7 + $0xc0] sm:$0xff] }
 0x27b   :  { %4511 = vmatpush.bf16.msra.mxu0 %v7359_v60  ;;  %4524 = vmatpush.bf16.msra.mxu1 %v7367_v15  ;;  %v3993_v21 = vpop.f32.mrf.mxu0  ;;  %v4006_v40 = vpop.f32.mrf.mxu1  ;;  %v7381_v60 = vld [vmem:[#allocation7 + $0xe0] sm:$0xff] }
 0x27c   :  { %4537 = vmatpush.bf16.msra.mxu2 %v7375_v63  ;;  %v4017_v24 = vpop.f32.mrf.mxu2  ;;  %v4030_v31 = vpop.f32.mrf.mxu3  ;;  %v4005_v55 = vadd.f32 %v4004_v23, %v3992_v12 }
 0x27d   :  { %4550 = vmatpush.bf16.msra.mxu3 %v7383_v61 }
 0x27e   :  { %v4018_v25 = vadd.f32 %v4017_v24, %v4005_v55 }
 0x27f   :  { %4512 = vmatpush.bf16.msra.mxu0 %v7358_v44  ;;  %4525 = vmatpush.bf16.msra.mxu1 %v7366_v38  ;;  %v7379_v44 = vld [vmem:[#allocation7 + $0xd0] sm:$0xff] }
 0x280   :  { %4538 = vmatpush.bf16.msra.mxu2 %v7374_v48  ;;  %v4031_v35 = vadd.f32 %v4030_v31, %v4018_v25 }
 0x281   :  { %4551 = vmatpush.bf16.msra.mxu3 %v7382_v51 }
 0x282   :  { %v4244_v14 = vmax.f32 %v4031_v35, 0.0 }
 0x283   :  { %4513 = vmatpush.bf16.msra.mxu0 %v7357_v6  ;;  %4526 = vmatpush.bf16.msra.mxu1 %v7365_v41  ;;  %v7378_v41 = vld [vmem:[#allocation7 + $0xc8] sm:$0xff] }
 0x284   :  { %4539 = vmatpush.bf16.msra.mxu2 %v7373_v49  ;;  %v4019_v59 = vpop.f32.mrf.mxu2  ;;  %v4032_v16 = vpop.f32.mrf.mxu3  ;;  %v4248_v42 = vpack.c.bf16 %v4244_v14, %v4244_v14 }
 0x285   :  { %4552 = vmatpush.bf16.msra.mxu3 %v7381_v60 }
 0x287   :  { %4514 = vmatpush.bf16.msra.mxu0 %v7356_v39  ;;  %4527 = vmatpush.bf16.msra.mxu1 %v7364_v33 }
 0x288   :  { %4540 = vmatpush.bf16.msra.mxu2 %v7372_v27 }
 0x289   :  { %4553 = vmatpush.bf16.msra.mxu3 %v7380_v56 }
 0x28b   :  { %4515 = vmatpush.bf16.msra.mxu0 %v7355_v57  ;;  %4528 = vmatpush.bf16.msra.mxu1 %v7363_v52 }
 0x28c   :  { %4541 = vmatpush.bf16.msra.mxu2 %v7371_v19 }
 0x28d   :  { %4554 = vmatpush.bf16.msra.mxu3 %v7379_v44 }
 0x28f   :  { %4516 = vmatpush.bf16.msra.mxu0 %v7354_v50  ;;  %4529 = vmatpush.bf16.msra.mxu1 %v7362_v17 }
 0x290   :  { %4542 = vmatpush.bf16.msra.mxu2 %v7370_v43 }
 0x291   :  { %4555 = vmatpush.bf16.msra.mxu3 %v7378_v41 }
 0x293   :  { %4517 = vmatpush.bf16.msra.mxu0 %v7353_v32  ;;  %4530 = vmatpush.bf16.msra.mxu1 %v7361_v45  ;;  %v4043_v30 = vpop.f32.mrf.mxu0  ;;  %v4056_v18 = vpop.f32.mrf.mxu1 }
 0x294   :  { %4543 = vmatpush.bf16.msra.mxu2 %v7369_v36  ;;  %v4057_v54 = vadd.f32 %v4056_v18, %v4043_v30 }
 0x295   :  { %4556 = vmatpush.bf16.msra.mxu3 %v7377_v0 }
 0x296   :  { %4518 = vmatmul.bf16.vlgmr.msra.gmra.mxu0 %v4246_v26  ;;  %4531 = vmatmul.bf16.vlgmr.msra.gmra.mxu1 %v4247_v28 }
 0x297   :  { %4544 = vmatmul.bf16.vlgmr.msra.gmra.mxu2 %v4248_v42 }
 0x29b   :  { %v4045_v37 = vpop.f32.mrf.mxu0  ;;  %v4058_v22 = vpop.f32.mrf.mxu1 }
 0x29c   :  { %v4069_v34 = vpop.f32.mrf.mxu2  ;;  %v4082_v62 = vpop.f32.mrf.mxu3 }
 0x29d   :  { %v4070_v53 = vadd.f32 %v4069_v34, %v4057_v54 }
 0x29f   :  { %v4083_v20 = vadd.f32 %v4082_v62, %v4070_v53 }
 0x2a4   :  { %v4071_v47 = vpop.f32.mrf.mxu2  ;;  %v4084_v1 = vpop.f32.mrf.mxu3 }
 0x2b3   :  { %v4095_v7 = vpop.f32.mrf.mxu0  ;;  %v4108_v2 = vpop.f32.mrf.mxu1 }
 0x2b4   :  { %v4096_v38 = vadd.f32 %v4095_v7, %v4083_v20 }
 0x2b6   :  { %v4109_v6 = vadd.f32 %v4108_v2, %v4096_v38 }
 0x2bb   :  { %v4097_v5 = vpop.f32.mrf.mxu0  ;;  %v4110_v29 = vpop.f32.mrf.mxu1 }
 0x2bc   :  { %v4121_v3 = vpop.f32.mrf.mxu2  ;;  %v4134_v8 = vpop.f32.mrf.mxu3 }
 0x2bd   :  { %v4122_v49 = vadd.f32 %v4121_v3, %v4109_v6 }
 0x2bf   :  { %v4135_v33 = vadd.f32 %v4134_v8, %v4122_v49 }
 0x2c4   :  { %v4123_v10 = vpop.f32.mrf.mxu2  ;;  %v4136_v4 = vpop.f32.mrf.mxu3 }
 0x2d3   :  { %v4147_v15 = vpop.f32.mrf.mxu0  ;;  %v4160_v63 = vpop.f32.mrf.mxu1 }
 0x2d4   :  { %v4148_v27 = vadd.f32 %v4147_v15, %v4135_v33 }
 0x2d6   :  { %v4161_v24 = vadd.f32 %v4160_v63, %v4148_v27 }
 0x2db   :  { %v4149_v9 = vpop.f32.mrf.mxu0  ;;  %v4162_v23 = vpop.f32.mrf.mxu1 }
 0x2dc   :  { %v4173_v48 = vpop.f32.mrf.mxu2  ;;  %v4186_v58 = vpop.f32.mrf.mxu3 }
 0x2dd   :  { %v4174_v31 = vadd.f32 %v4173_v48, %v4161_v24 }
 0x2df   :  { %v4187_v21 = vadd.f32 %v4186_v58, %v4174_v31 }
 0x2e4   :  { %v4175_v12 = vpop.f32.mrf.mxu2  ;;  %v4188_v39 = vpop.f32.mrf.mxu3 }
 0x2f3   :  { %v4199_v40 = vpop.f32.mrf.mxu0  ;;  %v4212_v55 = vpop.f32.mrf.mxu1 }
 0x2f4   :  { %v4200_v57 = vadd.f32 %v4199_v40, %v4187_v21 }
 0x2f6   :  { %v4213_v52 = vadd.f32 %v4212_v55, %v4200_v57 }
 0x2fb   :  { %v4238_v50 = vpop.f32.mrf.mxu3  ;;  %v4201_v17 = vpop.f32.mrf.mxu0 }
 0x2fc   :  { %v4225_v19 = vpop.f32.mrf.mxu2  ;;  %v4214_v43 = vpop.f32.mrf.mxu1 }
 0x2fd   :  { %v4226_v25 = vadd.f32 %v4225_v19, %v4213_v52 }
 0x2ff   :  { %v4239_v35 = vadd.f32 %v4238_v50, %v4226_v25 }
 0x301   :  { %v4245_v59 = vmax.f32 %v4239_v35, 0.0 }
 0x303   :  { %v4249_v16 = vpack.c.bf16 %v4245_v59, %v4245_v59  ;;  %v4240_v45 = vpop.f32.mrf.mxu3 }
 0x304   :  { %v4227_v32 = vpop.f32.mrf.mxu2 }
 0x305   :  { %4557 = vmatmul.bf16.vlgmr.msra.gmra.mxu3 %v4249_v16 }
 0x313   :  { %v4519_v11 = vpop.f32.mrf.mxu0  ;;  %v4532_v36 = vpop.f32.mrf.mxu1 }
 0x314   :  { %v4520_v14 = vadd.f32 %v7394_v13, %v4519_v11 }
 0x316   :  { %v4533_v26 = vadd.f32 %v4532_v36, %v4520_v14 }
 0x31a   :  { %v4545_v28 = vpop.f32.mrf.mxu2 }
 0x31b   :  { %v4546_v42 = vadd.f32 %v4545_v28, %v4533_v26  ;;  %v4521_v30 = vpop.f32.mrf.mxu0  ;;  %v4534_v18 = vpop.f32.mrf.mxu1 }
 0x322   :  { %v4547_v54 = vpop.f32.mrf.mxu2 }
 0x388   :  { %v4558_v34 = vpop.f32.mrf.mxu3 }
 0x389   :  { %v4559_v62 = vadd.f32 %v4558_v34, %v4546_v42 }
 0x38b   :  { %v4638_v53 = vmul.f32 %v4559_v62, %v4559_v62 }
 0x38d   :  { %4639 = vadd.xlane.f32.xlu2 %v4638_v53 }
 0x390   :  { %v4560_v37 = vpop.f32.mrf.mxu3 }
 0x400   :  { %v4640_v22 = vpop.xlane.xlu2 %4639 }
 0x401   :  { %v4641_v20 = vmax.f32 %v4640_v22, 1e-24 }
 0x403   :  { %7397 = vrsqrt.f32 %v4641_v20  ;;  %vm4648_vm4 = vweird.f32 %v4641_v20 }
 0x409   :  { %v7398_v47 = vpop.eup %7397 }
 0x40a   :  { %v4643_v1 = vmul.f32 %v7398_v47, %v4641_v20  ;;  %vm4649_vm3 = vweird.f32 %v7398_v47 }
 0x40b   :  { %vm4650_vm5 = vmor %vm4648_vm4, %vm4649_vm3 }
 0x40c   :  { %v4644_v7 = vmul.f32 %v7398_v47, %v4643_v1 }
 0x40e   :  { %v4645_v2 = vmul.f32 0.5, %v4644_v7 }
 0x410   :  { %v4646_v3 = vsub.f32 1.5, %v4645_v2 }
 0x412   :  { %v4647_v8 = vmul.f32 %v7398_v47, %v4646_v3 }
 0x414   :  { %v4651_v5 = vsel %vm4650_vm5, %v7398_v47, %v4647_v8 }
 0x415   :  { %v4652_v29 = vmul.f32 %v4651_v5, %v4559_v62 }
 0x417   :  { %4653 = vst [vmem:[%s8369_s6] sm:$0xff] %v4652_v29 }
 0x418   :  { %4662 = vsyncpa [#allocation4], 1 }
 0x419   :  { %4663 = vsyncpa [#allocation6], 1 }
 0x41a   :  { %4664 = vsyncpa [#allocation9], 1 }

</bundles_post_ra>
